<compile_context>
chip_gen: v6e
topology: v6e:2x2x1
jax: 0.10.0
libtpu: 0.0.40
codegen_flags: <defaults>
</compile_context>

<pallas_src>
import functools

import jax
import jax.numpy as jnp
from jax.experimental import pallas as pl
from jax.experimental.pallas import tpu as pltpu
from jax.scipy.linalg import block_diag

NEG_SLOPE = 0.01          # PyTorch default for leaky_relu / nn.LeakyReLU
COUT = 32                 # every big_conv layer has 32 output channels
PACK = 4                  # output rows packed per 128-lane store (PACK * COUT == 128)
VMEM_LIMIT = 32 * 1024 * 1024


def _round_up(x, m):
    return (x + m - 1) // m * m


def _pick_nb(n):
    """Images per conv grid step: amortize per-step overhead, but keep >= 2 grid
    steps so the 'parallel' batch axis can shard across v7x's two TensorCores."""
    for nb in (8, 4, 2):
        if n % nb == 0 and n // nb >= 2:
            return nb
    return 1


# ----------------------------------------------------------------------------
# Pallas kernel 1: stride-1 VALID conv as KH tap-accumulated matmuls
#                  (+ bias + LeakyReLU), register accumulation, lane-dense I/O
# ----------------------------------------------------------------------------
def _conv_tap_kernel(x_ref, w_ref, b_ref, o_ref, *, offsets, chunks, nb):
    """x_ref: (Lc4, 4K) [or (NB, Lc4, 4K)] bf16  kw-im2col'd, 4-row-packed slab
       w_ref: (KH, 4K, 128) bf16  per-kh-tap 4-way block-diagonal weights
       b_ref: (1, 128) f32        bias tiled 4x along lanes
       o_ref: (M4, 128) [or (NB, M4, 128)] bf16  4 output rows per 128-lane row

    For each chunk of packed rows the KH tap matmuls accumulate into an f32
    *register* value (no VMEM scratch round-trips); bias + LeakyReLU; a single
    lane-dense (128-wide) store per chunk."""
    bias = b_ref[...]
    for n in range(nb):                              # static unroll over images
        for r0, rl in chunks:                        # static unroll over M-chunks
            def tap(a):
                lo = r0 + offsets[a]
                xs = (x_ref[lo:lo + rl, :] if nb == 1
                      else x_ref[n, lo:lo + rl, :])
                return jnp.dot(xs, w_ref[a], preferred_element_type=jnp.float32)
            acc = tap(0)
            for a in range(1, len(offsets)):         # static unroll over kh taps
                acc = acc + tap(a)
            y = acc + bias
            y = jnp.where(y > 0, y, NEG_SLOPE * y).astype(o_ref.dtype)
            if nb == 1:
                o_ref[r0:r0 + rl, :] = y
            else:
                o_ref[n, r0:r0 + rl, :] = y


def _conv_lrelu(x, w4, b4, *, khp, kwp, HO, WO):
    """Stride-1 VALID conv (NHWC, Cout=32) + LeakyReLU.

    x : (N, Hp, Wp, Cin) bf16 (phased) input, Hp = HO + khp - 1
    w4: (khp, PACK*kwp*Cin, 128) bf16 block-diagonal packed taps
    b4: (1, 128) f32
    Returns (N, HO, WO, 32) bf16.
    """
    N, Hp, Wp, Cin = x.shape
    Wpp = _round_up(Wp, 8)                  # sublane-aligned flattened row stride
    if Wpp != Wp:
        x = jnp.pad(x, ((0, 0), (0, 0), (0, Wpp - Wp), (0, 0)))
    Lc = Hp * Wpp                           # = (HO + khp - 1) * Wpp
    xf = x.reshape(N, Lc, Cin)
    if kwp > 1:                             # kw-axis partial im2col: K = kwp*Cin
        xf = jnp.pad(xf, ((0, 0), (0, kwp - 1), (0, 0)))
        xf = jnp.concatenate([xf[:, s:s + Lc, :] for s in range(kwp)], axis=-1)
    K = kwp * Cin
    x4 = xf.reshape(N, Lc // PACK, PACK * K)  # 4-row pack: same linear order (free)

    M4 = HO * Wpp // PACK                     # packed output rows per image
    offsets = tuple(a * (Wpp // PACK) for a in range(khp))
    step = 128                                # packed rows per register chunk (<=16 vregs acc)
    chunks = tuple((s, min(step, M4 - s)) for s in range(0, M4, step))
    nb = _pick_nb(N)

    if nb == 1:
        x_spec = pl.BlockSpec((None, Lc // PACK, PACK * K), lambda i: (i, 0, 0))
        o_spec = pl.BlockSpec((None, M4, 128), lambda i: (i, 0, 0))
    else:
        x_spec = pl.BlockSpec((nb, Lc // PACK, PACK * K), lambda i: (i, 0, 0))
        o_spec = pl.BlockSpec((nb, M4, 128), lambda i: (i, 0, 0))

    kernel = functools.partial(_conv_tap_kernel, offsets=offsets, chunks=chunks, nb=nb)
    y = pl.pallas_call(
        kernel,
        out_shape=jax.ShapeDtypeStruct((N, M4, 128), jnp.bfloat16),
        grid=(N // nb,),                      # batch-blocked grid
        in_specs=[x_spec,
                  pl.BlockSpec((khp, PACK * K, 128), lambda i: (0, 0, 0)),
                  pl.BlockSpec((1, 128), lambda i: (0, 0))],
        out_specs=o_spec,
        compiler_params=pltpu.CompilerParams(
            dimension_semantics=("parallel",),      # shard batch over v7x's 2 TCs
            vmem_limit_bytes=VMEM_LIMIT),
    )(x4, w4, b4)
    # (M4, 128) has the same linear order as (HO*Wpp, 32): reshape is free; then
    # drop the junk right-edge columns produced by the Wp padding.
    return y.reshape(N, HO, Wpp, COUT)[:, :, :WO, :]


# ----------------------------------------------------------------------------
# Stride-2 conv == stride-1 conv on 2x2 space-to-depth ("phased") input/weights
# ----------------------------------------------------------------------------
def _phase_stride2_input(x, HO, WO, kh, kw):
    """(N,H,W,C) -> (N,Hp,Wp,4C), channel order (p, q, c); pure re-indexing."""
    Hp = HO + kh // 2 - 1
    Wp = WO + kw // 2 - 1
    phases = []
    for p in range(2):
        for q in range(2):
            phases.append(x[:, p:p + 2 * Hp:2, q:q + 2 * Wp:2, :])
    return jnp.concatenate(phases, axis=-1)


def _phase_stride2_weights(w):
    """(KH,KW,C,O) -> (KH//2,KW//2,4C,O) matching _phase_stride2_input order."""
    blocks = []
    for p in range(2):
        for q in range(2):
            blocks.append(w[p::2, q::2, :, :])
    return jnp.concatenate(blocks, axis=2)


def conv2d_lrelu_s2(x, w4, b4, kh, kw):
    """Stride-2 VALID conv + LeakyReLU (w4/b4 from _pack_conv_weights(stride=2))."""
    N, H, W, C = x.shape
    HO = (H - kh) // 2 + 1
    WO = (W - kw) // 2 + 1
    xp = _phase_stride2_input(x, HO, WO, kh, kw).astype(jnp.bfloat16)
    return _conv_lrelu(xp, w4, b4, khp=kh // 2, kwp=kw // 2, HO=HO, WO=WO)


def conv2d_lrelu_s1(x, w4, b4, kh, kw):
    """Stride-1 VALID conv + LeakyReLU."""
    N, H, W, C = x.shape
    return _conv_lrelu(x.astype(jnp.bfloat16), w4, b4, khp=kh, kwp=kw,
                       HO=H - kh + 1, WO=W - kw + 1)


# ----------------------------------------------------------------------------
# Pallas kernel 2: fused head  lin1 -> LeakyReLU -> lin2 -> LeakyReLU -> output
# ----------------------------------------------------------------------------
def _head_kernel(xf_ref, ex_ref, w1x_ref, w1e_ref, b1_ref,
                 w2h_ref, w2e_ref, b2_ref, wo_ref, bo_ref, o_ref):
    """torch.cat((x, vec, *aux, a)) is realized as split-weight contributions,
    so `h` never leaves VMEM and no concatenated feature buffer is built.
    All MXU operands are bf16 (incl. the extras path); accumulation is f32."""
    ex = ex_ref[...]                                              # (TB, E) bf16
    h = (jnp.dot(xf_ref[...], w1x_ref[...], preferred_element_type=jnp.float32)
         + jnp.dot(ex, w1e_ref[...], preferred_element_type=jnp.float32)
         + b1_ref[...])
    h = jnp.where(h > 0, h, NEG_SLOPE * h)                        # leaky_relu(lin1)
    h = (jnp.dot(h.astype(jnp.bfloat16), w2h_ref[...], preferred_element_type=jnp.float32)
         + jnp.dot(ex, w2e_ref[...], preferred_element_type=jnp.float32)
         + b2_ref[...])
    h = jnp.where(h > 0, h, NEG_SLOPE * h)                        # leaky_relu(lin2)
    # output_layer (hidden -> 1) as broadcast-multiply + lane reduction
    o_ref[...] = jnp.sum(h * wo_ref[...], axis=-1, keepdims=True) + bo_ref[...]


def _pick_tb(b):
    """Batch tile for the head: full batch when tiny, otherwise a multiple of 8
    giving >= 2 grid steps (v7x megacore) and capped at 256 rows."""
    if b <= 8:
        return b
    return min(256, 8 * ((b + 15) // 16))


def head_forward(kp, x_flat, extra):
    B, K1 = x_flat.shape
    E = extra.shape[1]
    Hh = kp["l1_b"].shape[1]
    TB = _pick_tb(B)
    return pl.pallas_call(
        _head_kernel,
        out_shape=jax.ShapeDtypeStruct((B, 1), jnp.float32),
        grid=(pl.cdiv(B, TB),),
        in_specs=[
            pl.BlockSpec((TB, K1), lambda i: (i, 0)),
            pl.BlockSpec((TB, E), lambda i: (i, 0)),
            pl.BlockSpec((K1, Hh), lambda i: (0, 0)),
            pl.BlockSpec((E, Hh), lambda i: (0, 0)),
            pl.BlockSpec((1, Hh), lambda i: (0, 0)),
            pl.BlockSpec((Hh, Hh), lambda i: (0, 0)),
            pl.BlockSpec((E, Hh), lambda i: (0, 0)),
            pl.BlockSpec((1, Hh), lambda i: (0, 0)),
            pl.BlockSpec((1, Hh), lambda i: (0, 0)),
            pl.BlockSpec((1, 1), lambda i: (0, 0)),
        ],
        out_specs=pl.BlockSpec((TB, 1), lambda i: (i, 0)),
        compiler_params=pltpu.CompilerParams(
            dimension_semantics=("parallel",),
            vmem_limit_bytes=VMEM_LIMIT),
    )(x_flat, extra, kp["l1_wx"], kp["l1_we"], kp["l1_b"],
      kp["l2_wh"], kp["l2_we"], kp["l2_b"], kp["out_w"], kp["out_b"])


# ----------------------------------------------------------------------------
# Parameters (synthetic, PyTorch-equivalent layout) + trace-time preparation
# ----------------------------------------------------------------------------
def _conv_out_hw(h, w):
    for k, s in ((8, 2), (4, 2), (4, 2), (4, 1)):
        h = (h - k) // s + 1
        w = (w - k) // s + 1
    return h, w


def init_params(key, img_shape, vec_dim, aux_dims, act_dim, hidden_units):
    """Conv weights stored (KH,KW,Cin,Cout) (= torch (Cout,Cin,KH,KW).permute(2,3,1,0));
    linear weights stored (in,out) (= torch W.T), l1 conv rows in NCHW-flatten order."""
    C, H, W = img_shape
    ho, wo = _conv_out_hw(H, W)
    conv_size = 32 * ho * wo
    extra = vec_dim + sum(aux_dims) + act_dim
    ks = jax.random.split(key, 14)

    def w_init(k, shape, fan_in):
        return jax.random.normal(k, shape, jnp.float32) / jnp.sqrt(fan_in)

    return {
        "c1_w": w_init(ks[0], (8, 8, C, 32), 8 * 8 * C),
        "c1_b": w_init(ks[1], (32,), 8 * 8 * C),
        "c2_w": w_init(ks[2], (4, 4, 32, 32), 4 * 4 * 32),
        "c2_b": w_init(ks[3], (32,), 4 * 4 * 32),
        "c3_w": w_init(ks[4], (4, 4, 32, 32), 4 * 4 * 32),
        "c3_b": w_init(ks[5], (32,), 4 * 4 * 32),
        "c4_w": w_init(ks[6], (4, 4, 32, 32), 4 * 4 * 32),
        "c4_b": w_init(ks[7], (32,), 4 * 4 * 32),
        "l1_w": w_init(ks[8], (conv_size + extra, hidden_units), conv_size + extra),
        "l1_b": w_init(ks[9], (hidden_units,), conv_size + extra),
        "l2_w": w_init(ks[10], (hidden_units + extra, hidden_units), hidden_units + extra),
        "l2_b": w_init(ks[11], (hidden_units,), hidden_units + extra),
        "out_w": w_init(ks[12], (hidden_units, 1), hidden_units),
        "out_b": w_init(ks[13], (1,), hidden_units),
    }


def _pack_conv_weights(w, b, *, stride):
    """(KH,KW,Cin,Cout) f32, (Cout,) f32 ->
         ((KHp, PACK*KWp*Cinp, 128) bf16, (1, 128) f32)

    1. stride-2 weights are phased (space-to-depth companion of the input),
    2. kw taps are folded into the contraction axis, row-major over (kw, cin),
       matching the wrapper's kw-im2col channel order,
    3. each kh tap is replicated into a PACK-way block-diagonal matrix so one
       (rows, PACK*K) x (PACK*K, 128) dot yields PACK consecutive output rows
       packed along the 128-lane axis (lane-dense, no in-kernel reshape)."""
    if stride == 2:
        w = _phase_stride2_weights(w)
    KH, KW, Cin, Cout = w.shape
    wt = w.reshape(KH, KW * Cin, Cout)
    w4 = jnp.stack([block_diag(*([wt[a]] * PACK)) for a in range(KH)])
    b4 = jnp.tile(b.astype(jnp.float32), PACK).reshape(1, PACK * Cout)
    return w4.astype(jnp.bfloat16), b4


def prepare_kernel_params(params, img_shape, hidden_units):
    """Exact, trace-time weight transforms:
       - fold x/255 - 0.5 into conv1:  w' = w/255,  b' = b - 0.5 * sum_{kh,kw,cin} w
       - phase stride-2 weights, fold kw into K, 4-way block-diagonal pack (lane-dense)
       - permute l1's conv-part rows NCHW->NHWC so the activation transpose is dropped
       - split l1/l2 at the concat boundary (replaces torch.cat with split matmuls)
       - cast all MXU operands (incl. the extras path) to bf16; f32 accumulation."""
    C, H, W = img_shape
    ho, wo = _conv_out_hw(H, W)
    conv_size = 32 * ho * wo

    w1 = params["c1_w"]
    b1 = params["c1_b"] - 0.5 * jnp.sum(w1, axis=(0, 1, 2))
    kp = {}
    kp["c1_w4"], kp["c1_b4"] = _pack_conv_weights(w1 / 255.0, b1, stride=2)
    kp["c2_w4"], kp["c2_b4"] = _pack_conv_weights(params["c2_w"], params["c2_b"], stride=2)
    kp["c3_w4"], kp["c3_b4"] = _pack_conv_weights(params["c3_w"], params["c3_b"], stride=2)
    kp["c4_w4"], kp["c4_b4"] = _pack_conv_weights(params["c4_w"], params["c4_b"], stride=1)

    # Row permutation so NHWC-flattened conv features hit the right l1 rows.
    perm = jnp.arange(conv_size).reshape(32, ho, wo).transpose(1, 2, 0).reshape(-1)
    l1 = params["l1_w"]
    kp["l1_wx"] = l1[:conv_size][perm].astype(jnp.bfloat16)   # (conv_size, hidden)
    kp["l1_we"] = l1[conv_size:].astype(jnp.bfloat16)         # (extra, hidden)
    kp["l1_b"] = params["l1_b"].reshape(1, -1)
    l2 = params["l2_w"]
    kp["l2_wh"] = l2[:hidden_units].astype(jnp.bfloat16)      # (hidden, hidden)
    kp["l2_we"] = l2[hidden_units:].astype(jnp.bfloat16)      # (extra, hidden)
    kp["l2_b"] = params["l2_b"].reshape(1, -1)
    kp["out_w"] = params["out_w"].reshape(1, -1)              # (1, hidden) f32
    kp["out_b"] = params["out_b"].reshape(1, 1)
    return kp


# ----------------------------------------------------------------------------
# ConvCritic.forward
# ----------------------------------------------------------------------------
def conv_critic_forward(kp, observation, a):
    (img, vec), *aux = observation
    B = img.shape[0]

    # x.float()/255 - 0.5 is folded into kp["c1_w4"/"c1_b4"]; image stays uint8
    # until the space-to-depth restructure casts it to bf16.
    x = img.transpose(0, 2, 3, 1)                                # NCHW -> NHWC, uint8

    x = conv2d_lrelu_s2(x, kp["c1_w4"], kp["c1_b4"], 8, 8)
    x = conv2d_lrelu_s2(x, kp["c2_w4"], kp["c2_b4"], 4, 4)
    x = conv2d_lrelu_s2(x, kp["c3_w4"], kp["c3_b4"], 4, 4)
    x = conv2d_lrelu_s1(x, kp["c4_w4"], kp["c4_b4"], 4, 4)

    x_flat = x.reshape(B, -1)          # NHWC flatten; l1_wx rows pre-permuted to match
    extra = jnp.concatenate((vec, *aux, a), axis=-1).astype(jnp.bfloat16)
    return head_forward(kp, x_flat, extra)           # (B, 1) f32


# ----------------------------------------------------------------------------
if __name__ == "__main__":
    key = jax.random.PRNGKey(0)
    B, C, H, W = 2, 4, 64, 64          # 64x64 is the minimum-friendly size for big_conv
    VEC_DIM, AUX_DIM, ACT_DIM = 8, 3, 2
    HIDDEN = 32                        # small hidden size for the synthetic test

    k_img, k_vec, k_aux, k_act, k_par = jax.random.split(key, 5)
    img = jax.random.randint(k_img, (B, C, H, W), 0, 256, dtype=jnp.int32).astype(jnp.uint8)
    vec = jax.random.normal(k_vec, (B, VEC_DIM), jnp.float32)
    aux = jax.random.normal(k_aux, (B, AUX_DIM), jnp.float32)
    act = jax.random.normal(k_act, (B, ACT_DIM), jnp.float32)

    params = init_params(k_par, (C, H, W), VEC_DIM, (AUX_DIM,), ACT_DIM, HIDDEN)
    kparams = prepare_kernel_params(params, (C, H, W), HIDDEN)

    observation = ((img, vec), aux)    # matches: (x, vec), *aux = observation
    fwd = jax.jit(conv_critic_forward)
    out = jax.block_until_ready(fwd(kparams, observation, act))

    assert out.shape == (B, 1) and out.dtype == jnp.float32
    assert bool(jnp.all(jnp.isfinite(out)))
    print("KERNEL_OK")
</pallas_src>

<mosaic_0001>
module attributes {stable_mosaic.version = 11 : i64} {
  func.func @_conv_tap_kernel(%arg0: i32, %arg1: memref<1x256x256xbf16, #tpu.memory_space<vmem>>, %arg2: memref<4x256x128xbf16, #tpu.memory_space<vmem>>, %arg3: memref<1x128xf32, #tpu.memory_space<vmem>>, %arg4: memref<1x232x128xbf16, #tpu.memory_space<vmem>>) attributes {dimension_semantics = [#tpu.dimension_semantics<parallel>], iteration_bounds = array<i64: 2>, scalar_prefetch = 0 : i64, scratch_operands = 0 : i64, tpu.core_type = #tpu.core_type<tc>, window_params = [{transform_indices = @transform_0, window_bounds = array<i64: 1, 256, 256>}, {pipeline_mode = #tpu.pipeline_mode<synchronous>, transform_indices = @transform_1, window_bounds = array<i64: 4, 256, 128>}, {pipeline_mode = #tpu.pipeline_mode<synchronous>, transform_indices = @transform_2, window_bounds = array<i64: 1, 128>}, {transform_indices = @transform_3, window_bounds = array<i64: 1, 232, 128>}]} {
    %c0 = arith.constant 0 : index
    %c0_0 = arith.constant 0 : index
    %0 = vector.load %arg3[%c0, %c0_0] : memref<1x128xf32, #tpu.memory_space<vmem>>, vector<1x128xf32>
    %c0_1 = arith.constant 0 : index
    %c0_2 = arith.constant 0 : index
    %c0_3 = arith.constant 0 : index
    %1 = vector.load %arg1[%c0_1, %c0_2, %c0_3] : memref<1x256x256xbf16, #tpu.memory_space<vmem>>, vector<1x128x256xbf16>
    %2 = vector.shape_cast %1 : vector<1x128x256xbf16> to vector<128x256xbf16>
    %c0_4 = arith.constant 0 : index
    %c0_5 = arith.constant 0 : index
    %c0_6 = arith.constant 0 : index
    %3 = vector.load %arg2[%c0_4, %c0_5, %c0_6] : memref<4x256x128xbf16, #tpu.memory_space<vmem>>, vector<1x256x128xbf16>
    %4 = vector.shape_cast %3 : vector<1x256x128xbf16> to vector<256x128xbf16>
    %cst = arith.constant dense<0.000000e+00> : vector<128x128xf32>
    %5 = tpu.matmul %2, %4, %cst {dimension_numbers = #tpu.dot_dimension_numbers<[1], [0], [0], [1], [0, 0, 1, 1], [], []>} : vector<128x256xbf16>, vector<256x128xbf16>, vector<128x128xf32> -> vector<128x128xf32>
    %c0_7 = arith.constant 0 : index
    %c8 = arith.constant 8 : index
    %c0_8 = arith.constant 0 : index
    %6 = vector.load %arg1[%c0_7, %c8, %c0_8] : memref<1x256x256xbf16, #tpu.memory_space<vmem>>, vector<1x128x256xbf16>
    %7 = vector.shape_cast %6 : vector<1x128x256xbf16> to vector<128x256xbf16>
    %c1 = arith.constant 1 : index
    %c0_9 = arith.constant 0 : index
    %c0_10 = arith.constant 0 : index
    %8 = vector.load %arg2[%c1, %c0_9, %c0_10] : memref<4x256x128xbf16, #tpu.memory_space<vmem>>, vector<1x256x128xbf16>
    %9 = vector.shape_cast %8 : vector<1x256x128xbf16> to vector<256x128xbf16>
    %cst_11 = arith.constant dense<0.000000e+00> : vector<128x128xf32>
    %10 = tpu.matmul %7, %9, %cst_11 {dimension_numbers = #tpu.dot_dimension_numbers<[1], [0], [0], [1], [0, 0, 1, 1], [], []>} : vector<128x256xbf16>, vector<256x128xbf16>, vector<128x128xf32> -> vector<128x128xf32>
    %11 = arith.addf %5, %10 : vector<128x128xf32>
    %c0_12 = arith.constant 0 : index
    %c16 = arith.constant 16 : index
    %c0_13 = arith.constant 0 : index
    %12 = vector.load %arg1[%c0_12, %c16, %c0_13] : memref<1x256x256xbf16, #tpu.memory_space<vmem>>, vector<1x128x256xbf16>
    %13 = vector.shape_cast %12 : vector<1x128x256xbf16> to vector<128x256xbf16>
    %c2 = arith.constant 2 : index
    %c0_14 = arith.constant 0 : index
    %c0_15 = arith.constant 0 : index
    %14 = vector.load %arg2[%c2, %c0_14, %c0_15] : memref<4x256x128xbf16, #tpu.memory_space<vmem>>, vector<1x256x128xbf16>
    %15 = vector.shape_cast %14 : vector<1x256x128xbf16> to vector<256x128xbf16>
    %cst_16 = arith.constant dense<0.000000e+00> : vector<128x128xf32>
    %16 = tpu.matmul %13, %15, %cst_16 {dimension_numbers = #tpu.dot_dimension_numbers<[1], [0], [0], [1], [0, 0, 1, 1], [], []>} : vector<128x256xbf16>, vector<256x128xbf16>, vector<128x128xf32> -> vector<128x128xf32>
    %17 = arith.addf %11, %16 : vector<128x128xf32>
    %c0_17 = arith.constant 0 : index
    %c24 = arith.constant 24 : index
    %c0_18 = arith.constant 0 : index
    %18 = vector.load %arg1[%c0_17, %c24, %c0_18] : memref<1x256x256xbf16, #tpu.memory_space<vmem>>, vector<1x128x256xbf16>
    %19 = vector.shape_cast %18 : vector<1x128x256xbf16> to vector<128x256xbf16>
    %c3 = arith.constant 3 : index
    %c0_19 = arith.constant 0 : index
    %c0_20 = arith.constant 0 : index
    %20 = vector.load %arg2[%c3, %c0_19, %c0_20] : memref<4x256x128xbf16, #tpu.memory_space<vmem>>, vector<1x256x128xbf16>
    %21 = vector.shape_cast %20 : vector<1x256x128xbf16> to vector<256x128xbf16>
    %cst_21 = arith.constant dense<0.000000e+00> : vector<128x128xf32>
    %22 = tpu.matmul %19, %21, %cst_21 {dimension_numbers = #tpu.dot_dimension_numbers<[1], [0], [0], [1], [0, 0, 1, 1], [], []>} : vector<128x256xbf16>, vector<256x128xbf16>, vector<128x128xf32> -> vector<128x128xf32>
    %23 = arith.addf %17, %22 : vector<128x128xf32>
    %24 = vector.broadcast %0 : vector<1x128xf32> to vector<128x128xf32>
    %25 = arith.addf %23, %24 : vector<128x128xf32>
    %cst_22 = arith.constant 0.000000e+00 : f32
    %26 = vector.broadcast %cst_22 : f32 to vector<128x128xf32>
    %27 = arith.cmpf ogt, %25, %26 : vector<128x128xf32>
    %cst_23 = arith.constant 0.00999999977 : f32
    %28 = vector.broadcast %cst_23 : f32 to vector<128x128xf32>
    %29 = arith.mulf %28, %25 : vector<128x128xf32>
    %30 = arith.select %27, %25, %29 : vector<128x128xi1>, vector<128x128xf32>
    %31 = arith.truncf %30 : vector<128x128xf32> to vector<128x128xbf16>
    %c0_24 = arith.constant 0 : index
    %c0_25 = arith.constant 0 : index
    %c0_26 = arith.constant 0 : index
    %32 = vector.load %arg4[%c0_24, %c0_25, %c0_26] : memref<1x232x128xbf16, #tpu.memory_space<vmem>>, vector<1x128x128xbf16>
    %33 = vector.shape_cast %32 : vector<1x128x128xbf16> to vector<128x128xbf16>
    %34 = vector.shape_cast %31 : vector<128x128xbf16> to vector<1x128x128xbf16>
    tpu.vector_store %arg4[%c0_24, %c0_25, %c0_26], %34 {strides = array<i32>} : memref<1x232x128xbf16, #tpu.memory_space<vmem>>, vector<1x128x128xbf16>,
    %c0_27 = arith.constant 0 : index
    %c128 = arith.constant 128 : index
    %c0_28 = arith.constant 0 : index
    %35 = vector.load %arg1[%c0_27, %c128, %c0_28] : memref<1x256x256xbf16, #tpu.memory_space<vmem>>, vector<1x104x256xbf16>
    %36 = vector.shape_cast %35 : vector<1x104x256xbf16> to vector<104x256xbf16>
    %c0_29 = arith.constant 0 : index
    %c0_30 = arith.constant 0 : index
    %c0_31 = arith.constant 0 : index
    %37 = vector.load %arg2[%c0_29, %c0_30, %c0_31] : memref<4x256x128xbf16, #tpu.memory_space<vmem>>, vector<1x256x128xbf16>
    %38 = vector.shape_cast %37 : vector<1x256x128xbf16> to vector<256x128xbf16>
    %cst_32 = arith.constant dense<0.000000e+00> : vector<104x128xf32>
    %39 = tpu.matmul %36, %38, %cst_32 {dimension_numbers = #tpu.dot_dimension_numbers<[1], [0], [0], [1], [0, 0, 1, 1], [], []>} : vector<104x256xbf16>, vector<256x128xbf16>, vector<104x128xf32> -> vector<104x128xf32>
    %c0_33 = arith.constant 0 : index
    %c136 = arith.constant 136 : index
    %c0_34 = arith.constant 0 : index
    %40 = vector.load %arg1[%c0_33, %c136, %c0_34] : memref<1x256x256xbf16, #tpu.memory_space<vmem>>, vector<1x104x256xbf16>
    %41 = vector.shape_cast %40 : vector<1x104x256xbf16> to vector<104x256xbf16>
    %c1_35 = arith.constant 1 : index
    %c0_36 = arith.constant 0 : index
    %c0_37 = arith.constant 0 : index
    %42 = vector.load %arg2[%c1_35, %c0_36, %c0_37] : memref<4x256x128xbf16, #tpu.memory_space<vmem>>, vector<1x256x128xbf16>
    %43 = vector.shape_cast %42 : vector<1x256x128xbf16> to vector<256x128xbf16>
    %cst_38 = arith.constant dense<0.000000e+00> : vector<104x128xf32>
    %44 = tpu.matmul %41, %43, %cst_38 {dimension_numbers = #tpu.dot_dimension_numbers<[1], [0], [0], [1], [0, 0, 1, 1], [], []>} : vector<104x256xbf16>, vector<256x128xbf16>, vector<104x128xf32> -> vector<104x128xf32>
    %45 = arith.addf %39, %44 : vector<104x128xf32>
    %c0_39 = arith.constant 0 : index
    %c144 = arith.constant 144 : index
    %c0_40 = arith.constant 0 : index
    %46 = vector.load %arg1[%c0_39, %c144, %c0_40] : memref<1x256x256xbf16, #tpu.memory_space<vmem>>, vector<1x104x256xbf16>
    %47 = vector.shape_cast %46 : vector<1x104x256xbf16> to vector<104x256xbf16>
    %c2_41 = arith.constant 2 : index
    %c0_42 = arith.constant 0 : index
    %c0_43 = arith.constant 0 : index
    %48 = vector.load %arg2[%c2_41, %c0_42, %c0_43] : memref<4x256x128xbf16, #tpu.memory_space<vmem>>, vector<1x256x128xbf16>
    %49 = vector.shape_cast %48 : vector<1x256x128xbf16> to vector<256x128xbf16>
    %cst_44 = arith.constant dense<0.000000e+00> : vector<104x128xf32>
    %50 = tpu.matmul %47, %49, %cst_44 {dimension_numbers = #tpu.dot_dimension_numbers<[1], [0], [0], [1], [0, 0, 1, 1], [], []>} : vector<104x256xbf16>, vector<256x128xbf16>, vector<104x128xf32> -> vector<104x128xf32>
    %51 = arith.addf %45, %50 : vector<104x128xf32>
    %c0_45 = arith.constant 0 : index
    %c152 = arith.constant 152 : index
    %c0_46 = arith.constant 0 : index
    %52 = vector.load %arg1[%c0_45, %c152, %c0_46] : memref<1x256x256xbf16, #tpu.memory_space<vmem>>, vector<1x104x256xbf16>
    %53 = vector.shape_cast %52 : vector<1x104x256xbf16> to vector<104x256xbf16>
    %c3_47 = arith.constant 3 : index
    %c0_48 = arith.constant 0 : index
    %c0_49 = arith.constant 0 : index
    %54 = vector.load %arg2[%c3_47, %c0_48, %c0_49] : memref<4x256x128xbf16, #tpu.memory_space<vmem>>, vector<1x256x128xbf16>
    %55 = vector.shape_cast %54 : vector<1x256x128xbf16> to vector<256x128xbf16>
    %cst_50 = arith.constant dense<0.000000e+00> : vector<104x128xf32>
    %56 = tpu.matmul %53, %55, %cst_50 {dimension_numbers = #tpu.dot_dimension_numbers<[1], [0], [0], [1], [0, 0, 1, 1], [], []>} : vector<104x256xbf16>, vector<256x128xbf16>, vector<104x128xf32> -> vector<104x128xf32>
    %57 = arith.addf %51, %56 : vector<104x128xf32>
    %58 = vector.broadcast %0 : vector<1x128xf32> to vector<104x128xf32>
    %59 = arith.addf %57, %58 : vector<104x128xf32>
    %cst_51 = arith.constant 0.000000e+00 : f32
    %60 = vector.broadcast %cst_51 : f32 to vector<104x128xf32>
    %61 = arith.cmpf ogt, %59, %60 : vector<104x128xf32>
    %cst_52 = arith.constant 0.00999999977 : f32
    %62 = vector.broadcast %cst_52 : f32 to vector<104x128xf32>
    %63 = arith.mulf %62, %59 : vector<104x128xf32>
    %64 = arith.select %61, %59, %63 : vector<104x128xi1>, vector<104x128xf32>
    %65 = arith.truncf %64 : vector<104x128xf32> to vector<104x128xbf16>
    %c0_53 = arith.constant 0 : index
    %c128_54 = arith.constant 128 : index
    %c0_55 = arith.constant 0 : index
    %66 = vector.load %arg4[%c0_53, %c128_54, %c0_55] : memref<1x232x128xbf16, #tpu.memory_space<vmem>>, vector<1x104x128xbf16>
    %67 = vector.shape_cast %66 : vector<1x104x128xbf16> to vector<104x128xbf16>
    %68 = vector.shape_cast %65 : vector<104x128xbf16> to vector<1x104x128xbf16>
    tpu.vector_store %arg4[%c0_53, %c128_54, %c0_55], %68 {strides = array<i32>} : memref<1x232x128xbf16, #tpu.memory_space<vmem>>, vector<1x104x128xbf16>,
    return
  }
  func.func @transform_0(%arg0: i32) -> (i32, i32, i32) {
    %c0_i32 = arith.constant 0 : i32
    %c0_i32_0 = arith.constant 0 : i32
    %c0_i32_1 = arith.constant 0 : i32
    return %arg0, %c0_i32, %c0_i32_0 : i32, i32, i32
  }
  func.func @transform_1(%arg0: i32) -> (i32, i32, i32) {
    %c0_i32 = arith.constant 0 : i32
    %c0_i32_0 = arith.constant 0 : i32
    %c0_i32_1 = arith.constant 0 : i32
    %c0_i32_2 = arith.constant 0 : i32
    return %c0_i32, %c0_i32_0, %c0_i32_1 : i32, i32, i32
  }
  func.func @transform_2(%arg0: i32) -> (i32, i32) {
    %c0_i32 = arith.constant 0 : i32
    %c0_i32_0 = arith.constant 0 : i32
    %c0_i32_1 = arith.constant 0 : i32
    return %c0_i32, %c0_i32_0 : i32, i32
  }
  func.func @transform_3(%arg0: i32) -> (i32, i32, i32) {
    %c0_i32 = arith.constant 0 : i32
    %c0_i32_0 = arith.constant 0 : i32
    %c0_i32_1 = arith.constant 0 : i32
    return %arg0, %c0_i32, %c0_i32_0 : i32, i32, i32
  }
}

module attributes {stable_mosaic.version = 11 : i64} {
  func.func @_conv_tap_kernel(%arg0: i32, %arg1: memref<1x56x1024xbf16, #tpu.memory_space<vmem>>, %arg2: memref<2x1024x128xbf16, #tpu.memory_space<vmem>>, %arg3: memref<1x128xf32, #tpu.memory_space<vmem>>, %arg4: memref<1x52x128xbf16, #tpu.memory_space<vmem>>) attributes {dimension_semantics = [#tpu.dimension_semantics<parallel>], iteration_bounds = array<i64: 2>, scalar_prefetch = 0 : i64, scratch_operands = 0 : i64, tpu.core_type = #tpu.core_type<tc>, window_params = [{transform_indices = @transform_0, window_bounds = array<i64: 1, 56, 1024>}, {pipeline_mode = #tpu.pipeline_mode<synchronous>, transform_indices = @transform_1, window_bounds = array<i64: 2, 1024, 128>}, {pipeline_mode = #tpu.pipeline_mode<synchronous>, transform_indices = @transform_2, window_bounds = array<i64: 1, 128>}, {transform_indices = @transform_3, window_bounds = array<i64: 1, 52, 128>}]} {
    %c0 = arith.constant 0 : index
    %c0_0 = arith.constant 0 : index
    %0 = vector.load %arg3[%c0, %c0_0] : memref<1x128xf32, #tpu.memory_space<vmem>>, vector<1x128xf32>
    %c0_1 = arith.constant 0 : index
    %c0_2 = arith.constant 0 : index
    %c0_3 = arith.constant 0 : index
    %1 = vector.load %arg1[%c0_1, %c0_2, %c0_3] : memref<1x56x1024xbf16, #tpu.memory_space<vmem>>, vector<1x52x1024xbf16>
    %2 = vector.shape_cast %1 : vector<1x52x1024xbf16> to vector<52x1024xbf16>
    %c0_4 = arith.constant 0 : index
    %c0_5 = arith.constant 0 : index
    %c0_6 = arith.constant 0 : index
    %3 = vector.load %arg2[%c0_4, %c0_5, %c0_6] : memref<2x1024x128xbf16, #tpu.memory_space<vmem>>, vector<1x1024x128xbf16>
    %4 = vector.shape_cast %3 : vector<1x1024x128xbf16> to vector<1024x128xbf16>
    %cst = arith.constant dense<0.000000e+00> : vector<52x128xf32>
    %5 = tpu.matmul %2, %4, %cst {dimension_numbers = #tpu.dot_dimension_numbers<[1], [0], [0], [1], [0, 0, 1, 1], [], []>} : vector<52x1024xbf16>, vector<1024x128xbf16>, vector<52x128xf32> -> vector<52x128xf32>
    %c0_7 = arith.constant 0 : index
    %c4 = arith.constant 4 : index
    %c0_8 = arith.constant 0 : index
    %6 = vector.load %arg1[%c0_7, %c4, %c0_8] : memref<1x56x1024xbf16, #tpu.memory_space<vmem>>, vector<1x52x1024xbf16>
    %7 = vector.shape_cast %6 : vector<1x52x1024xbf16> to vector<52x1024xbf16>
    %c1 = arith.constant 1 : index
    %c0_9 = arith.constant 0 : index
    %c0_10 = arith.constant 0 : index
    %8 = vector.load %arg2[%c1, %c0_9, %c0_10] : memref<2x1024x128xbf16, #tpu.memory_space<vmem>>, vector<1x1024x128xbf16>
    %9 = vector.shape_cast %8 : vector<1x1024x128xbf16> to vector<1024x128xbf16>
    %cst_11 = arith.constant dense<0.000000e+00> : vector<52x128xf32>
    %10 = tpu.matmul %7, %9, %cst_11 {dimension_numbers = #tpu.dot_dimension_numbers<[1], [0], [0], [1], [0, 0, 1, 1], [], []>} : vector<52x1024xbf16>, vector<1024x128xbf16>, vector<52x128xf32> -> vector<52x128xf32>
    %11 = arith.addf %5, %10 : vector<52x128xf32>
    %12 = vector.broadcast %0 : vector<1x128xf32> to vector<52x128xf32>
    %13 = arith.addf %11, %12 : vector<52x128xf32>
    %cst_12 = arith.constant 0.000000e+00 : f32
    %14 = vector.broadcast %cst_12 : f32 to vector<52x128xf32>
    %15 = arith.cmpf ogt, %13, %14 : vector<52x128xf32>
    %cst_13 = arith.constant 0.00999999977 : f32
    %16 = vector.broadcast %cst_13 : f32 to vector<52x128xf32>
    %17 = arith.mulf %16, %13 : vector<52x128xf32>
    %18 = arith.select %15, %13, %17 : vector<52x128xi1>, vector<52x128xf32>
    %19 = arith.truncf %18 : vector<52x128xf32> to vector<52x128xbf16>
    %c0_14 = arith.constant 0 : index
    %c0_15 = arith.constant 0 : index
    %c0_16 = arith.constant 0 : index
    %20 = vector.load %arg4[%c0_14, %c0_15, %c0_16] : memref<1x52x128xbf16, #tpu.memory_space<vmem>>, vector<1x52x128xbf16>
    %21 = vector.shape_cast %20 : vector<1x52x128xbf16> to vector<52x128xbf16>
    %22 = vector.shape_cast %19 : vector<52x128xbf16> to vector<1x52x128xbf16>
    tpu.vector_store %arg4[%c0_14, %c0_15, %c0_16], %22 {strides = array<i32>} : memref<1x52x128xbf16, #tpu.memory_space<vmem>>, vector<1x52x128xbf16>,
    return
  }
  func.func @transform_0(%arg0: i32) -> (i32, i32, i32) {
    %c0_i32 = arith.constant 0 : i32
    %c0_i32_0 = arith.constant 0 : i32
    %c0_i32_1 = arith.constant 0 : i32
    return %arg0, %c0_i32, %c0_i32_0 : i32, i32, i32
  }
  func.func @transform_1(%arg0: i32) -> (i32, i32, i32) {
    %c0_i32 = arith.constant 0 : i32
    %c0_i32_0 = arith.constant 0 : i32
    %c0_i32_1 = arith.constant 0 : i32
    %c0_i32_2 = arith.constant 0 : i32
    return %c0_i32, %c0_i32_0, %c0_i32_1 : i32, i32, i32
  }
  func.func @transform_2(%arg0: i32) -> (i32, i32) {
    %c0_i32 = arith.constant 0 : i32
    %c0_i32_0 = arith.constant 0 : i32
    %c0_i32_1 = arith.constant 0 : i32
    return %c0_i32, %c0_i32_0 : i32, i32
  }
  func.func @transform_3(%arg0: i32) -> (i32, i32, i32) {
    %c0_i32 = arith.constant 0 : i32
    %c0_i32_0 = arith.constant 0 : i32
    %c0_i32_1 = arith.constant 0 : i32
    return %arg0, %c0_i32, %c0_i32_0 : i32, i32, i32
  }
}

module attributes {stable_mosaic.version = 11 : i64} {
  func.func @_conv_tap_kernel(%arg0: i32, %arg1: memref<1x12x1024xbf16, #tpu.memory_space<vmem>>, %arg2: memref<2x1024x128xbf16, #tpu.memory_space<vmem>>, %arg3: memref<1x128xf32, #tpu.memory_space<vmem>>, %arg4: memref<1x10x128xbf16, #tpu.memory_space<vmem>>) attributes {dimension_semantics = [#tpu.dimension_semantics<parallel>], iteration_bounds = array<i64: 2>, scalar_prefetch = 0 : i64, scratch_operands = 0 : i64, tpu.core_type = #tpu.core_type<tc>, window_params = [{transform_indices = @transform_0, window_bounds = array<i64: 1, 12, 1024>}, {pipeline_mode = #tpu.pipeline_mode<synchronous>, transform_indices = @transform_1, window_bounds = array<i64: 2, 1024, 128>}, {pipeline_mode = #tpu.pipeline_mode<synchronous>, transform_indices = @transform_2, window_bounds = array<i64: 1, 128>}, {transform_indices = @transform_3, window_bounds = array<i64: 1, 10, 128>}]} {
    %c0 = arith.constant 0 : index
    %c0_0 = arith.constant 0 : index
    %0 = vector.load %arg3[%c0, %c0_0] : memref<1x128xf32, #tpu.memory_space<vmem>>, vector<1x128xf32>
    %c0_1 = arith.constant 0 : index
    %c0_2 = arith.constant 0 : index
    %c0_3 = arith.constant 0 : index
    %1 = vector.load %arg1[%c0_1, %c0_2, %c0_3] : memref<1x12x1024xbf16, #tpu.memory_space<vmem>>, vector<1x10x1024xbf16>
    %2 = vector.shape_cast %1 : vector<1x10x1024xbf16> to vector<10x1024xbf16>
    %c0_4 = arith.constant 0 : index
    %c0_5 = arith.constant 0 : index
    %c0_6 = arith.constant 0 : index
    %3 = vector.load %arg2[%c0_4, %c0_5, %c0_6] : memref<2x1024x128xbf16, #tpu.memory_space<vmem>>, vector<1x1024x128xbf16>
    %4 = vector.shape_cast %3 : vector<1x1024x128xbf16> to vector<1024x128xbf16>
    %cst = arith.constant dense<0.000000e+00> : vector<10x128xf32>
    %5 = tpu.matmul %2, %4, %cst {dimension_numbers = #tpu.dot_dimension_numbers<[1], [0], [0], [1], [0, 0, 1, 1], [], []>} : vector<10x1024xbf16>, vector<1024x128xbf16>, vector<10x128xf32> -> vector<10x128xf32>
    %c0_7 = arith.constant 0 : index
    %c2 = arith.constant 2 : index
    %c0_8 = arith.constant 0 : index
    %6 = vector.load %arg1[%c0_7, %c2, %c0_8] : memref<1x12x1024xbf16, #tpu.memory_space<vmem>>, vector<1x10x1024xbf16>
    %7 = vector.shape_cast %6 : vector<1x10x1024xbf16> to vector<10x1024xbf16>
    %c1 = arith.constant 1 : index
    %c0_9 = arith.constant 0 : index
    %c0_10 = arith.constant 0 : index
    %8 = vector.load %arg2[%c1, %c0_9, %c0_10] : memref<2x1024x128xbf16, #tpu.memory_space<vmem>>, vector<1x1024x128xbf16>
    %9 = vector.shape_cast %8 : vector<1x1024x128xbf16> to vector<1024x128xbf16>
    %cst_11 = arith.constant dense<0.000000e+00> : vector<10x128xf32>
    %10 = tpu.matmul %7, %9, %cst_11 {dimension_numbers = #tpu.dot_dimension_numbers<[1], [0], [0], [1], [0, 0, 1, 1], [], []>} : vector<10x1024xbf16>, vector<1024x128xbf16>, vector<10x128xf32> -> vector<10x128xf32>
    %11 = arith.addf %5, %10 : vector<10x128xf32>
    %12 = vector.broadcast %0 : vector<1x128xf32> to vector<10x128xf32>
    %13 = arith.addf %11, %12 : vector<10x128xf32>
    %cst_12 = arith.constant 0.000000e+00 : f32
    %14 = vector.broadcast %cst_12 : f32 to vector<10x128xf32>
    %15 = arith.cmpf ogt, %13, %14 : vector<10x128xf32>
    %cst_13 = arith.constant 0.00999999977 : f32
    %16 = vector.broadcast %cst_13 : f32 to vector<10x128xf32>
    %17 = arith.mulf %16, %13 : vector<10x128xf32>
    %18 = arith.select %15, %13, %17 : vector<10x128xi1>, vector<10x128xf32>
    %19 = arith.truncf %18 : vector<10x128xf32> to vector<10x128xbf16>
    %c0_14 = arith.constant 0 : index
    %c0_15 = arith.constant 0 : index
    %c0_16 = arith.constant 0 : index
    %20 = vector.load %arg4[%c0_14, %c0_15, %c0_16] : memref<1x10x128xbf16, #tpu.memory_space<vmem>>, vector<1x10x128xbf16>
    %21 = vector.shape_cast %20 : vector<1x10x128xbf16> to vector<10x128xbf16>
    %22 = vector.shape_cast %19 : vector<10x128xbf16> to vector<1x10x128xbf16>
    tpu.vector_store %arg4[%c0_14, %c0_15, %c0_16], %22 {strides = array<i32>} : memref<1x10x128xbf16, #tpu.memory_space<vmem>>, vector<1x10x128xbf16>,
    return
  }
  func.func @transform_0(%arg0: i32) -> (i32, i32, i32) {
    %c0_i32 = arith.constant 0 : i32
    %c0_i32_0 = arith.constant 0 : i32
    %c0_i32_1 = arith.constant 0 : i32
    return %arg0, %c0_i32, %c0_i32_0 : i32, i32, i32
  }
  func.func @transform_1(%arg0: i32) -> (i32, i32, i32) {
    %c0_i32 = arith.constant 0 : i32
    %c0_i32_0 = arith.constant 0 : i32
    %c0_i32_1 = arith.constant 0 : i32
    %c0_i32_2 = arith.constant 0 : i32
    return %c0_i32, %c0_i32_0, %c0_i32_1 : i32, i32, i32
  }
  func.func @transform_2(%arg0: i32) -> (i32, i32) {
    %c0_i32 = arith.constant 0 : i32
    %c0_i32_0 = arith.constant 0 : i32
    %c0_i32_1 = arith.constant 0 : i32
    return %c0_i32, %c0_i32_0 : i32, i32
  }
  func.func @transform_3(%arg0: i32) -> (i32, i32, i32) {
    %c0_i32 = arith.constant 0 : i32
    %c0_i32_0 = arith.constant 0 : i32
    %c0_i32_1 = arith.constant 0 : i32
    return %arg0, %c0_i32, %c0_i32_0 : i32, i32, i32
  }
}

module attributes {stable_mosaic.version = 11 : i64} {
  func.func @_conv_tap_kernel(%arg0: i32, %arg1: memref<1x10x512xbf16, #tpu.memory_space<vmem>>, %arg2: memref<4x512x128xbf16, #tpu.memory_space<vmem>>, %arg3: memref<1x128xf32, #tpu.memory_space<vmem>>, %arg4: memref<1x4x128xbf16, #tpu.memory_space<vmem>>) attributes {dimension_semantics = [#tpu.dimension_semantics<parallel>], iteration_bounds = array<i64: 2>, scalar_prefetch = 0 : i64, scratch_operands = 0 : i64, tpu.core_type = #tpu.core_type<tc>, window_params = [{transform_indices = @transform_0, window_bounds = array<i64: 1, 10, 512>}, {pipeline_mode = #tpu.pipeline_mode<synchronous>, transform_indices = @transform_1, window_bounds = array<i64: 4, 512, 128>}, {pipeline_mode = #tpu.pipeline_mode<synchronous>, transform_indices = @transform_2, window_bounds = array<i64: 1, 128>}, {transform_indices = @transform_3, window_bounds = array<i64: 1, 4, 128>}]} {
    %c0 = arith.constant 0 : index
    %c0_0 = arith.constant 0 : index
    %0 = vector.load %arg3[%c0, %c0_0] : memref<1x128xf32, #tpu.memory_space<vmem>>, vector<1x128xf32>
    %c0_1 = arith.constant 0 : index
    %c0_2 = arith.constant 0 : index
    %c0_3 = arith.constant 0 : index
    %1 = vector.load %arg1[%c0_1, %c0_2, %c0_3] : memref<1x10x512xbf16, #tpu.memory_space<vmem>>, vector<1x4x512xbf16>
    %2 = vector.shape_cast %1 : vector<1x4x512xbf16> to vector<4x512xbf16>
    %c0_4 = arith.constant 0 : index
    %c0_5 = arith.constant 0 : index
    %c0_6 = arith.constant 0 : index
    %3 = vector.load %arg2[%c0_4, %c0_5, %c0_6] : memref<4x512x128xbf16, #tpu.memory_space<vmem>>, vector<1x512x128xbf16>
    %4 = vector.shape_cast %3 : vector<1x512x128xbf16> to vector<512x128xbf16>
    %cst = arith.constant dense<0.000000e+00> : vector<4x128xf32>
    %5 = tpu.matmul %2, %4, %cst {dimension_numbers = #tpu.dot_dimension_numbers<[1], [0], [0], [1], [0, 0, 1, 1], [], []>} : vector<4x512xbf16>, vector<512x128xbf16>, vector<4x128xf32> -> vector<4x128xf32>
    %c0_7 = arith.constant 0 : index
    %c2 = arith.constant 2 : index
    %c0_8 = arith.constant 0 : index
    %6 = vector.load %arg1[%c0_7, %c2, %c0_8] : memref<1x10x512xbf16, #tpu.memory_space<vmem>>, vector<1x4x512xbf16>
    %7 = vector.shape_cast %6 : vector<1x4x512xbf16> to vector<4x512xbf16>
    %c1 = arith.constant 1 : index
    %c0_9 = arith.constant 0 : index
    %c0_10 = arith.constant 0 : index
    %8 = vector.load %arg2[%c1, %c0_9, %c0_10] : memref<4x512x128xbf16, #tpu.memory_space<vmem>>, vector<1x512x128xbf16>
    %9 = vector.shape_cast %8 : vector<1x512x128xbf16> to vector<512x128xbf16>
    %cst_11 = arith.constant dense<0.000000e+00> : vector<4x128xf32>
    %10 = tpu.matmul %7, %9, %cst_11 {dimension_numbers = #tpu.dot_dimension_numbers<[1], [0], [0], [1], [0, 0, 1, 1], [], []>} : vector<4x512xbf16>, vector<512x128xbf16>, vector<4x128xf32> -> vector<4x128xf32>
    %11 = arith.addf %5, %10 : vector<4x128xf32>
    %c0_12 = arith.constant 0 : index
    %c4 = arith.constant 4 : index
    %c0_13 = arith.constant 0 : index
    %12 = vector.load %arg1[%c0_12, %c4, %c0_13] : memref<1x10x512xbf16, #tpu.memory_space<vmem>>, vector<1x4x512xbf16>
    %13 = vector.shape_cast %12 : vector<1x4x512xbf16> to vector<4x512xbf16>
    %c2_14 = arith.constant 2 : index
    %c0_15 = arith.constant 0 : index
    %c0_16 = arith.constant 0 : index
    %14 = vector.load %arg2[%c2_14, %c0_15, %c0_16] : memref<4x512x128xbf16, #tpu.memory_space<vmem>>, vector<1x512x128xbf16>
    %15 = vector.shape_cast %14 : vector<1x512x128xbf16> to vector<512x128xbf16>
    %cst_17 = arith.constant dense<0.000000e+00> : vector<4x128xf32>
    %16 = tpu.matmul %13, %15, %cst_17 {dimension_numbers = #tpu.dot_dimension_numbers<[1], [0], [0], [1], [0, 0, 1, 1], [], []>} : vector<4x512xbf16>, vector<512x128xbf16>, vector<4x128xf32> -> vector<4x128xf32>
    %17 = arith.addf %11, %16 : vector<4x128xf32>
    %c0_18 = arith.constant 0 : index
    %c6 = arith.constant 6 : index
    %c0_19 = arith.constant 0 : index
    %18 = vector.load %arg1[%c0_18, %c6, %c0_19] : memref<1x10x512xbf16, #tpu.memory_space<vmem>>, vector<1x4x512xbf16>
    %19 = vector.shape_cast %18 : vector<1x4x512xbf16> to vector<4x512xbf16>
    %c3 = arith.constant 3 : index
    %c0_20 = arith.constant 0 : index
    %c0_21 = arith.constant 0 : index
    %20 = vector.load %arg2[%c3, %c0_20, %c0_21] : memref<4x512x128xbf16, #tpu.memory_space<vmem>>, vector<1x512x128xbf16>
    %21 = vector.shape_cast %20 : vector<1x512x128xbf16> to vector<512x128xbf16>
    %cst_22 = arith.constant dense<0.000000e+00> : vector<4x128xf32>
    %22 = tpu.matmul %19, %21, %cst_22 {dimension_numbers = #tpu.dot_dimension_numbers<[1], [0], [0], [1], [0, 0, 1, 1], [], []>} : vector<4x512xbf16>, vector<512x128xbf16>, vector<4x128xf32> -> vector<4x128xf32>
    %23 = arith.addf %17, %22 : vector<4x128xf32>
    %24 = vector.broadcast %0 : vector<1x128xf32> to vector<4x128xf32>
    %25 = arith.addf %23, %24 : vector<4x128xf32>
    %cst_23 = arith.constant 0.000000e+00 : f32
    %26 = vector.broadcast %cst_23 : f32 to vector<4x128xf32>
    %27 = arith.cmpf ogt, %25, %26 : vector<4x128xf32>
    %cst_24 = arith.constant 0.00999999977 : f32
    %28 = vector.broadcast %cst_24 : f32 to vector<4x128xf32>
    %29 = arith.mulf %28, %25 : vector<4x128xf32>
    %30 = arith.select %27, %25, %29 : vector<4x128xi1>, vector<4x128xf32>
    %31 = arith.truncf %30 : vector<4x128xf32> to vector<4x128xbf16>
    %c0_25 = arith.constant 0 : index
    %c0_26 = arith.constant 0 : index
    %c0_27 = arith.constant 0 : index
    %32 = vector.load %arg4[%c0_25, %c0_26, %c0_27] : memref<1x4x128xbf16, #tpu.memory_space<vmem>>, vector<1x4x128xbf16>
    %33 = vector.shape_cast %32 : vector<1x4x128xbf16> to vector<4x128xbf16>
    %34 = vector.shape_cast %31 : vector<4x128xbf16> to vector<1x4x128xbf16>
    tpu.vector_store %arg4[%c0_25, %c0_26, %c0_27], %34 {strides = array<i32>} : memref<1x4x128xbf16, #tpu.memory_space<vmem>>, vector<1x4x128xbf16>,
    return
  }
  func.func @transform_0(%arg0: i32) -> (i32, i32, i32) {
    %c0_i32 = arith.constant 0 : i32
    %c0_i32_0 = arith.constant 0 : i32
    %c0_i32_1 = arith.constant 0 : i32
    return %arg0, %c0_i32, %c0_i32_0 : i32, i32, i32
  }
  func.func @transform_1(%arg0: i32) -> (i32, i32, i32) {
    %c0_i32 = arith.constant 0 : i32
    %c0_i32_0 = arith.constant 0 : i32
    %c0_i32_1 = arith.constant 0 : i32
    %c0_i32_2 = arith.constant 0 : i32
    return %c0_i32, %c0_i32_0, %c0_i32_1 : i32, i32, i32
  }
  func.func @transform_2(%arg0: i32) -> (i32, i32) {
    %c0_i32 = arith.constant 0 : i32
    %c0_i32_0 = arith.constant 0 : i32
    %c0_i32_1 = arith.constant 0 : i32
    return %c0_i32, %c0_i32_0 : i32, i32
  }
  func.func @transform_3(%arg0: i32) -> (i32, i32, i32) {
    %c0_i32 = arith.constant 0 : i32
    %c0_i32_0 = arith.constant 0 : i32
    %c0_i32_1 = arith.constant 0 : i32
    return %arg0, %c0_i32, %c0_i32_0 : i32, i32, i32
  }
}

module attributes {stable_mosaic.version = 11 : i64} {
  func.func @_head_kernel(%arg0: i32, %arg1: memref<2x128xbf16, #tpu.memory_space<vmem>>, %arg2: memref<2x13xbf16, #tpu.memory_space<vmem>>, %arg3: memref<128x32xbf16, #tpu.memory_space<vmem>>, %arg4: memref<13x32xbf16, #tpu.memory_space<vmem>>, %arg5: memref<1x32xf32, #tpu.memory_space<vmem>>, %arg6: memref<32x32xbf16, #tpu.memory_space<vmem>>, %arg7: memref<13x32xbf16, #tpu.memory_space<vmem>>, %arg8: memref<1x32xf32, #tpu.memory_space<vmem>>, %arg9: memref<1x32xf32, #tpu.memory_space<vmem>>, %arg10: memref<1x1xf32, #tpu.memory_space<vmem>>, %arg11: memref<2x1xf32, #tpu.memory_space<vmem>>) attributes {dimension_semantics = [#tpu.dimension_semantics<parallel>], iteration_bounds = array<i64: 1>, scalar_prefetch = 0 : i64, scratch_operands = 0 : i64, tpu.core_type = #tpu.core_type<tc>, window_params = [{transform_indices = @transform_0, window_bounds = array<i64: 2, 128>}, {transform_indices = @transform_1, window_bounds = array<i64: 2, 13>}, {pipeline_mode = #tpu.pipeline_mode<synchronous>, transform_indices = @transform_2, window_bounds = array<i64: 128, 32>}, {pipeline_mode = #tpu.pipeline_mode<synchronous>, transform_indices = @transform_3, window_bounds = array<i64: 13, 32>}, {pipeline_mode = #tpu.pipeline_mode<synchronous>, transform_indices = @transform_4, window_bounds = array<i64: 1, 32>}, {pipeline_mode = #tpu.pipeline_mode<synchronous>, transform_indices = @transform_5, window_bounds = array<i64: 32, 32>}, {pipeline_mode = #tpu.pipeline_mode<synchronous>, transform_indices = @transform_6, window_bounds = array<i64: 13, 32>}, {pipeline_mode = #tpu.pipeline_mode<synchronous>, transform_indices = @transform_7, window_bounds = array<i64: 1, 32>}, {pipeline_mode = #tpu.pipeline_mode<synchronous>, transform_indices = @transform_8, window_bounds = array<i64: 1, 32>}, {pipeline_mode = #tpu.pipeline_mode<synchronous>, transform_indices = @transform_9, window_bounds = array<i64: 1, 1>}, {transform_indices = @transform_10, window_bounds = array<i64: 2, 1>}]} {
    %c0 = arith.constant 0 : index
    %c0_0 = arith.constant 0 : index
    %0 = vector.load %arg2[%c0, %c0_0] : memref<2x13xbf16, #tpu.memory_space<vmem>>, vector<2x13xbf16>
    %c0_1 = arith.constant 0 : index
    %c0_2 = arith.constant 0 : index
    %1 = vector.load %arg1[%c0_1, %c0_2] : memref<2x128xbf16, #tpu.memory_space<vmem>>, vector<2x128xbf16>
    %c0_3 = arith.constant 0 : index
    %c0_4 = arith.constant 0 : index
    %2 = vector.load %arg3[%c0_3, %c0_4] : memref<128x32xbf16, #tpu.memory_space<vmem>>, vector<128x32xbf16>
    %cst = arith.constant dense<0.000000e+00> : vector<2x32xf32>
    %3 = tpu.matmul %1, %2, %cst {dimension_numbers = #tpu.dot_dimension_numbers<[1], [0], [0], [1], [0, 0, 1, 1], [], []>} : vector<2x128xbf16>, vector<128x32xbf16>, vector<2x32xf32> -> vector<2x32xf32>
    %c0_5 = arith.constant 0 : index
    %c0_6 = arith.constant 0 : index
    %4 = vector.load %arg4[%c0_5, %c0_6] : memref<13x32xbf16, #tpu.memory_space<vmem>>, vector<13x32xbf16>
    %cst_7 = arith.constant dense<0.000000e+00> : vector<2x32xf32>
    %5 = tpu.matmul %0, %4, %cst_7 {dimension_numbers = #tpu.dot_dimension_numbers<[1], [0], [0], [1], [0, 0, 1, 1], [], []>} : vector<2x13xbf16>, vector<13x32xbf16>, vector<2x32xf32> -> vector<2x32xf32>
    %6 = arith.addf %3, %5 : vector<2x32xf32>
    %c0_8 = arith.constant 0 : index
    %c0_9 = arith.constant 0 : index
    %7 = vector.load %arg5[%c0_8, %c0_9] : memref<1x32xf32, #tpu.memory_space<vmem>>, vector<1x32xf32>
    %8 = vector.broadcast %7 : vector<1x32xf32> to vector<2x32xf32>
    %9 = arith.addf %6, %8 : vector<2x32xf32>
    %cst_10 = arith.constant 0.000000e+00 : f32
    %10 = vector.broadcast %cst_10 : f32 to vector<2x32xf32>
    %11 = arith.cmpf ogt, %9, %10 : vector<2x32xf32>
    %cst_11 = arith.constant 0.00999999977 : f32
    %12 = vector.broadcast %cst_11 : f32 to vector<2x32xf32>
    %13 = arith.mulf %12, %9 : vector<2x32xf32>
    %14 = arith.select %11, %9, %13 : vector<2x32xi1>, vector<2x32xf32>
    %15 = arith.truncf %14 : vector<2x32xf32> to vector<2x32xbf16>
    %c0_12 = arith.constant 0 : index
    %c0_13 = arith.constant 0 : index
    %16 = vector.load %arg6[%c0_12, %c0_13] : memref<32x32xbf16, #tpu.memory_space<vmem>>, vector<32x32xbf16>
    %cst_14 = arith.constant dense<0.000000e+00> : vector<2x32xf32>
    %17 = tpu.matmul %15, %16, %cst_14 {dimension_numbers = #tpu.dot_dimension_numbers<[1], [0], [0], [1], [0, 0, 1, 1], [], []>} : vector<2x32xbf16>, vector<32x32xbf16>, vector<2x32xf32> -> vector<2x32xf32>
    %c0_15 = arith.constant 0 : index
    %c0_16 = arith.constant 0 : index
    %18 = vector.load %arg7[%c0_15, %c0_16] : memref<13x32xbf16, #tpu.memory_space<vmem>>, vector<13x32xbf16>
    %cst_17 = arith.constant dense<0.000000e+00> : vector<2x32xf32>
    %19 = tpu.matmul %0, %18, %cst_17 {dimension_numbers = #tpu.dot_dimension_numbers<[1], [0], [0], [1], [0, 0, 1, 1], [], []>} : vector<2x13xbf16>, vector<13x32xbf16>, vector<2x32xf32> -> vector<2x32xf32>
    %20 = arith.addf %17, %19 : vector<2x32xf32>
    %c0_18 = arith.constant 0 : index
    %c0_19 = arith.constant 0 : index
    %21 = vector.load %arg8[%c0_18, %c0_19] : memref<1x32xf32, #tpu.memory_space<vmem>>, vector<1x32xf32>
    %22 = vector.broadcast %21 : vector<1x32xf32> to vector<2x32xf32>
    %23 = arith.addf %20, %22 : vector<2x32xf32>
    %cst_20 = arith.constant 0.000000e+00 : f32
    %24 = vector.broadcast %cst_20 : f32 to vector<2x32xf32>
    %25 = arith.cmpf ogt, %23, %24 : vector<2x32xf32>
    %cst_21 = arith.constant 0.00999999977 : f32
    %26 = vector.broadcast %cst_21 : f32 to vector<2x32xf32>
    %27 = arith.mulf %26, %23 : vector<2x32xf32>
    %28 = arith.select %25, %23, %27 : vector<2x32xi1>, vector<2x32xf32>
    %c0_22 = arith.constant 0 : index
    %c0_23 = arith.constant 0 : index
    %29 = vector.load %arg9[%c0_22, %c0_23] : memref<1x32xf32, #tpu.memory_space<vmem>>, vector<1x32xf32>
    %30 = vector.broadcast %29 : vector<1x32xf32> to vector<2x32xf32>
    %31 = arith.mulf %28, %30 : vector<2x32xf32>
    %cst_24 = arith.constant dense<0.000000e+00> : vector<2xf32>
    %32 = vector.multi_reduction <add>, %31, %cst_24 [1] : vector<2x32xf32> to vector<2xf32>
    %33 = vector.shape_cast %32 : vector<2xf32> to vector<2x1xf32>
    %c0_25 = arith.constant 0 : index
    %c0_26 = arith.constant 0 : index
    %34 = vector.load %arg10[%c0_25, %c0_26] : memref<1x1xf32, #tpu.memory_space<vmem>>, vector<1x1xf32>
    %35 = vector.broadcast %34 : vector<1x1xf32> to vector<2x1xf32>
    %36 = arith.addf %33, %35 : vector<2x1xf32>
    %c0_27 = arith.constant 0 : index
    %c0_28 = arith.constant 0 : index
    %37 = vector.load %arg11[%c0_27, %c0_28] : memref<2x1xf32, #tpu.memory_space<vmem>>, vector<2x1xf32>
    tpu.vector_store %arg11[%c0_27, %c0_28], %36 {strides = array<i32>} : memref<2x1xf32, #tpu.memory_space<vmem>>, vector<2x1xf32>,
    return
  }
  func.func @transform_0(%arg0: i32) -> (i32, i32) {
    %c0_i32 = arith.constant 0 : i32
    %c0_i32_0 = arith.constant 0 : i32
    return %arg0, %c0_i32 : i32, i32
  }
  func.func @transform_1(%arg0: i32) -> (i32, i32) {
    %c0_i32 = arith.constant 0 : i32
    %c0_i32_0 = arith.constant 0 : i32
    return %arg0, %c0_i32 : i32, i32
  }
  func.func @transform_2(%arg0: i32) -> (i32, i32) {
    %c0_i32 = arith.constant 0 : i32
    %c0_i32_0 = arith.constant 0 : i32
    %c0_i32_1 = arith.constant 0 : i32
    return %c0_i32, %c0_i32_0 : i32, i32
  }
  func.func @transform_3(%arg0: i32) -> (i32, i32) {
    %c0_i32 = arith.constant 0 : i32
    %c0_i32_0 = arith.constant 0 : i32
    %c0_i32_1 = arith.constant 0 : i32
    return %c0_i32, %c0_i32_0 : i32, i32
  }
  func.func @transform_4(%arg0: i32) -> (i32, i32) {
    %c0_i32 = arith.constant 0 : i32
    %c0_i32_0 = arith.constant 0 : i32
    %c0_i32_1 = arith.constant 0 : i32
    return %c0_i32, %c0_i32_0 : i32, i32
  }
  func.func @transform_5(%arg0: i32) -> (i32, i32) {
    %c0_i32 = arith.constant 0 : i32
    %c0_i32_0 = arith.constant 0 : i32
    %c0_i32_1 = arith.constant 0 : i32
    return %c0_i32, %c0_i32_0 : i32, i32
  }
  func.func @transform_6(%arg0: i32) -> (i32, i32) {
    %c0_i32 = arith.constant 0 : i32
    %c0_i32_0 = arith.constant 0 : i32
    %c0_i32_1 = arith.constant 0 : i32
    return %c0_i32, %c0_i32_0 : i32, i32
  }
  func.func @transform_7(%arg0: i32) -> (i32, i32) {
    %c0_i32 = arith.constant 0 : i32
    %c0_i32_0 = arith.constant 0 : i32
    %c0_i32_1 = arith.constant 0 : i32
    return %c0_i32, %c0_i32_0 : i32, i32
  }
  func.func @transform_8(%arg0: i32) -> (i32, i32) {
    %c0_i32 = arith.constant 0 : i32
    %c0_i32_0 = arith.constant 0 : i32
    %c0_i32_1 = arith.constant 0 : i32
    return %c0_i32, %c0_i32_0 : i32, i32
  }
  func.func @transform_9(%arg0: i32) -> (i32, i32) {
    %c0_i32 = arith.constant 0 : i32
    %c0_i32_0 = arith.constant 0 : i32
    %c0_i32_1 = arith.constant 0 : i32
    return %c0_i32, %c0_i32_0 : i32, i32
  }
  func.func @transform_10(%arg0: i32) -> (i32, i32) {
    %c0_i32 = arith.constant 0 : i32
    %c0_i32_0 = arith.constant 0 : i32
    return %arg0, %c0_i32 : i32, i32
  }
}

</mosaic_0001>

<bundles_post_ra>
// kernel: conv_critic_forward.5
= control target key start
LH: loop header
LB: loop body
LE: loop exit
PB: predicated region body
PF: predicated region fallthrough
CT: control target
= control target key end

     0   :  { %s4231_s12 = smov 0   ;;  %s5141_s0 = inlined_call_operand.vmem [shape: bf16[2,256,256], index: 0, kind: input, shape index: {}]   ;;  %s5142_s1 = inlined_call_operand.vmem [shape: bf16[4,256,128], index: 1, kind: input, shape index: {}]   ;;  %s5143_s2 = inlined_call_operand.vmem [shape: f32[1,128], index: 2, kind: input, shape index: {}]   ;;  %s5144_s3 = inlined_call_operand.vmem [shape: bf16[2,232,128], index: 3, kind: output, shape index: {}]  }
   0x1 LB: > { %s2917_s13 = sadd.s32 4294967295, %s4209_s12   ;;  %p2921_p0 = scmp.ge.s32.totalorder %s4209_s12, 1  ;;  %s4209_s12 = sphi %s4231_s12, %s13_s12  }
   0x2   : > { %p137_p1 = scmp.lt.s32.totalorder %s4209_s12, 3 }
   0x4   : > { %p138_p2 = pnand %p2921_p0, %p137_p1 }
   0x6   : > { %141 = sbr.rel (%p138_p2) target bundleno = 486 (0x1e6), region = 32 }
   0xb   : > { %v4007_v0 = vld [vmem:[%s5142_s1 + $0xf8] sm:$0xff]   ;;  %v4011_v4 = vld [vmem:[%s5142_s1 + $0xf0] sm:$0xff]   ;;  %v4015_v8 = vld [vmem:[%s5142_s1 + $0xe8] sm:$0xff]   ;;  %p161_p3 = scmp.lt.s32.totalorder %s2917_s13, 1 }
   0xc   : > { %v4008_v1 = vld [vmem:[%s5142_s1 + $0x78] sm:$0xff]   ;;  %3510 = vmatprep.subr.bf16.mxu0 %v4007_v0  ;;  %v4012_v5 = vld [vmem:[%s5142_s1 + $0x70] sm:$0xff]   ;;  %v4016_v9 = vld [vmem:[%s5142_s1 + $0x68] sm:$0xff]  }
   0xd   : > { %v4009_v2 = vld [vmem:[%s5142_s1 + $0xb8] sm:$0xff]   ;;  %3574 = vmatprep.subr.bf16.mxu1 %v4008_v1  ;;  %v4013_v6 = vld [vmem:[%s5142_s1 + $0xb0] sm:$0xff]   ;;  %v4017_v10 = vld [vmem:[%s5142_s1 + $0xa8] sm:$0xff]   ;;  %s5156_s13 = smov (!%p161_p3, %s2917_s13), 1 }
   0xe   : > { %v4010_v3 = vld [vmem:[%s5142_s1 + $0x38] sm:$0xff]   ;;  %3511 = vmatpush3.bf16.msra.mxu0 %v4009_v2  ;;  %v4014_v7 = vld [vmem:[%s5142_s1 + $0x30] sm:$0xff]   ;;  %v4018_v11 = vld [vmem:[%s5142_s1 + $0x28] sm:$0xff]   ;;  %s3397_s18 = sshll.u32 %s5156_s13, 8  ;;  %s3998_s6 = smul.u32 116, %s5156_s13 }
   0xf   : > { %3575 = vmatpush3.bf16.msra.mxu1 %v4010_v3  ;;  %3512 = vmatprep.subr.bf16.mxu0 %v4011_v4  ;;  %v4019_v12 = vld [vmem:[%s5142_s1 + $0xe0] sm:$0xff]   ;;  %v4023_v16 = vld [vmem:[%s5142_s1 + $0xd8] sm:$0xff]   ;;  %v4027_v20 = vld [vmem:[%s5142_s1 + $0xd0] sm:$0xff]   ;;  %s4339_s27 = scalar_lea.vmem %s5141_s0, %s3397_s18 }
  0x10   : > { %3576 = vmatprep.subr.bf16.mxu1 %v4012_v5  ;;  %v4020_v13 = vld [vmem:[%s5142_s1 + $0x60] sm:$0xff]   ;;  %v4024_v17 = vld [vmem:[%s5142_s1 + $0x58] sm:$0xff]   ;;  %v4028_v21 = vld [vmem:[%s5142_s1 + $0x50] sm:$0xff]   ;;  %s4931_s9 = scalar_lea.vmem %s5144_s3, %s3998_s6 }
  0x11   : > { %v4021_v14 = vld [vmem:[%s5142_s1 + $0xa0] sm:$0xff]   ;;  %v4025_v18 = vld [vmem:[%s5142_s1 + $0x98] sm:$0xff]   ;;  %v4029_v22 = vld [vmem:[%s5142_s1 + $0x90] sm:$0xff]  }
  0x12   : > { %3513 = vmatpush3.bf16.msra.mxu0 %v4013_v6  ;;  %v4022_v15 = vld [vmem:[%s5142_s1 + $0x20] sm:$0xff]   ;;  %v4026_v19 = vld [vmem:[%s5142_s1 + $0x18] sm:$0xff]   ;;  %v4030_v23 = vld [vmem:[%s5142_s1 + $0x10] sm:$0xff]  }
  0x13   : > { %3577 = vmatpush3.bf16.msra.mxu1 %v4014_v7  ;;  %3514 = vmatprep.subr.bf16.mxu0 %v4015_v8  ;;  %v4031_v24 = vld [vmem:[%s5142_s1 + $0xc8] sm:$0xff]   ;;  %v4035_v28 = vld [vmem:[%s5142_s1 + $0xc0] sm:$0xff]   ;;  %v175_v33 = vld [vmem:[%s4339_s27 + $0x10] sm:$0xff] }
  0x14   : > { %3578 = vmatprep.subr.bf16.mxu1 %v4016_v9  ;;  %v4032_v25 = vld [vmem:[%s5142_s1 + $0x48] sm:$0xff]   ;;  %v4036_v29 = vld [vmem:[%s5142_s1 + $0x40] sm:$0xff]   ;;  %v4043_v39 = vld [vmem:[%s5142_s1 + $0x178] sm:$0xff]  }
  0x15   : > { %v4033_v26 = vld [vmem:[%s5142_s1 + $0x88] sm:$0xff]   ;;  %v4037_v30 = vld [vmem:[%s5142_s1 + $0x80] sm:$0xff]   ;;  %v4044_v40 = vld [vmem:[%s5142_s1 + $0x138] sm:$0xff]  }
  0x16   : > { %3515 = vmatpush3.bf16.msra.mxu0 %v4017_v10  ;;  %v4034_v27 = vld [vmem:[%s5142_s1 + $0x8] sm:$0xff]   ;;  %v4038_v31 = vld [vmem:[%s5142_s1] sm:$0xff]   ;;  %v4045_v41 = vld [vmem:[%s5142_s1 + $0x1f8] sm:$0xff]  }
  0x17   : > { %3579 = vmatpush3.bf16.msra.mxu1 %v4018_v11  ;;  %3516 = vmatprep.subr.bf16.mxu0 %v4019_v12  ;;  %v174_v32 = vld [vmem:[%s4339_s27 + $0x8] sm:$0xff]  ;;  %v173_v34 = vld [vmem:[%s4339_s27] sm:$0xff]  ;;  %v4046_v42 = vld [vmem:[%s5142_s1 + $0x1b8] sm:$0xff]  }
  0x18   : > { %3580 = vmatprep.subr.bf16.mxu1 %v4020_v13  ;;  %v2958_v35 = vcombine.high %v174_v32, %v175_v33  ;;  %v2989_v36 = vcombine.low %v173_v34, %v174_v32  ;;  %v2990_v37 = vcombine.high %v173_v34, %v174_v32  ;;  %v2957_v38 = vcombine.low %v174_v32, %v175_v33  ;;  %v176_v43 = vld [vmem:[%s4339_s27 + $0x18] sm:$0xff]  ;;  %v177_v44 = vld [vmem:[%s4339_s27 + $0x20] sm:$0xff]  ;;  %v4051_v47 = vld [vmem:[%s5142_s1 + $0x170] sm:$0xff]  }
  0x19   : > { %v4364_v45 = vcombine.high %v176_v43, %v177_v44  ;;  %v4366_v46 = vcombine.high %v175_v33, %v176_v43  ;;  %v4052_v48 = vld [vmem:[%s5142_s1 + $0x130] sm:$0xff]   ;;  %v4376_v49 = vcombine.low %v176_v43, %v177_v44  ;;  %v4378_v50 = vcombine.low %v175_v33, %v176_v43  ;;  %v178_v53 = vld [vmem:[%s4339_s27 + $0x28] sm:$0xff]  ;;  %v180_v61 = vld [vmem:[%s4339_s27 + $0x38] sm:$0xff] }
  0x1a   : > { %3517 = vmatpush3.bf16.msra.mxu0 %v4021_v14  ;;  %463 = vmatprep.mubr.bf16.mxu0 %v2958_v35  ;;  %v4053_v51 = vld [vmem:[%s5142_s1 + $0x1f0] sm:$0xff]   ;;  %v4388_v55 = vcombine.high %v177_v44, %v178_v53  ;;  %v4059_v57 = vld [vmem:[%s5142_s1 + $0x168] sm:$0xff]   ;;  %v181_v62 = vld [vmem:[%s4339_s27 + $0x40] sm:$0xff]  ;;  %v4415_v1 = vcombine.low %v177_v44, %v178_v53 }
  0x1b   : > { %3581 = vmatpush3.bf16.msra.mxu1 %v4022_v15  ;;  %3518 = vmatprep.subr.bf16.mxu0 %v4023_v16  ;;  %v4054_v52 = vld [vmem:[%s5142_s1 + $0x1b0] sm:$0xff]   ;;  %v4060_v58 = vld [vmem:[%s5142_s1 + $0x128] sm:$0xff]   ;;  %v4067_v63 = vld [vmem:[%s5142_s1 + $0x160] sm:$0xff]   ;;  %v4420_v3 = vcombine.high %v180_v61, %v181_v62  ;;  %v4448_v13 = vcombine.low %v180_v61, %v181_v62 }
  0x1c   : > { %3582 = vmatprep.subr.bf16.mxu1 %v4024_v17  ;;  %691 = vmatprep.mubr.bf16.mxu1 %v2990_v37  ;;  %v179_v54 = vld [vmem:[%s4339_s27 + $0x30] sm:$0xff]  ;;  %v4061_v59 = vld [vmem:[%s5142_s1 + $0x1e8] sm:$0xff]   ;;  %v4068_v2 = vld [vmem:[%s5142_s1 + $0x120] sm:$0xff]  }
  0x1d   : > { %v4390_v56 = vcombine.high %v178_v53, %v179_v54  ;;  %v4062_v60 = vld [vmem:[%s5142_s1 + $0x1a8] sm:$0xff]   ;;  %v4413_v0 = vcombine.low %v178_v53, %v179_v54  ;;  %v4422_v4 = vcombine.high %v179_v54, %v180_v61  ;;  %v4069_v5 = vld [vmem:[%s5142_s1 + $0x1e0] sm:$0xff]   ;;  %v183_v8 = vld [vmem:[%s4339_s27 + $0x50] sm:$0xff]  ;;  %v4450_v14 = vcombine.low %v179_v54, %v180_v61 }
  0x1e   : > { %3519 = vmatpush3.bf16.msra.mxu0 %v4025_v18  ;;  %v4070_v6 = vld [vmem:[%s5142_s1 + $0x1a0] sm:$0xff]   ;;  %v182_v7 = vld [vmem:[%s4339_s27 + $0x48] sm:$0xff]  ;;  %v4075_v9 = vld [vmem:[%s5142_s1 + $0x158] sm:$0xff]  }
  0x1f   : > { %3583 = vmatpush3.bf16.msra.mxu1 %v4026_v19  ;;  %3520 = vmatprep.subr.bf16.mxu0 %v4027_v20  ;;  %v4076_v10 = vld [vmem:[%s5142_s1 + $0x118] sm:$0xff]   ;;  %v4452_v15 = vcombine.high %v182_v7, %v183_v8  ;;  %v4454_v16 = vcombine.high %v181_v62, %v182_v7  ;;  %v4083_v17 = vld [vmem:[%s5142_s1 + $0x150] sm:$0xff]   ;;  %v4100_v32 = vld [vmem:[%s5142_s1 + $0x100] sm:$0xff]  }
  0x20   : > { %3584 = vmatprep.subr.bf16.mxu1 %v4028_v21  ;;  %v4077_v11 = vld [vmem:[%s5142_s1 + $0x1d8] sm:$0xff]   ;;  %v4084_v18 = vld [vmem:[%s5142_s1 + $0x110] sm:$0xff]   ;;  %v185_v21 = vld [vmem:[%s4339_s27 + $0x60] sm:$0xff] }
  0x21   : > { %v4078_v12 = vld [vmem:[%s5142_s1 + $0x198] sm:$0xff]   ;;  %v4085_v19 = vld [vmem:[%s5142_s1 + $0x1d0] sm:$0xff]   ;;  %v186_v33 = vld [vmem:[%s4339_s27 + $0x68] sm:$0xff] }
  0x22   : > { %3521 = vmatpush3.bf16.msra.mxu0 %v4029_v22  ;;  %v184_v20 = vld [vmem:[%s4339_s27 + $0x58] sm:$0xff]  ;;  %v4086_v22 = vld [vmem:[%s5142_s1 + $0x190] sm:$0xff]   ;;  %v4101_v35 = vld [vmem:[%s5142_s1 + $0x1c0] sm:$0xff]  }
  0x23   : > { %3585 = vmatpush3.bf16.msra.mxu1 %v4030_v23  ;;  %3522 = vmatprep.subr.bf16.mxu0 %v4031_v24  ;;  %v4091_v23 = vld [vmem:[%s5142_s1 + $0x148] sm:$0xff]   ;;  %v187_v34 = vld [vmem:[%s4339_s27 + $0x70] sm:$0xff]  ;;  %v4103_v37 = vld [vmem:[%s5142_s1 + $0xf8] sm:$0xff]  }
  0x24   : > { %3586 = vmatprep.subr.bf16.mxu1 %v4032_v25  ;;  %v4092_v24 = vld [vmem:[%s5142_s1 + $0x108] sm:$0xff]   ;;  %v188_v43 = vld [vmem:[%s4339_s27 + $0x78] sm:$0xff]  ;;  %v4532_v44 = vld [vmem:[%s4339_s27 + $0x80] sm:$0xff] }
  0x25   : > { %v4093_v25 = vld [vmem:[%s5142_s1 + $0x1c8] sm:$0xff]   ;;  %v4548_v53 = vcombine.low %v188_v43, %v4532_v44  ;;  %v4550_v54 = vcombine.low %v187_v34, %v188_v43 }
  0x26   : > { %3523 = vmatpush3.bf16.msra.mxu0 %v4033_v26  ;;  %v4483_v26 = vcombine.low %v182_v7, %v183_v8  ;;  %v4111_v61 = vld [vmem:[%s5142_s1 + $0xe8] sm:$0xff]  }
  0x27   : > { %3587 = vmatpush3.bf16.msra.mxu1 %v4034_v27  ;;  %3524 = vmatprep.subr.bf16.mxu0 %v4035_v28  ;;  %v4485_v27 = vcombine.low %v181_v62, %v182_v7  ;;  %v4094_v28 = vld [vmem:[%s5142_s1 + $0x188] sm:$0xff]   ;;  %v4117_v62 = vld [vmem:[%s5142_s1 + $0x60] sm:$0xff]   ;;  %v4124_v7 = vld [vmem:[%s5142_s1 + $0x90] sm:$0xff]  }
  0x28   : > { %3588 = vmatprep.subr.bf16.mxu1 %v4036_v29  ;;  %v4490_v29 = vcombine.high %v184_v20, %v185_v21 }
  0x2a   : > { %3525 = vmatpush3.bf16.msra.mxu0 %v4037_v30  ;;  %v4492_v30 = vcombine.high %v183_v8, %v184_v20 }
  0x2b   : > { %3589 = vmatpush3.bf16.msra.mxu1 %v4038_v31  ;;  %3638 = vmatprep.subr.bf16.mxu0 %v4043_v39  ;;  %v4099_v31 = vld [vmem:[%s5142_s1 + $0x140] sm:$0xff]   ;;  %v4517_v39 = vcombine.low %v183_v8, %v184_v20  ;;  %v4126_v8 = vld [vmem:[%s5142_s1 + $0x10] sm:$0xff]  }
  0x2c   : > { %3702 = vmatprep.subr.bf16.mxu1 %v4045_v41  ;;  %v4522_v41 = vcombine.high %v186_v33, %v187_v34 }
  0x2d   : > { %464 = vmatmul.mubr.bf16.vlgmr.msra.gmra.mxu0 %v2957_v38  ;;  %v4515_v38 = vcombine.low %v184_v20, %v185_v21  ;;  %v1109_v20 = vld [vmem:[%s4339_s27 + $0x90] sm:$0xff] }
  0x2e   : > { %692 = vmatmul.mubr.bf16.vlgmr.msra.gmra.mxu1 %v2989_v36  ;;  %3639 = vmatpush3.bf16.msra.mxu0 %v4044_v40  ;;  %v4102_v36 = vld [vmem:[%s5142_s1 + $0x180] sm:$0xff]   ;;  %v4105_v40 = vld [vmem:[%s5142_s1 + $0x78] sm:$0xff]  }
  0x2f   : > { %3703 = vmatpush3.bf16.msra.mxu1 %v4046_v42  ;;  %471 = vmatprep.mubr.bf16.mxu0 %v4364_v45  ;;  %v4524_v42 = vcombine.high %v185_v21, %v186_v33 }
  0x30   : > { %699 = vmatprep.mubr.bf16.mxu1 %v4366_v46  ;;  %3640 = vmatprep.subr.bf16.mxu0 %v4051_v47  ;;  %v4534_v47 = vcombine.low %v186_v33, %v187_v34 }
  0x31   : > { %3704 = vmatprep.subr.bf16.mxu1 %v4053_v51  ;;  %v4539_v51 = vcombine.high %v188_v43, %v4532_v44 }
  0x32   : > { %3641 = vmatpush3.bf16.msra.mxu0 %v4052_v48  ;;  %v4536_v48 = vcombine.low %v185_v21, %v186_v33  ;;  %v4148_v33 = vld [vmem:[%s5142_s1 + $0x130] sm:$0xff]  }
  0x33   : > { %3705 = vmatpush3.bf16.msra.mxu1 %v4054_v52  ;;  %3642 = vmatprep.subr.bf16.mxu0 %v4059_v57  ;;  %v4541_v52 = vcombine.high %v187_v34, %v188_v43  ;;  %v4104_v57 = vld [vmem:[%s5142_s1 + $0xb8] sm:$0xff]   ;;  %v4150_v34 = vld [vmem:[%s5142_s1 + $0x1b0] sm:$0xff]   ;;  %v4154_v43 = vld [vmem:[%s5142_s1 + $0x128] sm:$0xff]  }
  0x34   : > { %3706 = vmatprep.subr.bf16.mxu1 %v4061_v59  ;;  %v4107_v59 = vld [vmem:[%s5142_s1 + $0xf0] sm:$0xff]  }
  0x35   : > { %472 = vmatmul.mubr.bf16.gmra.mxu0 %v4376_v49 }
  0x36   : > { %700 = vmatmul.mubr.bf16.gmra.mxu1 %v4378_v50  ;;  %479 = vmatprep.mubr.bf16.mxu0 %v4390_v56 }
  0x37   : > { %707 = vmatprep.mubr.bf16.mxu1 %v4388_v55  ;;  %3643 = vmatpush3.bf16.msra.mxu0 %v4060_v58  ;;  %v4106_v58 = vld [vmem:[%s5142_s1 + $0x38] sm:$0xff]  }
  0x38   : > { %3707 = vmatpush3.bf16.msra.mxu1 %v4062_v60  ;;  %3644 = vmatprep.subr.bf16.mxu0 %v4067_v63  ;;  %v4108_v60 = vld [vmem:[%s5142_s1 + $0xb0] sm:$0xff]   ;;  %v4116_v63 = vld [vmem:[%s5142_s1 + $0xa0] sm:$0xff]  }
  0x39   : > { %3708 = vmatprep.subr.bf16.mxu1 %v4069_v5  ;;  %v4123_v5 = vld [vmem:[%s5142_s1 + $0xd0] sm:$0xff]  }
  0x3b   : > { %3645 = vmatpush3.bf16.msra.mxu0 %v4068_v2  ;;  %v4118_v2 = vld [vmem:[%s5142_s1 + $0x20] sm:$0xff]  }
  0x3c   : > { %3709 = vmatpush3.bf16.msra.mxu1 %v4070_v6  ;;  %3646 = vmatprep.subr.bf16.mxu0 %v4075_v9  ;;  %v4125_v6 = vld [vmem:[%s5142_s1 + $0x50] sm:$0xff]   ;;  %v4127_v9 = vld [vmem:[%s5142_s1 + $0xc8] sm:$0xff]  }
  0x3d   : > { %480 = vmatmul.mubr.bf16.gmra.mxu0 %v4413_v0  ;;  %3710 = vmatprep.subr.bf16.mxu1 %v4077_v11  ;;  %v4128_v11 = vld [vmem:[%s5142_s1 + $0x88] sm:$0xff]  }
  0x3e   : > { %708 = vmatmul.mubr.bf16.gmra.mxu1 %v4415_v1  ;;  %487 = vmatprep.mubr.bf16.mxu0 %v4420_v3 }
  0x3f   : > { %715 = vmatprep.mubr.bf16.mxu1 %v4422_v4  ;;  %3647 = vmatpush3.bf16.msra.mxu0 %v4076_v10  ;;  %v4129_v10 = vld [vmem:[%s5142_s1 + $0x48] sm:$0xff]  }
  0x40   : > { %3711 = vmatpush3.bf16.msra.mxu1 %v4078_v12  ;;  %3648 = vmatprep.subr.bf16.mxu0 %v4083_v17  ;;  %v4130_v12 = vld [vmem:[%s5142_s1 + $0x8] sm:$0xff]   ;;  %v4139_v17 = vld [vmem:[%s5142_s1 + $0x178] sm:$0xff]  }
  0x41   : > { %3712 = vmatprep.subr.bf16.mxu1 %v4085_v19  ;;  %v771_v19 = vld [vmem:[%s4339_s27 + $0x88] sm:$0xff] }
  0x42   : > { %v3068_v21 = vcombine.high %v4532_v44, %v771_v19 }
  0x43   : > { %3649 = vmatpush3.bf16.msra.mxu0 %v4084_v18  ;;  %v4141_v18 = vld [vmem:[%s5142_s1 + $0x1f8] sm:$0xff]  }
  0x44   : > { %3713 = vmatpush3.bf16.msra.mxu1 %v4086_v22  ;;  %3650 = vmatprep.subr.bf16.mxu0 %v4091_v23  ;;  %v3132_v22 = vcombine.high %v771_v19, %v1109_v20  ;;  %v3067_v23 = vcombine.low %v4532_v44, %v771_v19  ;;  %v4158_v44 = vld [vmem:[%s5142_s1 + $0x1a8] sm:$0xff]  }
  0x45   : > { %488 = vmatmul.mubr.bf16.gmra.mxu0 %v4448_v13  ;;  %3714 = vmatprep.subr.bf16.mxu1 %v4093_v25  ;;  %v1585_v25 = vld [vmem:[%s4339_s27 + $0x98] sm:$0xff] }
  0x46   : > { %716 = vmatmul.mubr.bf16.gmra.mxu1 %v4450_v14  ;;  %495 = vmatprep.mubr.bf16.mxu0 %v4452_v15 }
  0x47   : > { %723 = vmatprep.mubr.bf16.mxu1 %v4454_v16  ;;  %3651 = vmatpush3.bf16.msra.mxu0 %v4092_v24  ;;  %v3131_v24 = vcombine.low %v771_v19, %v1109_v20  ;;  %v4840_v19 = vld [vmem:[%s4339_s27 + $0xe8] sm:$0xff] }
  0x48   : > { %3715 = vmatpush3.bf16.msra.mxu1 %v4094_v28  ;;  %3652 = vmatprep.subr.bf16.mxu0 %v4099_v31  ;;  %v4142_v28 = vld [vmem:[%s5142_s1 + $0x1b8] sm:$0xff]   ;;  %v4145_v31 = vld [vmem:[%s5142_s1 + $0x170] sm:$0xff]  }
  0x49   : > { %3716 = vmatprep.subr.bf16.mxu1 %v4101_v35  ;;  %v4151_v35 = vld [vmem:[%s5142_s1 + $0x168] sm:$0xff]  }
  0x4b   : > { %3653 = vmatpush3.bf16.msra.mxu0 %v4100_v32  ;;  %v4149_v32 = vld [vmem:[%s5142_s1 + $0x1f0] sm:$0xff]  }
  0x4c   : > { %3717 = vmatpush3.bf16.msra.mxu1 %v4102_v36  ;;  %3766 = vmatprep.subr.bf16.mxu0 %v4103_v37  ;;  %v1587_v36 = vld [vmem:[%s4339_s27 + $0xa8] sm:$0xff]  ;;  %v1588_v37 = vld [vmem:[%s4339_s27 + $0xb0] sm:$0xff] }
  0x4d   : > { %496 = vmatmul.mubr.bf16.gmra.mxu0 %v4483_v26  ;;  %3824 = vmatprep.subr.bf16.mxu1 %v4105_v40  ;;  %v4718_v40 = vcombine.low %v1109_v20, %v1585_v25 }
  0x4e   : > { %724 = vmatmul.mubr.bf16.gmra.mxu1 %v4485_v27  ;;  %503 = vmatprep.mubr.bf16.mxu0 %v4490_v29 }
  0x4f   : > { %731 = vmatprep.mubr.bf16.mxu1 %v4492_v30 }
  0x55   : > { %504 = vmatmul.mubr.bf16.gmra.mxu0 %v4515_v38 }
  0x56   : > { %732 = vmatmul.mubr.bf16.gmra.mxu1 %v4517_v39  ;;  %511 = vmatprep.mubr.bf16.mxu0 %v4522_v41 }
  0x57   : > { %739 = vmatprep.mubr.bf16.mxu1 %v4524_v42 }
  0x5d   : > { %512 = vmatmul.mubr.bf16.gmra.mxu0 %v4534_v47 }
  0x5e   : > { %740 = vmatmul.mubr.bf16.gmra.mxu1 %v4536_v48  ;;  %519 = vmatprep.mubr.bf16.mxu0 %v4539_v51 }
  0x5f   : > { %747 = vmatprep.mubr.bf16.mxu1 %v4541_v52 }
  0x65   : > { %520 = vmatmul.mubr.bf16.gmra.mxu0 %v4548_v53 }
  0x66   : > { %748 = vmatmul.mubr.bf16.gmra.mxu1 %v4550_v54  ;;  %1013 = vmatprep.mubr.bf16.mxu0 %v4366_v46  ;;  %v4110_v46 = vld [vmem:[%s5142_s1 + $0x30] sm:$0xff]  }
  0x67   : > { %1351 = vmatprep.mubr.bf16.mxu1 %v4364_v45  ;;  %v4109_v45 = vld [vmem:[%s5142_s1 + $0x70] sm:$0xff]  }
  0x6d   : > { %1014 = vmatmul.mubr.bf16.vlgmr.msra.gmra.mxu0 %v4378_v50  ;;  %v4113_v50 = vld [vmem:[%s5142_s1 + $0x68] sm:$0xff]  }
  0x6e   : > { %1352 = vmatmul.mubr.bf16.vlgmr.msra.gmra.mxu1 %v4376_v49  ;;  %3767 = vmatpush3.bf16.msra.mxu0 %v4104_v57  ;;  %v4112_v49 = vld [vmem:[%s5142_s1 + $0xa8] sm:$0xff]   ;;  %v4167_v57 = vld [vmem:[%s5142_s1 + $0x158] sm:$0xff]  }
  0x6f   : > { %3825 = vmatpush3.bf16.msra.mxu1 %v4106_v58  ;;  %1021 = vmatprep.mubr.bf16.mxu0 %v4388_v55  ;;  %v4114_v55 = vld [vmem:[%s5142_s1 + $0x28] sm:$0xff]   ;;  %v4169_v58 = vld [vmem:[%s5142_s1 + $0x1d8] sm:$0xff]  }
  0x70   : > { %1359 = vmatprep.mubr.bf16.mxu1 %v4390_v56  ;;  %3768 = vmatprep.subr.bf16.mxu0 %v4107_v59  ;;  %v4115_v56 = vld [vmem:[%s5142_s1 + $0xe0] sm:$0xff]   ;;  %v4754_v59 = vcombine.low %v1587_v36, %v1588_v37 }
  0x71   : > { %3826 = vmatprep.subr.bf16.mxu1 %v4109_v45 }
  0x72   : > { %3769 = vmatpush3.bf16.msra.mxu0 %v4108_v60 }
  0x73   : > { %3827 = vmatpush3.bf16.msra.mxu1 %v4110_v46  ;;  %3770 = vmatprep.subr.bf16.mxu0 %v4111_v61  ;;  %v4168_v61 = vld [vmem:[%s5142_s1 + $0x118] sm:$0xff]  }
  0x74   : > { %3828 = vmatprep.subr.bf16.mxu1 %v4113_v50  ;;  %v4172_v50 = vld [vmem:[%s5142_s1 + $0x198] sm:$0xff]  }
  0x75   : > { %1022 = vmatmul.mubr.bf16.gmra.mxu0 %v4415_v1  ;;  %v4119_v1 = vld [vmem:[%s5142_s1 + $0xd8] sm:$0xff]  }
  0x76   : > { %1360 = vmatmul.mubr.bf16.gmra.mxu1 %v4413_v0  ;;  %1029 = vmatprep.mubr.bf16.mxu0 %v4422_v4  ;;  %v4121_v0 = vld [vmem:[%s5142_s1 + $0x58] sm:$0xff]  }
  0x77   : > { %1367 = vmatprep.mubr.bf16.mxu1 %v4420_v3  ;;  %3771 = vmatpush3.bf16.msra.mxu0 %v4112_v49  ;;  %v4120_v3 = vld [vmem:[%s5142_s1 + $0x98] sm:$0xff]   ;;  %v4175_v49 = vld [vmem:[%s5142_s1 + $0x150] sm:$0xff]  }
  0x78   : > { %3829 = vmatpush3.bf16.msra.mxu1 %v4114_v55  ;;  %3772 = vmatprep.subr.bf16.mxu0 %v4115_v56  ;;  %v4122_v4 = vld [vmem:[%s5142_s1 + $0x18] sm:$0xff]   ;;  %v4177_v55 = vld [vmem:[%s5142_s1 + $0x1d0] sm:$0xff]   ;;  %v1591_v56 = vld [vmem:[%s4339_s27 + $0xc8] sm:$0xff] }
  0x79   : > { %3830 = vmatprep.subr.bf16.mxu1 %v4117_v62  ;;  %v1592_v62 = vld [vmem:[%s4339_s27 + $0xd0] sm:$0xff] }
  0x7b   : > { %3773 = vmatpush3.bf16.msra.mxu0 %v4116_v63  ;;  %v4176_v63 = vld [vmem:[%s5142_s1 + $0x110] sm:$0xff]  }
  0x7c   : > { %3831 = vmatpush3.bf16.msra.mxu1 %v4118_v2  ;;  %3774 = vmatprep.subr.bf16.mxu0 %v4119_v1  ;;  %v4178_v2 = vld [vmem:[%s5142_s1 + $0x190] sm:$0xff]   ;;  %v4183_v1 = vld [vmem:[%s5142_s1 + $0x148] sm:$0xff]  }
  0x7d   : > { %3832 = vmatprep.subr.bf16.mxu1 %v4121_v0  ;;  %1030 = vmatmul.mubr.bf16.gmra.mxu0 %v4450_v14  ;;  %v4137_v14 = vld [vmem:[%s5142_s1 + $0x40] sm:$0xff]   ;;  %v4185_v0 = vld [vmem:[%s5142_s1 + $0x1c8] sm:$0xff]  }
  0x7e   : > { %1368 = vmatmul.mubr.bf16.gmra.mxu1 %v4448_v13  ;;  %1037 = vmatprep.mubr.bf16.mxu0 %v4454_v16  ;;  %v4135_v13 = vld [vmem:[%s5142_s1 + $0xc0] sm:$0xff]  }
  0x7f   : > { %1375 = vmatprep.mubr.bf16.mxu1 %v4452_v15  ;;  %3775 = vmatpush3.bf16.msra.mxu0 %v4120_v3  ;;  %v4136_v15 = vld [vmem:[%s5142_s1 + $0x80] sm:$0xff]  }
  0x80   : > { %3833 = vmatpush3.bf16.msra.mxu1 %v4122_v4  ;;  %3776 = vmatprep.subr.bf16.mxu0 %v4123_v5  ;;  %v4138_v16 = vld [vmem:[%s5142_s1] sm:$0xff]   ;;  %v4796_v5 = vcombine.high %v1591_v56, %v1592_v62 }
  0x81   : > { %3834 = vmatprep.subr.bf16.mxu1 %v4125_v6 }
  0x83   : > { %3777 = vmatpush3.bf16.msra.mxu0 %v4124_v7  ;;  %v4184_v7 = vld [vmem:[%s5142_s1 + $0x108] sm:$0xff]  }
  0x84   : > { %3835 = vmatpush3.bf16.msra.mxu1 %v4126_v8  ;;  %3778 = vmatprep.subr.bf16.mxu0 %v4127_v9  ;;  %v4186_v8 = vld [vmem:[%s5142_s1 + $0x188] sm:$0xff]   ;;  %v4191_v9 = vld [vmem:[%s5142_s1 + $0x140] sm:$0xff]  }
  0x85   : > { %3836 = vmatprep.subr.bf16.mxu1 %v4129_v10  ;;  %1038 = vmatmul.mubr.bf16.gmra.mxu0 %v4485_v27  ;;  %v4140_v27 = vld [vmem:[%s5142_s1 + $0x138] sm:$0xff]   ;;  %v4193_v10 = vld [vmem:[%s5142_s1 + $0x1c0] sm:$0xff]  }
  0x86   : > { %1376 = vmatmul.mubr.bf16.gmra.mxu1 %v4483_v26  ;;  %1045 = vmatprep.mubr.bf16.mxu0 %v4492_v30  ;;  %v1586_v26 = vld [vmem:[%s4339_s27 + $0xa0] sm:$0xff]  ;;  %v4692_v30 = vcombine.high %v1109_v20, %v1585_v25 }
  0x87   : > { %1383 = vmatprep.mubr.bf16.mxu1 %v4490_v29  ;;  %3779 = vmatpush3.bf16.msra.mxu0 %v4128_v11  ;;  %v4690_v29 = vcombine.high %v1585_v25, %v1586_v26  ;;  %v4756_v60 = vcombine.low %v1586_v26, %v1587_v36  ;;  %v1593_v11 = vld [vmem:[%s4339_s27 + $0xd8] sm:$0xff] }
  0x88   : > { %3837 = vmatpush3.bf16.msra.mxu1 %v4130_v12  ;;  %3780 = vmatprep.subr.bf16.mxu0 %v4135_v13  ;;  %v4818_v12 = vld [vmem:[%s4339_s27 + $0xe0] sm:$0xff] }
  0x89   : > { %3838 = vmatprep.subr.bf16.mxu1 %v4137_v14  ;;  %v4192_v13 = vld [vmem:[%s5142_s1 + $0x100] sm:$0xff]   ;;  %v4843_v20 = vcombine.low %v1593_v11, %v4818_v12 }
  0x8a   : > { %v4194_v14 = vld [vmem:[%s5142_s1 + $0x180] sm:$0xff]  }
  0x8b   : > { %3781 = vmatpush3.bf16.msra.mxu0 %v4136_v15  ;;  %v4826_v15 = vcombine.low %v1591_v56, %v1592_v62 }
  0x8c   : > { %3839 = vmatpush3.bf16.msra.mxu1 %v4138_v16  ;;  %3882 = vmatprep.subr.bf16.mxu0 %v4139_v17  ;;  %v4831_v17 = vcombine.high %v1593_v11, %v4818_v12 }
  0x8d   : > { %3940 = vmatprep.subr.bf16.mxu1 %v4141_v18  ;;  %1046 = vmatmul.mubr.bf16.gmra.mxu0 %v4517_v39  ;;  %v4716_v39 = vcombine.low %v1585_v25, %v1586_v26  ;;  %v4833_v18 = vcombine.high %v1592_v62, %v1593_v11  ;;  %v3240_v25 = vcombine.low %v4818_v12, %v4818_v12 }
  0x8e   : > { %1384 = vmatmul.mubr.bf16.gmra.mxu1 %v4515_v38  ;;  %1053 = vmatprep.mubr.bf16.mxu0 %v4524_v42  ;;  %v4157_v38 = vld [vmem:[%s5142_s1 + $0x1e8] sm:$0xff]   ;;  %v4722_v42 = vcombine.high %v1586_v26, %v1587_v36 }
  0x8f   : > { %1391 = vmatprep.mubr.bf16.mxu1 %v4522_v41  ;;  %v4720_v41 = vcombine.high %v1587_v36, %v1588_v37 }
  0x95   : > { %1054 = vmatmul.mubr.bf16.gmra.mxu0 %v4536_v48  ;;  %v4163_v48 = vld [vmem:[%s5142_s1 + $0x1e0] sm:$0xff]  }
  0x96   : > { %1392 = vmatmul.mubr.bf16.gmra.mxu1 %v4534_v47  ;;  %1061 = vmatprep.mubr.bf16.mxu0 %v4541_v52  ;;  %v4159_v47 = vld [vmem:[%s5142_s1 + $0x160] sm:$0xff]   ;;  %v1589_v52 = vld [vmem:[%s4339_s27 + $0xb8] sm:$0xff] }
  0x97   : > { %1399 = vmatprep.mubr.bf16.mxu1 %v4539_v51  ;;  %v4160_v51 = vld [vmem:[%s5142_s1 + $0x120] sm:$0xff]   ;;  %v4760_v46 = vcombine.high %v1588_v37, %v1589_v52  ;;  %v4794_v4 = vcombine.low %v1588_v37, %v1589_v52 }
  0x9d   : > { %1062 = vmatmul.mubr.bf16.gmra.mxu0 %v4550_v54  ;;  %v4166_v54 = vld [vmem:[%s5142_s1 + $0x1a0] sm:$0xff]  }
  0x9e   : > { %1400 = vmatmul.mubr.bf16.gmra.mxu1 %v4548_v53  ;;  %1069 = vmatprep.mubr.bf16.mxu0 %v3068_v21  ;;  %v1590_v53 = vld [vmem:[%s4339_s27 + $0xc0] sm:$0xff] }
  0x9f   : > { %1407 = vmatprep.mubr.bf16.mxu1 %v3132_v22  ;;  %v4758_v45 = vcombine.high %v1589_v52, %v1590_v53  ;;  %v4792_v3 = vcombine.low %v1589_v52, %v1590_v53  ;;  %v4798_v6 = vcombine.high %v1590_v53, %v1591_v56  ;;  %v4828_v16 = vcombine.low %v1590_v53, %v1591_v56 }
  0xa5   : > { %1070 = vmatmul.mubr.bf16.gmra.mxu0 %v3067_v23 }
  0xa6   : > { %1408 = vmatmul.mubr.bf16.gmra.mxu1 %v3131_v24  ;;  %1855 = vmatprep.mubr.bf16.mxu0 %v3132_v22  ;;  %v3211_v22 = vcombine.high %v4840_v19, %v4840_v19 }
  0xa7   : > { %2070 = vmatprep.mubr.bf16.mxu1 %v3068_v21  ;;  %v4845_v21 = vcombine.low %v1592_v62, %v1593_v11  ;;  %v2447_v11 = vld [vmem:[%s4339_s27 + $0xf8] sm:$0xff] }
  0xad   : > { %1856 = vmatmul.mubr.bf16.vlgmr.msra.gmra.mxu0 %v3131_v24  ;;  %v3210_v24 = vcombine.low %v4840_v19, %v4840_v19 }
  0xae   : > { %2071 = vmatmul.mubr.bf16.vlgmr.msra.gmra.mxu1 %v3067_v23  ;;  %3883 = vmatpush3.bf16.msra.mxu0 %v4140_v27  ;;  %v3241_v23 = vcombine.high %v4818_v12, %v4818_v12 }
  0xaf   : > { %3941 = vmatpush3.bf16.msra.mxu1 %v4142_v28  ;;  %1863 = vmatprep.mubr.bf16.mxu0 %v4690_v29 }
  0xb0   : > { %2078 = vmatprep.mubr.bf16.mxu1 %v4692_v30  ;;  %3884 = vmatprep.subr.bf16.mxu0 %v4145_v31 }
  0xb1   : > { %3942 = vmatprep.subr.bf16.mxu1 %v4149_v32 }
  0xb2   : > { %3885 = vmatpush3.bf16.msra.mxu0 %v4148_v33 }
  0xb3   : > { %3943 = vmatpush3.bf16.msra.mxu1 %v4150_v34  ;;  %3886 = vmatprep.subr.bf16.mxu0 %v4151_v35 }
  0xb4   : > { %3944 = vmatprep.subr.bf16.mxu1 %v4157_v38 }
  0xb5   : > { %1864 = vmatmul.mubr.bf16.gmra.mxu0 %v4716_v39 }
  0xb6   : > { %2079 = vmatmul.mubr.bf16.gmra.mxu1 %v4718_v40  ;;  %1871 = vmatprep.mubr.bf16.mxu0 %v4720_v41 }
  0xb7   : > { %2086 = vmatprep.mubr.bf16.mxu1 %v4722_v42  ;;  %3887 = vmatpush3.bf16.msra.mxu0 %v4154_v43 }
  0xb8   : > { %3945 = vmatpush3.bf16.msra.mxu1 %v4158_v44  ;;  %3888 = vmatprep.subr.bf16.mxu0 %v4159_v47 }
  0xb9   : > { %3946 = vmatprep.subr.bf16.mxu1 %v4163_v48 }
  0xbb   : > { %3889 = vmatpush3.bf16.msra.mxu0 %v4160_v51 }
  0xbc   : > { %3947 = vmatpush3.bf16.msra.mxu1 %v4166_v54  ;;  %3890 = vmatprep.subr.bf16.mxu0 %v4167_v57 }
  0xbd   : > { %3948 = vmatprep.subr.bf16.mxu1 %v4169_v58  ;;  %1872 = vmatmul.mubr.bf16.gmra.mxu0 %v4754_v59 }
  0xbe   : > { %2087 = vmatmul.mubr.bf16.gmra.mxu1 %v4756_v60  ;;  %1879 = vmatprep.mubr.bf16.mxu0 %v4758_v45 }
  0xbf   : > { %2094 = vmatprep.mubr.bf16.mxu1 %v4760_v46  ;;  %3891 = vmatpush3.bf16.msra.mxu0 %v4168_v61 }
  0xc0   : > { %3949 = vmatpush3.bf16.msra.mxu1 %v4172_v50  ;;  %3892 = vmatprep.subr.bf16.mxu0 %v4175_v49  ;;  %v2446_v50 = vld [vmem:[%s4339_s27 + $0xf0] sm:$0xff] }
  0xc1   : > { %3950 = vmatprep.subr.bf16.mxu1 %v4177_v55 }
  0xc3   : > { %3893 = vmatpush3.bf16.msra.mxu0 %v4176_v63 }
  0xc4   : > { %3951 = vmatpush3.bf16.msra.mxu1 %v4178_v2  ;;  %3894 = vmatprep.subr.bf16.mxu0 %v4183_v1  ;;  %v3301_v2 = vcombine.high %v4818_v12, %v4840_v19  ;;  %v3363_v1 = vcombine.high %v4840_v19, %v2446_v50 }
  0xc5   : > { %3952 = vmatprep.subr.bf16.mxu1 %v4185_v0  ;;  %1880 = vmatmul.mubr.bf16.gmra.mxu0 %v4792_v3 }
  0xc6   : > { %2095 = vmatmul.mubr.bf16.gmra.mxu1 %v4794_v4  ;;  %1887 = vmatprep.mubr.bf16.mxu0 %v4796_v5 }
  0xc7   : > { %2102 = vmatprep.mubr.bf16.mxu1 %v4798_v6  ;;  %3895 = vmatpush3.bf16.msra.mxu0 %v4184_v7 }
  0xc8   : > { %3953 = vmatpush3.bf16.msra.mxu1 %v4186_v8  ;;  %3896 = vmatprep.subr.bf16.mxu0 %v4191_v9 }
  0xc9   : > { %3954 = vmatprep.subr.bf16.mxu1 %v4193_v10 }
  0xcb   : > { %3897 = vmatpush3.bf16.msra.mxu0 %v4192_v13 }
  0xcc   : > { %3955 = vmatpush3.bf16.msra.mxu1 %v4194_v14 }
  0xcd   : > { %1888 = vmatmul.mubr.bf16.gmra.mxu0 %v4826_v15 }
  0xce   : > { %2103 = vmatmul.mubr.bf16.gmra.mxu1 %v4828_v16  ;;  %1895 = vmatprep.mubr.bf16.mxu0 %v4831_v17 }
  0xcf   : > { %2110 = vmatprep.mubr.bf16.mxu1 %v4833_v18 }
  0xd5   : > { %1896 = vmatmul.mubr.bf16.gmra.mxu0 %v4843_v20 }
  0xd6   : > { %2111 = vmatmul.mubr.bf16.gmra.mxu1 %v4845_v21  ;;  %1903 = vmatprep.mubr.bf16.mxu0 %v3211_v22 }
  0xd7   : > { %2118 = vmatprep.mubr.bf16.mxu1 %v3241_v23 }
  0xdd   : > { %1904 = vmatmul.mubr.bf16.gmra.mxu0 %v3210_v24 }
  0xde   : > { %2119 = vmatmul.mubr.bf16.gmra.mxu1 %v3240_v25  ;;  %2366 = vmatprep.mubr.bf16.mxu0 %v4692_v30 }
  0xdf   : > { %2675 = vmatprep.mubr.bf16.mxu1 %v4690_v29 }
  0xe5   : > { %2367 = vmatmul.mubr.bf16.vlgmr.msra.gmra.mxu0 %v4718_v40 }
  0xe6   : > { %2676 = vmatmul.mubr.bf16.vlgmr.msra.gmra.mxu1 %v4716_v39  ;;  %2374 = vmatprep.mubr.bf16.mxu0 %v4722_v42 }
  0xe7   : > { %2683 = vmatprep.mubr.bf16.mxu1 %v4720_v41 }
  0xed   : > { %v3526_v26 = vpop.f32.mrf.mxu0  ;;  %2375 = vmatmul.mubr.bf16.gmra.mxu0 %v4756_v60 }
  0xee   : > { %v3590_v27 = vpop.f32.mrf.mxu1  ;;  %2684 = vmatmul.mubr.bf16.gmra.mxu1 %v4754_v59  ;;  %2382 = vmatprep.mubr.bf16.mxu0 %v4760_v46 }
  0xef   : > { %2691 = vmatprep.mubr.bf16.mxu1 %v4758_v45  ;;  %v3527_v28 = vpop.f32.mrf.mxu0 }
  0xf0   : > { %v3591_v29 = vpop.f32.mrf.mxu1  ;;  %v3528_v30 = vadd.f32 %v3527_v28, %v3526_v26 }
  0xf1   : > { %v3592_v31 = vadd.f32 %v3591_v29, %v3590_v27  ;;  %v3529_v32 = vpop.f32.mrf.mxu0 }
  0xf2   : > { %v3593_v33 = vpop.f32.mrf.mxu1 }
  0xf3   : > { %v4867_v34 = vadd.f32 %v3592_v31, %v3528_v30  ;;  %v3530_v35 = vpop.f32.mrf.mxu0 }
  0xf4   : > { %v3594_v36 = vpop.f32.mrf.mxu1  ;;  %v3531_v37 = vadd.f32 %v3530_v35, %v3529_v32  ;;  %v3302_v35 = vcombine.low %v2446_v50, %v2446_v50 }
  0xf5   : > { %v3595_v38 = vadd.f32 %v3594_v36, %v3593_v33  ;;  %v3532_v39 = vpop.f32.mrf.mxu0  ;;  %2383 = vmatmul.mubr.bf16.gmra.mxu0 %v4794_v4  ;;  %v3364_v36 = vcombine.low %v2447_v11, %v2447_v11 }
  0xf6   : > { %v3596_v40 = vpop.f32.mrf.mxu1  ;;  %2692 = vmatmul.mubr.bf16.gmra.mxu1 %v4792_v3  ;;  %2390 = vmatprep.mubr.bf16.mxu0 %v4798_v6 }
  0xf7   : > { %v4871_v41 = vadd.f32 %v3595_v38, %v3531_v37  ;;  %2699 = vmatprep.mubr.bf16.mxu1 %v4796_v5  ;;  %v3533_v42 = vpop.f32.mrf.mxu0 }
  0xf8   : > { %v3597_v43 = vpop.f32.mrf.mxu1  ;;  %v3534_v44 = vadd.f32 %v3533_v42, %v3532_v39 }
  0xf9   : > { %v3598_v47 = vadd.f32 %v3597_v43, %v3596_v40  ;;  %v3535_v48 = vpop.f32.mrf.mxu0 }
  0xfa   : > { %v3599_v51 = vpop.f32.mrf.mxu1 }
  0xfb   : > { %v4875_v52 = vadd.f32 %v3598_v47, %v3534_v44  ;;  %v3536_v53 = vpop.f32.mrf.mxu0 }
  0xfc   : > { %v3600_v54 = vpop.f32.mrf.mxu1  ;;  %v3537_v57 = vadd.f32 %v3536_v53, %v3535_v48 }
  0xfd   : > { %v3601_v58 = vadd.f32 %v3600_v54, %v3599_v51  ;;  %v3538_v59 = vpop.f32.mrf.mxu0  ;;  %2391 = vmatmul.mubr.bf16.gmra.mxu0 %v4828_v16 }
  0xfe   : > { %v3602_v60 = vpop.f32.mrf.mxu1  ;;  %2700 = vmatmul.mubr.bf16.gmra.mxu1 %v4826_v15  ;;  %2398 = vmatprep.mubr.bf16.mxu0 %v4833_v18  ;;  %v3362_v18 = vcombine.low %v4840_v19, %v2446_v50 }
  0xff   : > { %v4879_v45 = vadd.f32 %v3601_v58, %v3537_v57  ;;  %2707 = vmatprep.mubr.bf16.mxu1 %v4831_v17  ;;  %v3539_v46 = vpop.f32.mrf.mxu0  ;;  %v3300_v17 = vcombine.low %v4818_v12, %v4840_v19 }
 0x100   : > { %v3603_v61 = vpop.f32.mrf.mxu1  ;;  %v3540_v49 = vadd.f32 %v3539_v46, %v3538_v59 }
 0x101   : > { %v3604_v55 = vadd.f32 %v3603_v61, %v3602_v60  ;;  %v3541_v56 = vpop.f32.mrf.mxu0 }
 0x102   : > { %v3605_v62 = vpop.f32.mrf.mxu1 }
 0x103   : > { %v4884_v63 = vadd.f32 %v3604_v55, %v3540_v49  ;;  %v3542_v0 = vpop.f32.mrf.mxu0 }
 0x104   : > { %v3606_v3 = vpop.f32.mrf.mxu1  ;;  %v3543_v4 = vadd.f32 %v3542_v0, %v3541_v56 }
 0x105   : > { %v3607_v5 = vadd.f32 %v3606_v3, %v3605_v62  ;;  %v3544_v6 = vpop.f32.mrf.mxu0  ;;  %2399 = vmatmul.mubr.bf16.gmra.mxu0 %v4845_v21  ;;  %v3303_v21 = vcombine.high %v2446_v50, %v2446_v50 }
 0x106   : > { %v3608_v7 = vpop.f32.mrf.mxu1  ;;  %2708 = vmatmul.mubr.bf16.gmra.mxu1 %v4843_v20  ;;  %2406 = vmatprep.mubr.bf16.mxu0 %v3301_v2  ;;  %v3365_v20 = vcombine.high %v2447_v11, %v2447_v11 }
 0x107   : > { %v4891_v8 = vadd.f32 %v3607_v5, %v3543_v4  ;;  %2715 = vmatprep.mubr.bf16.mxu1 %v3363_v1  ;;  %v3545_v9 = vpop.f32.mrf.mxu0 }
 0x108   : > { %v3609_v10 = vpop.f32.mrf.mxu1  ;;  %v3546_v13 = vadd.f32 %v3545_v9, %v3544_v6 }
 0x109   : > { %v3610_v14 = vadd.f32 %v3609_v10, %v3608_v7  ;;  %v3547_v15 = vpop.f32.mrf.mxu0 }
 0x10a   : > { %v3611_v16 = vpop.f32.mrf.mxu1 }
 0x10b   : > { %v4897_v22 = vadd.f32 %v3610_v14, %v3546_v13  ;;  %v3548_v23 = vpop.f32.mrf.mxu0 }
 0x10c   : > { %v3612_v24 = vpop.f32.mrf.mxu1  ;;  %v3549_v25 = vadd.f32 %v3548_v23, %v3547_v15 }
 0x10d   : > { %v3613_v26 = vadd.f32 %v3612_v24, %v3611_v16  ;;  %v3550_v27 = vpop.f32.mrf.mxu0  ;;  %2407 = vmatmul.mubr.bf16.gmra.mxu0 %v3300_v17 }
 0x10e   : > { %v3614_v28 = vpop.f32.mrf.mxu1  ;;  %2716 = vmatmul.mubr.bf16.gmra.mxu1 %v3362_v18  ;;  %2414 = vmatprep.mubr.bf16.mxu0 %v3303_v21 }
 0x10f   : > { %v4899_v29 = vadd.f32 %v3613_v26, %v3549_v25  ;;  %2723 = vmatprep.mubr.bf16.mxu1 %v3365_v20  ;;  %v3551_v30 = vpop.f32.mrf.mxu0 }
 0x110   : > { %v3615_v12 = vpop.f32.mrf.mxu1  ;;  %v3552_v31 = vadd.f32 %v3551_v30, %v3550_v27 }
 0x111   : > { %v3616_v19 = vadd.f32 %v3615_v12, %v3614_v28  ;;  %v3553_v32 = vpop.f32.mrf.mxu0 }
 0x112   : > { %v3617_v33 = vpop.f32.mrf.mxu1 }
 0x113   : > { %v4901_v37 = vadd.f32 %v3616_v19, %v3552_v31  ;;  %v3554_v38 = vpop.f32.mrf.mxu0 }
 0x114   : > { %v3618_v39 = vpop.f32.mrf.mxu1  ;;  %v3555_v40 = vadd.f32 %v3554_v38, %v3553_v32 }
 0x115   : > { %v3619_v42 = vadd.f32 %v3618_v39, %v3617_v33  ;;  %v3556_v43 = vpop.f32.mrf.mxu0  ;;  %2415 = vmatmul.mubr.bf16.gmra.mxu0 %v3302_v35  ;;  %v4921_v39 = vld [vmem:[%s5143_s2] ss:$0 sm:$0xff] }
 0x116   : > { %v3620_v44 = vpop.f32.mrf.mxu1  ;;  %2724 = vmatmul.mubr.bf16.gmra.mxu1 %v3364_v36 }
 0x117   : > { %v4903_v47 = vadd.f32 %v3619_v42, %v3555_v40  ;;  %v3557_v48 = vpop.f32.mrf.mxu0 }
 0x118   : > { %v3621_v51 = vpop.f32.mrf.mxu1  ;;  %v3558_v53 = vadd.f32 %v3557_v48, %v3556_v43 }
 0x119   : > { %v3622_v54 = vadd.f32 %v3621_v51, %v3620_v44  ;;  %v3559_v57 = vpop.f32.mrf.mxu0 }
 0x11a   : > { %v3623_v58 = vpop.f32.mrf.mxu1 }
 0x11b   : > { %v4905_v59 = vadd.f32 %v3622_v54, %v3558_v53  ;;  %v3560_v60 = vpop.f32.mrf.mxu0 }
 0x11c   : > { %v3624_v46 = vpop.f32.mrf.mxu1  ;;  %v3561_v61 = vadd.f32 %v3560_v60, %v3559_v57 }
 0x11d   : > { %v3625_v50 = vadd.f32 %v3624_v46, %v3623_v58  ;;  %v3562_v49 = vpop.f32.mrf.mxu0 }
 0x11e   : > { %v3626_v55 = vpop.f32.mrf.mxu1 }
 0x11f   : > { %v4907_v56 = vadd.f32 %v3625_v50, %v3561_v61  ;;  %v3563_v62 = vpop.f32.mrf.mxu0 }
 0x120   : > { %v3627_v2 = vpop.f32.mrf.mxu1  ;;  %v3564_v1 = vadd.f32 %v3563_v62, %v3562_v49 }
 0x121   : > { %v3628_v0 = vadd.f32 %v3627_v2, %v3626_v55  ;;  %v3565_v3 = vpop.f32.mrf.mxu0 }
 0x122   : > { %v3629_v4 = vpop.f32.mrf.mxu1 }
 0x123   : > { %v4909_v5 = vadd.f32 %v3628_v0, %v3564_v1  ;;  %v3566_v6 = vpop.f32.mrf.mxu0 }
 0x124   : > { %v3630_v7 = vpop.f32.mrf.mxu1  ;;  %v3567_v9 = vadd.f32 %v3566_v6, %v3565_v3 }
 0x125   : > { %v3631_v10 = vadd.f32 %v3630_v7, %v3629_v4  ;;  %v3568_v11 = vpop.f32.mrf.mxu0 }
 0x126   : > { %v3632_v13 = vpop.f32.mrf.mxu1 }
 0x127   : > { %v4911_v14 = vadd.f32 %v3631_v10, %v3567_v9  ;;  %v3569_v15 = vpop.f32.mrf.mxu0 }
 0x128   : > { %v3633_v16 = vpop.f32.mrf.mxu1  ;;  %v3570_v17 = vadd.f32 %v3569_v15, %v3568_v11 }
 0x129   : > { %v3634_v18 = vadd.f32 %v3633_v16, %v3632_v13  ;;  %v3571_v21 = vpop.f32.mrf.mxu0 }
 0x12a   : > { %v3635_v20 = vpop.f32.mrf.mxu1 }
 0x12b   : > { %v4913_v23 = vadd.f32 %v3634_v18, %v3570_v17  ;;  %v3572_v24 = vpop.f32.mrf.mxu0 }
 0x12c   : > { %v3636_v25 = vpop.f32.mrf.mxu1  ;;  %v3573_v26 = vadd.f32 %v3572_v24, %v3571_v21 }
 0x12d   : > { %v3637_v27 = vadd.f32 %v3636_v25, %v3635_v20  ;;  %v3654_v28 = vpop.f32.mrf.mxu0 }
 0x12e   : > { %v3718_v30 = vpop.f32.mrf.mxu1 }
 0x12f   : > { %v4915_v12 = vadd.f32 %v3637_v27, %v3573_v26  ;;  %v3655_v31 = vpop.f32.mrf.mxu0 }
 0x130   : > { %v3719_v19 = vpop.f32.mrf.mxu1  ;;  %v3656_v32 = vadd.f32 %v3655_v31, %v3654_v28 }
 0x131   : > { %v3657_v33 = vpop.f32.mrf.mxu0  ;;  %v3720_v38 = vadd.f32 %v3719_v19, %v3718_v30 }
 0x132   : > { %v3721_v35 = vpop.f32.mrf.mxu1  ;;  %v1078_v36 = vadd.f32 %v3656_v32, %v4867_v34 }
 0x133   : > { %v3658_v40 = vpop.f32.mrf.mxu0 }
 0x134   : > { %v3722_v42 = vpop.f32.mrf.mxu1  ;;  %v1416_v43 = vadd.f32 %v3720_v38, %v1078_v36  ;;  %v3659_v44 = vadd.f32 %v3658_v40, %v3657_v33 }
 0x135   : > { %v3660_v48 = vpop.f32.mrf.mxu0  ;;  %v3723_v57 = vadd.f32 %v3722_v42, %v3721_v35 }
 0x136   : > { %v3724_v51 = vpop.f32.mrf.mxu1  ;;  %v1438_v53 = vadd.f32 %v4921_v39, %v1416_v43  ;;  %v1079_v54 = vadd.f32 %v3659_v44, %v4871_v41 }
 0x137   : > { %v3661_v58 = vpop.f32.mrf.mxu0 }
 0x138   : > { %v3725_v34 = vpop.f32.mrf.mxu1  ;;  %v1417_v60 = vadd.f32 %v3723_v57, %v1079_v54  ;;  %v3662_v46 = vadd.f32 %v3661_v58, %v3660_v48  ;;  %v1470_v61 = vmul.f32 0.01, %v1438_v53  ;;  %vm1454_vm0 = vcmp.gt.f32.partialorder %v1438_v53, 0.0 }
 0x139   : > { %v3663_v50 = vpop.f32.mrf.mxu0  ;;  %v3726_v2 = vadd.f32 %v3725_v34, %v3724_v51 }
 0x13a   : > { %v3727_v49 = vpop.f32.mrf.mxu1  ;;  %v1439_v55 = vadd.f32 %v4921_v39, %v1417_v60  ;;  %v1080_v62 = vadd.f32 %v3662_v46, %v4875_v52  ;;  %v1486_v6 = vsel %vm1454_vm0, %v1438_v53, %v1470_v61 }
 0x13b   : > { %v3664_v1 = vpop.f32.mrf.mxu0 }
 0x13c   : > { %v3728_v0 = vpop.f32.mrf.mxu1  ;;  %vm1455_vm1 = vcmp.gt.f32.partialorder %v1439_v55, 0.0  ;;  %v1471_v3 = vmul.f32 0.01, %v1439_v55  ;;  %v1418_v41 = vadd.f32 %v3726_v2, %v1080_v62  ;;  %v3665_v4 = vadd.f32 %v3664_v1, %v3663_v50 }
 0x13d   : > { %v3666_v7 = vpop.f32.mrf.mxu0  ;;  %v3729_v13 = vadd.f32 %v3728_v0, %v3727_v49 }
 0x13e   : > { %v3730_v9 = vpop.f32.mrf.mxu1  ;;  %v1487_v10 = vsel %vm1455_vm1, %v1439_v55, %v1471_v3  ;;  %v1440_v11 = vadd.f32 %v4921_v39, %v1418_v41  ;;  %v1081_v52 = vadd.f32 %v3665_v4, %v4879_v45 }
 0x13f   : > { %v3430_v15 = vpack.c.bf16 %v1487_v10, %v1486_v6  ;;  %v3667_v16 = vpop.f32.mrf.mxu0 }
 0x140   : > { %v3731_v17 = vpop.f32.mrf.mxu1  ;;  %v1419_v18 = vadd.f32 %v3729_v13, %v1081_v52  ;;  %v3668_v21 = vadd.f32 %v3667_v16, %v3666_v7  ;;  %v1472_v20 = vmul.f32 0.01, %v1440_v11  ;;  %vm1456_vm2 = vcmp.gt.f32.partialorder %v1440_v11, 0.0 }
 0x141   : > { %3431 = vst [vmem:[%s4931_s9] sm:$0xff] %v3430_v15   ;;  %v3669_v24 = vpop.f32.mrf.mxu0  ;;  %v3732_v28 = vadd.f32 %v3731_v17, %v3730_v9 }
 0x142   : > { %v3733_v25 = vpop.f32.mrf.mxu1  ;;  %v1441_v26 = vadd.f32 %v4921_v39, %v1419_v18  ;;  %v1082_v27 = vadd.f32 %v3668_v21, %v4884_v63  ;;  %v1488_v33 = vsel %vm1456_vm2, %v1440_v11, %v1472_v20 }
 0x143   : > { %v3670_v30 = vpop.f32.mrf.mxu0 }
 0x144   : > { %v3734_v31 = vpop.f32.mrf.mxu1  ;;  %vm1457_vm3 = vcmp.gt.f32.partialorder %v1441_v26, 0.0  ;;  %v1473_v45 = vmul.f32 0.01, %v1441_v26  ;;  %v1420_v19 = vadd.f32 %v3732_v28, %v1082_v27  ;;  %v3671_v32 = vadd.f32 %v3670_v30, %v3669_v24 }
 0x145   : > { %v3672_v35 = vpop.f32.mrf.mxu0  ;;  %v3735_v43 = vadd.f32 %v3734_v31, %v3733_v25 }
 0x146   : > { %v3736_v36 = vpop.f32.mrf.mxu1  ;;  %v1489_v38 = vsel %vm1457_vm3, %v1441_v26, %v1473_v45  ;;  %v1442_v40 = vadd.f32 %v4921_v39, %v1420_v19  ;;  %v1083_v42 = vadd.f32 %v3671_v32, %v4891_v8 }
 0x147   : > { %v3435_v44 = vpack.c.bf16 %v1489_v38, %v1488_v33  ;;  %v3673_v48 = vpop.f32.mrf.mxu0 }
 0x148   : > { %v3737_v63 = vpop.f32.mrf.mxu1  ;;  %v1421_v51 = vadd.f32 %v3735_v43, %v1083_v42  ;;  %v3674_v53 = vadd.f32 %v3673_v48, %v3672_v35  ;;  %v1474_v54 = vmul.f32 0.01, %v1442_v40  ;;  %vm1458_vm4 = vcmp.gt.f32.partialorder %v1442_v40, 0.0 }
 0x149   : > { %3497 = vst [vmem:[%s4931_s9 + $0x8] sm:$0xff] %v3435_v44   ;;  %v3675_v57 = vpop.f32.mrf.mxu0  ;;  %v3738_v46 = vadd.f32 %v3737_v63, %v3736_v36 }
 0x14a   : > { %v3739_v58 = vpop.f32.mrf.mxu1  ;;  %v1443_v34 = vadd.f32 %v4921_v39, %v1421_v51  ;;  %v1084_v60 = vadd.f32 %v3674_v53, %v4897_v22  ;;  %v1490_v62 = vsel %vm1458_vm4, %v1442_v40, %v1474_v54 }
 0x14b   : > { %v3676_v61 = vpop.f32.mrf.mxu0 }
 0x14c   : > { %v3740_v50 = vpop.f32.mrf.mxu1  ;;  %vm1459_vm5 = vcmp.gt.f32.partialorder %v1443_v34, 0.0  ;;  %v1475_v8 = vmul.f32 0.01, %v1443_v34  ;;  %v1422_v49 = vadd.f32 %v3738_v46, %v1084_v60  ;;  %v3677_v55 = vadd.f32 %v3676_v61, %v3675_v57 }
 0x14d   : > { %v3678_v2 = vpop.f32.mrf.mxu0  ;;  %v3741_v4 = vadd.f32 %v3740_v50, %v3739_v58 }
 0x14e   : > { %v3742_v1 = vpop.f32.mrf.mxu1  ;;  %v1491_v0 = vsel %vm1459_vm5, %v1443_v34, %v1475_v8  ;;  %v1444_v3 = vadd.f32 %v4921_v39, %v1422_v49  ;;  %v1085_v41 = vadd.f32 %v3677_v55, %v4899_v29 }
 0x14f   : > { %v3440_v6 = vpack.c.bf16 %v1491_v0, %v1490_v62  ;;  %v3679_v7 = vpop.f32.mrf.mxu0 }
 0x150   : > { %v3743_v22 = vpop.f32.mrf.mxu1  ;;  %v1423_v9 = vadd.f32 %v3741_v4, %v1085_v41  ;;  %v3680_v10 = vadd.f32 %v3679_v7, %v3678_v2  ;;  %v1476_v11 = vmul.f32 0.01, %v1444_v3  ;;  %vm1460_vm6 = vcmp.gt.f32.partialorder %v1444_v3, 0.0 }
 0x151   : > { %3498 = vst [vmem:[%s4931_s9 + $0x10] sm:$0xff] %v3440_v6   ;;  %v3681_v52 = vpop.f32.mrf.mxu0  ;;  %v3744_v17 = vadd.f32 %v3743_v22, %v3742_v1 }
 0x152   : > { %v3745_v13 = vpop.f32.mrf.mxu1  ;;  %v1445_v15 = vadd.f32 %v4921_v39, %v1423_v9  ;;  %v1086_v16 = vadd.f32 %v3680_v10, %v4901_v37  ;;  %v1492_v25 = vsel %vm1460_vm6, %v1444_v3, %v1476_v11 }
 0x153   : > { %v3682_v18 = vpop.f32.mrf.mxu0 }
 0x154   : > { %v3746_v21 = vpop.f32.mrf.mxu1  ;;  %vm1461_vm7 = vcmp.gt.f32.partialorder %v1445_v15, 0.0  ;;  %v1477_v29 = vmul.f32 0.01, %v1445_v15  ;;  %v1424_v20 = vadd.f32 %v3744_v17, %v1086_v16  ;;  %v3683_v24 = vadd.f32 %v3682_v18, %v3681_v52 }
 0x155   : > { %v3684_v26 = vpop.f32.mrf.mxu0  ;;  %v3747_v45 = vadd.f32 %v3746_v21, %v3745_v13 }
 0x156   : > { %v3748_v27 = vpop.f32.mrf.mxu1  ;;  %v1493_v28 = vsel %vm1461_vm7, %v1445_v15, %v1477_v29  ;;  %v1446_v30 = vadd.f32 %v4921_v39, %v1424_v20  ;;  %v1087_v31 = vadd.f32 %v3683_v24, %v4903_v47 }
 0x157   : > { %v3445_v19 = vpack.c.bf16 %v1493_v28, %v1492_v25  ;;  %v3685_v32 = vpop.f32.mrf.mxu0 }
 0x158   : > { %v3749_v37 = vpop.f32.mrf.mxu1  ;;  %v1425_v33 = vadd.f32 %v3747_v45, %v1087_v31  ;;  %v3686_v35 = vadd.f32 %v3685_v32, %v3684_v26  ;;  %v1478_v36 = vmul.f32 0.01, %v1446_v30  ;;  %vm1462_vm8 = vcmp.gt.f32.partialorder %v1446_v30, 0.0 }
 0x159   : > { %3499 = vst [vmem:[%s4931_s9 + $0x18] sm:$0xff] %v3445_v19   ;;  %v3687_v38 = vpop.f32.mrf.mxu0  ;;  %v3750_v44 = vadd.f32 %v3749_v37, %v3748_v27 }
 0x15a   : > { %v3751_v40 = vpop.f32.mrf.mxu1  ;;  %v1447_v42 = vadd.f32 %v4921_v39, %v1425_v33  ;;  %v1088_v43 = vadd.f32 %v3686_v35, %v4905_v59  ;;  %v1494_v54 = vsel %vm1462_vm8, %v1446_v30, %v1478_v36 }
 0x15b   : > { %v3688_v48 = vpop.f32.mrf.mxu0 }
 0x15c   : > { %v3752_v63 = vpop.f32.mrf.mxu1  ;;  %vm1463_vm9 = vcmp.gt.f32.partialorder %v1447_v42, 0.0  ;;  %v1479_v47 = vmul.f32 0.01, %v1447_v42  ;;  %v1426_v51 = vadd.f32 %v3750_v44, %v1088_v43  ;;  %v3689_v53 = vadd.f32 %v3688_v48, %v3687_v38 }
 0x15d   : > { %v3690_v57 = vpop.f32.mrf.mxu0  ;;  %v3753_v61 = vadd.f32 %v3752_v63, %v3751_v40 }
 0x15e   : > { %v3754_v58 = vpop.f32.mrf.mxu1  ;;  %v1495_v34 = vsel %vm1463_vm9, %v1447_v42, %v1479_v47  ;;  %v1448_v60 = vadd.f32 %v4921_v39, %v1426_v51  ;;  %v1089_v46 = vadd.f32 %v3689_v53, %v4907_v56 }
 0x15f   : > { %v3450_v50 = vpack.c.bf16 %v1495_v34, %v1494_v54  ;;  %v3691_v8 = vpop.f32.mrf.mxu0 }
 0x160   : > { %v3755_v59 = vpop.f32.mrf.mxu1  ;;  %v1427_v49 = vadd.f32 %v3753_v61, %v1089_v46  ;;  %v3692_v55 = vadd.f32 %v3691_v8, %v3690_v57  ;;  %v1480_v62 = vmul.f32 0.01, %v1448_v60  ;;  %vm1464_vm10 = vcmp.gt.f32.partialorder %v1448_v60, 0.0 }
 0x161   : > { %3500 = vst [vmem:[%s4931_s9 + $0x20] sm:$0xff] %v3450_v50   ;;  %v3693_v2 = vpop.f32.mrf.mxu0  ;;  %v3756_v41 = vadd.f32 %v3755_v59, %v3754_v58 }
 0x162   : > { %v3757_v1 = vpop.f32.mrf.mxu1  ;;  %v1449_v0 = vadd.f32 %v4921_v39, %v1427_v49  ;;  %v1090_v3 = vadd.f32 %v3692_v55, %v4909_v5  ;;  %v1496_v9 = vsel %vm1464_vm10, %v1448_v60, %v1480_v62 }
 0x163   : > { %v3694_v4 = vpop.f32.mrf.mxu0 }
 0x164   : > { %v3758_v6 = vpop.f32.mrf.mxu1  ;;  %vm1465_vm11 = vcmp.gt.f32.partialorder %v1449_v0, 0.0  ;;  %v1481_v56 = vmul.f32 0.01, %v1449_v0  ;;  %v1428_v7 = vadd.f32 %v3756_v41, %v1090_v3  ;;  %v3695_v22 = vadd.f32 %v3694_v4, %v3693_v2 }
 0x165   : > { %v3696_v10 = vpop.f32.mrf.mxu0  ;;  %v3759_v16 = vadd.f32 %v3758_v6, %v3757_v1 }
 0x166   : > { %v3760_v11 = vpop.f32.mrf.mxu1  ;;  %v1497_v52 = vsel %vm1465_vm11, %v1449_v0, %v1481_v56  ;;  %v1450_v13 = vadd.f32 %v4921_v39, %v1428_v7  ;;  %v1091_v15 = vadd.f32 %v3695_v22, %v4911_v14 }
 0x167   : > { %v3455_v17 = vpack.c.bf16 %v1497_v52, %v1496_v9  ;;  %v3697_v18 = vpop.f32.mrf.mxu0 }
 0x168   : > { %v3761_v5 = vpop.f32.mrf.mxu1  ;;  %v1429_v21 = vadd.f32 %v3759_v16, %v1091_v15  ;;  %v3698_v29 = vadd.f32 %v3697_v18, %v3696_v10  ;;  %v1482_v20 = vmul.f32 0.01, %v1450_v13  ;;  %vm1466_vm12 = vcmp.gt.f32.partialorder %v1450_v13, 0.0 }
 0x169   : > { %3501 = vst [vmem:[%s4931_s9 + $0x28] sm:$0xff] %v3455_v17   ;;  %v3699_v24 = vpop.f32.mrf.mxu0  ;;  %v3762_v28 = vadd.f32 %v3761_v5, %v3760_v11 }
 0x16a   : > { %v3763_v25 = vpop.f32.mrf.mxu1  ;;  %v1451_v26 = vadd.f32 %v4921_v39, %v1429_v21  ;;  %v1092_v27 = vadd.f32 %v3698_v29, %v4913_v23  ;;  %v1498_v32 = vsel %vm1466_vm12, %v1450_v13, %v1482_v20 }
 0x16b   : > { %v3700_v30 = vpop.f32.mrf.mxu0 }
 0x16c   : > { %v3764_v31 = vpop.f32.mrf.mxu1  ;;  %vm1467_vm13 = vcmp.gt.f32.partialorder %v1451_v26, 0.0  ;;  %v1483_v14 = vmul.f32 0.01, %v1451_v26  ;;  %v1430_v45 = vadd.f32 %v3762_v28, %v1092_v27  ;;  %v3701_v19 = vadd.f32 %v3700_v30, %v3699_v24 }
 0x16d   : > { %v4963_v37 = vpop.f32.mrf.mxu0  ;;  %v3765_v40 = vadd.f32 %v3764_v31, %v3763_v25 }
 0x16e   : > { %v4965_v33 = vpop.f32.mrf.mxu1  ;;  %v1499_v35 = vsel %vm1467_vm13, %v1451_v26, %v1483_v14  ;;  %v1452_v36 = vadd.f32 %v4921_v39, %v1430_v45  ;;  %v1093_v38 = vadd.f32 %v3701_v19, %v4915_v12 }
 0x16f   : > { %v3460_v23 = vpack.c.bf16 %v1499_v35, %v1498_v32  ;;  %v4969_v42 = vpop.f32.mrf.mxu0 }
 0x170   : > { %v4971_v43 = vpop.f32.mrf.mxu1  ;;  %v1431_v44 = vadd.f32 %v3765_v40, %v1093_v38  ;;  %v1484_v47 = vmul.f32 0.01, %v1452_v36  ;;  %vm1468_vm14 = vcmp.gt.f32.partialorder %v1452_v36, 0.0 }
 0x171   : > { %3502 = vst [vmem:[%s4931_s9 + $0x30] sm:$0xff] %v3460_v23   ;;  %v4974_v48 = vpop.f32.mrf.mxu0 }
 0x172   : > { %v4976_v63 = vpop.f32.mrf.mxu1  ;;  %v1453_v51 = vadd.f32 %v4921_v39, %v1431_v44  ;;  %v1500_v34 = vsel %vm1468_vm14, %v1452_v36, %v1484_v47  ;;  %v3784_v44 = vadd.f32 %v4969_v42, %v4963_v37  ;;  %v3842_v47 = vadd.f32 %v4971_v43, %v4965_v33 }
 0x173   : > { %v3786_v53 = vpop.f32.mrf.mxu0 }
 0x174   : > { %v3844_v54 = vpop.f32.mrf.mxu1  ;;  %vm1469_vm15 = vcmp.gt.f32.partialorder %v1453_v51, 0.0  ;;  %v1485_v12 = vmul.f32 0.01, %v1453_v51 }
 0x175   : > { %v4979_v57 = vpop.f32.mrf.mxu0 }
 0x176   : > { %v4981_v58 = vpop.f32.mrf.mxu1  ;;  %v1501_v60 = vsel %vm1469_vm15, %v1453_v51, %v1485_v12 }
 0x177   : > { %v3465_v46 = vpack.c.bf16 %v1501_v60, %v1500_v34  ;;  %v4983_v61 = vpop.f32.mrf.mxu0  ;;  %v3787_v34 = vadd.f32 %v3786_v53, %v4974_v48  ;;  %v3845_v60 = vadd.f32 %v3844_v54, %v4976_v63 }
 0x178   : > { %v4985_v50 = vpop.f32.mrf.mxu1  ;;  %v3790_v33 = vadd.f32 %v4983_v61, %v4979_v57 }
 0x179   : > { %3503 = vst [vmem:[%s4931_s9 + $0x38] sm:$0xff] %v3465_v46   ;;  %v4988_v8 = vpop.f32.mrf.mxu0  ;;  %v3848_v42 = vadd.f32 %v4985_v50, %v4981_v58 }
 0x17a   : > { %v4990_v59 = vpop.f32.mrf.mxu1 }
 0x17b   : > { %v4992_v49 = vpop.f32.mrf.mxu0  ;;  %v2081_v57 = vadd.f32 %v3848_v42, %v3790_v33 }
 0x17c   : > { %v4994_v55 = vpop.f32.mrf.mxu1 }
 0x17d   : > { %v4996_v62 = vpop.f32.mrf.mxu0 }
 0x17e   : > { %v4998_v2 = vpop.f32.mrf.mxu1 }
 0x17f   : > { %v5000_v1 = vpop.f32.mrf.mxu0 }
 0x180   : > { %v5002_v0 = vpop.f32.mrf.mxu1 }
 0x181   : > { %v5004_v3 = vpop.f32.mrf.mxu0 }
 0x182   : > { %v5006_v41 = vpop.f32.mrf.mxu1 }
 0x183   : > { %v5008_v4 = vpop.f32.mrf.mxu0 }
 0x184   : > { %v5010_v6 = vpop.f32.mrf.mxu1 }
 0x185   : > { %v5012_v56 = vpop.f32.mrf.mxu0 }
 0x186   : > { %v5014_v7 = vpop.f32.mrf.mxu1 }
 0x187   : > { %v5016_v22 = vpop.f32.mrf.mxu0 }
 0x188   : > { %v5018_v9 = vpop.f32.mrf.mxu1 }
 0x189   : > { %v5020_v10 = vpop.f32.mrf.mxu0 }
 0x18a   : > { %v5022_v11 = vpop.f32.mrf.mxu1 }
 0x18b   : > { %v5024_v52 = vpop.f32.mrf.mxu0 }
 0x18c   : > { %v5026_v13 = vpop.f32.mrf.mxu1 }
 0x18d   : > { %v5028_v15 = vpop.f32.mrf.mxu0 }
 0x18e   : > { %v5030_v16 = vpop.f32.mrf.mxu1 }
 0x18f   : > { %v5032_v17 = vpop.f32.mrf.mxu0 }
 0x190   : > { %v5034_v18 = vpop.f32.mrf.mxu1 }
 0x191   : > { %v5036_v5 = vpop.f32.mrf.mxu0 }
 0x192   : > { %v5038_v21 = vpop.f32.mrf.mxu1 }
 0x193   : > { %v5040_v29 = vpop.f32.mrf.mxu0 }
 0x194   : > { %v5042_v20 = vpop.f32.mrf.mxu1 }
 0x195   : > { %v5044_v24 = vpop.f32.mrf.mxu0 }
 0x196   : > { %v5046_v25 = vpop.f32.mrf.mxu1 }
 0x197   : > { %v5048_v26 = vpop.f32.mrf.mxu0 }
 0x198   : > { %v5050_v27 = vpop.f32.mrf.mxu1 }
 0x199   : > { %v5052_v28 = vpop.f32.mrf.mxu0 }
 0x19a   : > { %v5054_v30 = vpop.f32.mrf.mxu1 }
 0x19b   : > { %v5056_v31 = vpop.f32.mrf.mxu0 }
 0x19c   : > { %v5058_v14 = vpop.f32.mrf.mxu1 }
 0x19d   : > { %5145 = vst [vmem:[#allocation2_spill] sm:$0xff] %v5058_v14  ;;  %v5060_v45 = vpop.f32.mrf.mxu0 }
 0x19e   : > { %5146 = vst [vmem:[#allocation3_spill] sm:$0xff] %v5060_v45  ;;  %v5062_v19 = vpop.f32.mrf.mxu1  ;;  %v2076_v45 = vadd.f32 %v3845_v60, %v3787_v34 }
 0x19f   : > { %5147 = vst [vmem:[#allocation4_spill] sm:$0xff] %v5062_v19  ;;  %v5064_v32 = vpop.f32.mrf.mxu0 }
 0x1a0   : > { %5148 = vst [vmem:[#allocation5_spill] sm:$0xff] %v5064_v32  ;;  %v5066_v35 = vpop.f32.mrf.mxu1  ;;  %v2073_v32 = vadd.f32 %v3842_v47, %v3784_v44 }
 0x1a1   : > { %5149 = vst [vmem:[#allocation6_spill] sm:$0xff] %v5066_v35  ;;  %v3821_v36 = vpop.f32.mrf.mxu0 }
 0x1a2   : > { %v3879_v38 = vpop.f32.mrf.mxu1 }
 0x1a3   : > { %v3822_v40 = vpop.f32.mrf.mxu0 }
 0x1a4   : > { %v3880_v23 = vpop.f32.mrf.mxu1 }
 0x1a5   : > { %v3898_v51 = vpop.f32.mrf.mxu0 }
 0x1a6   : > { %v3956_v12 = vpop.f32.mrf.mxu1 }
 0x1a7   : > { %v3899_v46 = vpop.f32.mrf.mxu0 }
 0x1a8   : > { %v3957_v19 = vpop.f32.mrf.mxu1  ;;  %v3900_v35 = vadd.f32 %v3899_v46, %v3898_v51 }
 0x1a9   : > { %v3901_v36 = vpop.f32.mrf.mxu0  ;;  %v3958_v23 = vadd.f32 %v3957_v19, %v3956_v12  ;;  %v3793_v19 = vadd.f32 %v4992_v49, %v4988_v8  ;;  %v3796_v8 = vadd.f32 %v5000_v1, %v4996_v62  ;;  %v3799_v62 = vadd.f32 %v5008_v4, %v5004_v3 }
 0x1aa   : > { %v3959_v38 = vpop.f32.mrf.mxu1  ;;  %v2422_v40 = vadd.f32 %v3900_v35, %v2073_v32  ;;  %v3851_v32 = vadd.f32 %v4994_v55, %v4990_v59  ;;  %v3854_v59 = vadd.f32 %v5002_v0, %v4998_v2  ;;  %v3857_v2 = vadd.f32 %v5010_v6, %v5006_v41 }
 0x1ab   : > { %v3902_v14 = vpop.f32.mrf.mxu0  ;;  %v3802_v3 = vadd.f32 %v5016_v22, %v5012_v56  ;;  %v3860_v41 = vadd.f32 %v5018_v9, %v5014_v7  ;;  %v3805_v56 = vadd.f32 %v5024_v52, %v5020_v10  ;;  %v3863_v7 = vadd.f32 %v5026_v13, %v5022_v11 }
 0x1ac   : > { %v3960_v37 = vpop.f32.mrf.mxu1  ;;  %v2731_v43 = vadd.f32 %v3958_v23, %v2422_v40  ;;  %v3903_v48 = vadd.f32 %v3902_v14, %v3901_v36  ;;  %v2084_v46 = vadd.f32 %v3851_v32, %v3793_v19  ;;  %v3808_v10 = vadd.f32 %v5032_v17, %v5028_v15 }
 0x1ad   : > { %v3904_v63 = vpop.f32.mrf.mxu0  ;;  %v3961_v47 = vadd.f32 %v3960_v37, %v3959_v38  ;;  %v3866_v11 = vadd.f32 %v5034_v18, %v5030_v16  ;;  %v3811_v15 = vadd.f32 %v5040_v29, %v5036_v5  ;;  %v3869_v16 = vadd.f32 %v5042_v20, %v5038_v21 }
 0x1ae   : > { %v3962_v53 = vpop.f32.mrf.mxu1  ;;  %v2744_v54 = vadd.f32 %v4921_v39, %v2731_v43  ;;  %v2423_v44 = vadd.f32 %v3903_v48, %v2076_v45  ;;  %v3814_v5 = vadd.f32 %v5048_v26, %v5044_v24  ;;  %v3872_v21 = vadd.f32 %v5050_v27, %v5046_v25  ;;  %v5150_v25 = vld [vmem:[#allocation2_spill] sm:$0xff] }
 0x1af   : > { %v3905_v35 = vpop.f32.mrf.mxu0  ;;  %v3817_v24 = vadd.f32 %v5056_v31, %v5052_v28  ;;  %v3875_v26 = vadd.f32 %v5150_v25, %v5054_v30  ;;  %v5151_v28 = vld [vmem:[#allocation3_spill] sm:$0xff]  ;;  %v5152_v31 = vld [vmem:[#allocation5_spill] sm:$0xff]  ;;  %v5153_v30 = vld [vmem:[#allocation4_spill] sm:$0xff] }
 0x1b0   : > { %v3963_v51 = vpop.f32.mrf.mxu1  ;;  %v2732_v61 = vadd.f32 %v3961_v47, %v2423_v44  ;;  %v3906_v12 = vadd.f32 %v3905_v35, %v3904_v63  ;;  %v2770_v58 = vmul.f32 0.01, %v2744_v54  ;;  %vm2757_vm0 = vcmp.gt.f32.partialorder %v2744_v54, 0.0 }
 0x1b1   : > { %v3907_v50 = vpop.f32.mrf.mxu0  ;;  %v3964_v45 = vadd.f32 %v3963_v51, %v3962_v53  ;;  %v2089_v44 = vadd.f32 %v3854_v59, %v3796_v8 }
 0x1b2   : > { %v3965_v14 = vpop.f32.mrf.mxu1  ;;  %v2745_v34 = vadd.f32 %v4921_v39, %v2732_v61  ;;  %v2424_v60 = vadd.f32 %v3906_v12, %v2081_v57  ;;  %v2783_v23 = vsel %vm2757_vm0, %v2744_v54, %v2770_v58  ;;  %v2092_v12 = vadd.f32 %v3857_v2, %v3799_v62 }
 0x1b3   : > { %v3908_v49 = vpop.f32.mrf.mxu0 }
 0x1b4   : > { %v3966_v55 = vpop.f32.mrf.mxu1  ;;  %vm2758_vm1 = vcmp.gt.f32.partialorder %v2745_v34, 0.0  ;;  %v2771_v36 = vmul.f32 0.01, %v2745_v34  ;;  %v2733_v38 = vadd.f32 %v3964_v45, %v2424_v60  ;;  %v3909_v40 = vadd.f32 %v3908_v49, %v3907_v50 }
 0x1b5   : > { %v3910_v37 = vpop.f32.mrf.mxu0  ;;  %v3967_v63 = vadd.f32 %v3966_v55, %v3965_v14 }
 0x1b6   : > { %v3968_v33 = vpop.f32.mrf.mxu1  ;;  %v2784_v42 = vsel %vm2758_vm1, %v2745_v34, %v2771_v36  ;;  %v2746_v43 = vadd.f32 %v4921_v39, %v2733_v38  ;;  %v2425_v48 = vadd.f32 %v3909_v40, %v2084_v46  ;;  %v2097_v36 = vadd.f32 %v3860_v41, %v3802_v3 }
 0x1b7   : > { %v3470_v1 = vpack.c.bf16 %v2784_v42, %v2783_v23  ;;  %v3911_v0 = vpop.f32.mrf.mxu0 }
 0x1b8   : > { %v3969_v53 = vpop.f32.mrf.mxu1  ;;  %v2734_v47 = vadd.f32 %v3967_v63, %v2425_v48  ;;  %v3912_v19 = vadd.f32 %v3911_v0, %v3910_v37  ;;  %v2772_v54 = vmul.f32 0.01, %v2746_v43  ;;  %vm2759_vm2 = vcmp.gt.f32.partialorder %v2746_v43, 0.0 }
 0x1b9   : > { %3504 = vst [vmem:[%s4931_s9 + $0x40] sm:$0xff] %v3470_v1   ;;  %v3913_v32 = vpop.f32.mrf.mxu0  ;;  %v3970_v61 = vadd.f32 %v3969_v53, %v3968_v33  ;;  %v2100_v63 = vadd.f32 %v3863_v7, %v3805_v56 }
 0x1ba   : > { %v3971_v35 = vpop.f32.mrf.mxu1  ;;  %v2747_v51 = vadd.f32 %v4921_v39, %v2734_v47  ;;  %v2426_v57 = vadd.f32 %v3912_v19, %v2089_v44  ;;  %v2785_v34 = vsel %vm2759_vm2, %v2746_v43, %v2772_v54 }
 0x1bb   : > { %v3914_v4 = vpop.f32.mrf.mxu0 }
 0x1bc   : > { %v3972_v6 = vpop.f32.mrf.mxu1  ;;  %vm2760_vm3 = vcmp.gt.f32.partialorder %v2747_v51, 0.0  ;;  %v2773_v58 = vmul.f32 0.01, %v2747_v51  ;;  %v2735_v50 = vadd.f32 %v3970_v61, %v2426_v57  ;;  %v3915_v14 = vadd.f32 %v3914_v4, %v3913_v32 }
 0x1bd   : > { %v3916_v60 = vpop.f32.mrf.mxu0  ;;  %v3973_v49 = vadd.f32 %v3972_v6, %v3971_v35 }
 0x1be   : > { %v3974_v45 = vpop.f32.mrf.mxu1  ;;  %v2786_v46 = vsel %vm2760_vm3, %v2747_v51, %v2773_v58  ;;  %v2748_v8 = vadd.f32 %v4921_v39, %v2735_v50  ;;  %v2427_v59 = vadd.f32 %v3915_v14, %v2092_v12  ;;  %v2105_v51 = vadd.f32 %v3866_v11, %v3808_v10  ;;  %v5154_v10 = vld [vmem:[#allocation6_spill] sm:$0xff] }
 0x1bf   : > { %v3475_v22 = vpack.c.bf16 %v2786_v46, %v2785_v34  ;;  %v3917_v9 = vpop.f32.mrf.mxu0  ;;  %v2108_v50 = vadd.f32 %v3869_v16, %v3811_v15  ;;  %v3878_v11 = vadd.f32 %v5154_v10, %v5153_v30 }
 0x1c0   : > { %v3975_v55 = vpop.f32.mrf.mxu1  ;;  %v2736_v38 = vadd.f32 %v3973_v49, %v2427_v59  ;;  %v3918_v40 = vadd.f32 %v3917_v9, %v3916_v60  ;;  %v2774_v23 = vmul.f32 0.01, %v2748_v8  ;;  %vm2761_vm4 = vcmp.gt.f32.partialorder %v2748_v8, 0.0 }
 0x1c1   : > { %3505 = vst [vmem:[%s4931_s9 + $0x48] sm:$0xff] %v3475_v22   ;;  %v3919_v37 = vpop.f32.mrf.mxu0  ;;  %v3976_v48 = vadd.f32 %v3975_v55, %v3974_v45  ;;  %v2113_v55 = vadd.f32 %v3872_v21, %v3814_v5 }
 0x1c2   : > { %v3977_v33 = vpop.f32.mrf.mxu1  ;;  %v2749_v42 = vadd.f32 %v4921_v39, %v2736_v38  ;;  %v2428_v43 = vadd.f32 %v3918_v40, %v2097_v36  ;;  %v2787_v0 = vsel %vm2761_vm4, %v2748_v8, %v2774_v23 }
 0x1c3   : > { %v3920_v52 = vpop.f32.mrf.mxu0 }
 0x1c4   : > { %v3978_v13 = vpop.f32.mrf.mxu1  ;;  %vm2762_vm5 = vcmp.gt.f32.partialorder %v2749_v42, 0.0  ;;  %v2775_v62 = vmul.f32 0.01, %v2749_v42  ;;  %v2737_v2 = vadd.f32 %v3976_v48, %v2428_v43  ;;  %v3921_v1 = vadd.f32 %v3920_v52, %v3919_v37 }
 0x1c5   : > { %v3922_v53 = vpop.f32.mrf.mxu0  ;;  %v3979_v32 = vadd.f32 %v3978_v13, %v3977_v33  ;;  %v2116_v48 = vadd.f32 %v3875_v26, %v3817_v24 }
 0x1c6   : > { %v3980_v44 = vpop.f32.mrf.mxu1  ;;  %v2788_v47 = vsel %vm2762_vm5, %v2749_v42, %v2775_v62  ;;  %v2750_v19 = vadd.f32 %v4921_v39, %v2737_v2  ;;  %v2429_v54 = vadd.f32 %v3921_v1, %v2100_v63  ;;  %v3820_v63 = vadd.f32 %v5152_v31, %v5151_v28 }
 0x1c7   : > { %v3480_v17 = vpack.c.bf16 %v2788_v47, %v2787_v0  ;;  %v3923_v18 = vpop.f32.mrf.mxu0 }
 0x1c8   : > { %v3981_v35 = vpop.f32.mrf.mxu1  ;;  %v2738_v57 = vadd.f32 %v3979_v32, %v2429_v54  ;;  %v3924_v61 = vadd.f32 %v3923_v18, %v3922_v53  ;;  %v2776_v12 = vmul.f32 0.01, %v2750_v19  ;;  %vm2763_vm6 = vcmp.gt.f32.partialorder %v2750_v19, 0.0 }
 0x1c9   : > { %3506 = vst [vmem:[%s4931_s9 + $0x50] sm:$0xff] %v3480_v17   ;;  %v3925_v3 = vpop.f32.mrf.mxu0  ;;  %v3982_v58 = vadd.f32 %v3981_v35, %v3980_v44  ;;  %v2121_v18 = vadd.f32 %v3878_v11, %v3820_v63 }
 0x1ca   : > { %v3983_v41 = vpop.f32.mrf.mxu1  ;;  %v2751_v4 = vadd.f32 %v4921_v39, %v2738_v57  ;;  %v2430_v6 = vadd.f32 %v3924_v61, %v2105_v51  ;;  %v2789_v45 = vsel %vm2763_vm6, %v2750_v19, %v2776_v12 }
 0x1cb   : > { %v3926_v29 = vpop.f32.mrf.mxu0 }
 0x1cc   : > { %v3984_v20 = vpop.f32.mrf.mxu1  ;;  %vm2764_vm7 = vcmp.gt.f32.partialorder %v2751_v4, 0.0  ;;  %v2777_v14 = vmul.f32 0.01, %v2751_v4  ;;  %v2739_v34 = vadd.f32 %v3982_v58, %v2430_v6  ;;  %v3927_v60 = vadd.f32 %v3926_v29, %v3925_v3 }
 0x1cd   : > { %v3928_v46 = vpop.f32.mrf.mxu0  ;;  %v3985_v7 = vadd.f32 %v3984_v20, %v3983_v41 }
 0x1ce   : > { %v3986_v8 = vpop.f32.mrf.mxu1  ;;  %v2790_v59 = vsel %vm2764_vm7, %v2751_v4, %v2777_v14  ;;  %v2752_v49 = vadd.f32 %v4921_v39, %v2739_v34  ;;  %v2431_v56 = vadd.f32 %v3927_v60, %v2108_v50 }
 0x1cf   : > { %v3485_v27 = vpack.c.bf16 %v2790_v59, %v2789_v45  ;;  %v3929_v22 = vpop.f32.mrf.mxu0 }
 0x1d0   : > { %v3987_v9 = vpop.f32.mrf.mxu1  ;;  %v2740_v36 = vadd.f32 %v3985_v7, %v2431_v56  ;;  %v3930_v38 = vadd.f32 %v3929_v22, %v3928_v46  ;;  %v2778_v40 = vmul.f32 0.01, %v2752_v49  ;;  %vm2765_vm8 = vcmp.gt.f32.partialorder %v2752_v49, 0.0 }
 0x1d1   : > { %3507 = vst [vmem:[%s4931_s9 + $0x58] sm:$0xff] %v3485_v27   ;;  %v3931_v23 = vpop.f32.mrf.mxu0  ;;  %v3988_v43 = vadd.f32 %v3987_v9, %v3986_v8 }
 0x1d2   : > { %v3989_v37 = vpop.f32.mrf.mxu1  ;;  %v2753_v33 = vadd.f32 %v4921_v39, %v2740_v36  ;;  %v2432_v42 = vadd.f32 %v3930_v38, %v2113_v55  ;;  %v2791_v0 = vsel %vm2765_vm8, %v2752_v49, %v2778_v40 }
 0x1d3   : > { %v3932_v52 = vpop.f32.mrf.mxu0 }
 0x1d4   : > { %v3990_v13 = vpop.f32.mrf.mxu1  ;;  %vm2766_vm9 = vcmp.gt.f32.partialorder %v2753_v33, 0.0  ;;  %v2779_v62 = vmul.f32 0.01, %v2753_v33  ;;  %v2741_v2 = vadd.f32 %v3988_v43, %v2432_v42  ;;  %v3933_v1 = vadd.f32 %v3932_v52, %v3931_v23 }
 0x1d5   : > { %v3934_v53 = vpop.f32.mrf.mxu0  ;;  %v3991_v32 = vadd.f32 %v3990_v13, %v3989_v37 }
 0x1d6   : > { %v3992_v44 = vpop.f32.mrf.mxu1  ;;  %v2792_v47 = vsel %vm2766_vm9, %v2753_v33, %v2779_v62  ;;  %v2754_v19 = vadd.f32 %v4921_v39, %v2741_v2  ;;  %v2433_v54 = vadd.f32 %v3933_v1, %v2116_v48 }
 0x1d7   : > { %v3490_v15 = vpack.c.bf16 %v2792_v47, %v2791_v0  ;;  %v3935_v16 = vpop.f32.mrf.mxu0 }
 0x1d8   : > { %v3993_v17 = vpop.f32.mrf.mxu1  ;;  %v2742_v35 = vadd.f32 %v3991_v32, %v2433_v54  ;;  %v3936_v51 = vadd.f32 %v3935_v16, %v3934_v53  ;;  %v2780_v12 = vmul.f32 0.01, %v2754_v19  ;;  %vm2767_vm10 = vcmp.gt.f32.partialorder %v2754_v19, 0.0 }
 0x1d9   : > { %3508 = vst [vmem:[%s4931_s9 + $0x60] sm:$0xff] %v3490_v15   ;;  %v3937_v57 = vpop.f32.mrf.mxu0  ;;  %v3994_v4 = vadd.f32 %v3993_v17, %v3992_v44 }
 0x1da   : > { %v3995_v61 = vpop.f32.mrf.mxu1  ;;  %v2755_v3 = vadd.f32 %v4921_v39, %v2742_v35  ;;  %v2434_v41 = vadd.f32 %v3936_v51, %v2121_v18  ;;  %v2793_v21 = vsel %vm2767_vm10, %v2754_v19, %v2780_v12 }
 0x1db   : > { %v3938_v6 = vpop.f32.mrf.mxu0 }
 0x1dc   : > { %v3996_v58 = vpop.f32.mrf.mxu1  ;;  %vm2768_vm11 = vcmp.gt.f32.partialorder %v2755_v3, 0.0  ;;  %v2781_v50 = vmul.f32 0.01, %v2755_v3  ;;  %v2743_v5 = vadd.f32 %v3994_v4, %v2434_v41 }
 0x1de   : > { %v2794_v29 = vsel %vm2768_vm11, %v2755_v3, %v2781_v50  ;;  %v2756_v20 = vadd.f32 %v4921_v39, %v2743_v5 }
 0x1df   : > { %v3495_v14 = vpack.c.bf16 %v2794_v29, %v2793_v21 }
 0x1e0   : > { %vm2769_vm12 = vcmp.gt.f32.partialorder %v2756_v20, 0.0  ;;  %v2782_v34 = vmul.f32 0.01, %v2756_v20 }
 0x1e1   : > { %3509 = vst [vmem:[%s4931_s9 + $0x68] sm:$0xff] %v3495_v14  }
 0x1e2   : > { %v2795_v60 = vsel %vm2769_vm12, %v2756_v20, %v2782_v34 }
 0x1e3   : > { %v3426_v45 = vpack.c.bf16 %v2795_v60, %v2795_v60 }
 0x1e5   : > { %2861 = vst [vmem:[%s4931_s9 + $0x70] sm:$0xf] %v3426_v45 }
 0x1e6 PF: > { %s13_s12 = sadd.s32 1, %s4209_s12  }
 0x1e7   : > { %p10_p4 = scmp.ge.s32.totalorder %s13_s12, 4  }
 0x1e9   :  { %12 = sbr.rel (!%p10_p4) target bundleno = 1 (0x1), region = 65 }

// kernel: conv_critic_forward.6
= control target key start
LH: loop header
LB: loop body
LE: loop exit
PB: predicated region body
PF: predicated region fallthrough
CT: control target
= control target key end

     0   :  { %s2995_s12 = smov 0   ;;  %s3699_s0 = inlined_call_operand.vmem [shape: bf16[2,56,1024], index: 0, kind: input, shape index: {}]   ;;  %s3700_s1 = inlined_call_operand.vmem [shape: bf16[2,1024,128], index: 1, kind: input, shape index: {}]   ;;  %s3701_s2 = inlined_call_operand.vmem [shape: f32[1,128], index: 2, kind: input, shape index: {}]   ;;  %s3702_s3 = inlined_call_operand.vmem [shape: bf16[2,52,128], index: 3, kind: output, shape index: {}]  }
   0x1 LB: > { %s2148_s13 = sadd.s32 4294967295, %s2973_s12   ;;  %p2152_p0 = scmp.ge.s32.totalorder %s2973_s12, 1  ;;  %s2973_s12 = sphi %s2995_s12, %s13_s12  }
   0x2   : > { %p137_p1 = scmp.lt.s32.totalorder %s2973_s12, 3 }
   0x4   : > { %p138_p2 = pnand %p2152_p0, %p137_p1 }
   0x6   : > { %141 = sbr.rel (%p138_p2) target bundleno = 374 (0x176), region = 32 }
   0xb   : > { %v2823_v0 = vld [vmem:[%s3700_s1 + $0x278] sm:$0xff]   ;;  %v2827_v4 = vld [vmem:[%s3700_s1 + $0x270] sm:$0xff]   ;;  %v2831_v8 = vld [vmem:[%s3700_s1 + $0x268] sm:$0xff]   ;;  %p161_p3 = scmp.lt.s32.totalorder %s2148_s13, 1  ;;  %vm582_vm0 = vcmask 1045504  }
   0xc   : > { %v2824_v1 = vld [vmem:[%s3700_s1 + $0x2f8] sm:$0xff]   ;;  %2493 = vmatprep.subr.bf16.mxu0 %v2823_v0  ;;  %v2828_v5 = vld [vmem:[%s3700_s1 + $0x2f0] sm:$0xff]   ;;  %v2832_v9 = vld [vmem:[%s3700_s1 + $0x2e8] sm:$0xff]  }
   0xd   : > { %v2825_v2 = vld [vmem:[%s3700_s1 + $0x238] sm:$0xff]   ;;  %2533 = vmatprep.subr.bf16.mxu1 %v2824_v1  ;;  %v2829_v6 = vld [vmem:[%s3700_s1 + $0x230] sm:$0xff]   ;;  %v2833_v10 = vld [vmem:[%s3700_s1 + $0x228] sm:$0xff]   ;;  %s3724_s13 = smov (!%p161_p3, %s2148_s13), 1 }
   0xe   : > { %v2826_v3 = vld [vmem:[%s3700_s1 + $0x2b8] sm:$0xff]   ;;  %2494 = vmatpush3.bf16.msra.mxu0 %v2825_v2  ;;  %v2830_v7 = vld [vmem:[%s3700_s1 + $0x2b0] sm:$0xff]   ;;  %v2834_v11 = vld [vmem:[%s3700_s1 + $0x2a8] sm:$0xff]   ;;  %s2813_s16 = smul.u32 224, %s3724_s13 }
   0xf   : > { %2534 = vmatpush3.bf16.msra.mxu1 %v2826_v3  ;;  %2495 = vmatprep.subr.bf16.mxu0 %v2827_v4  ;;  %v2835_v12 = vld [vmem:[%s3700_s1 + $0x260] sm:$0xff]   ;;  %v2839_v16 = vld [vmem:[%s3700_s1 + $0x258] sm:$0xff]   ;;  %v2843_v20 = vld [vmem:[%s3700_s1 + $0x250] sm:$0xff]   ;;  %s2814_s6 = smul.u32 28, %s3724_s13 }
  0x10   : > { %2535 = vmatprep.subr.bf16.mxu1 %v2828_v5  ;;  %v2836_v13 = vld [vmem:[%s3700_s1 + $0x2e0] sm:$0xff]   ;;  %v2840_v17 = vld [vmem:[%s3700_s1 + $0x2d8] sm:$0xff]   ;;  %v2844_v21 = vld [vmem:[%s3700_s1 + $0x2d0] sm:$0xff]   ;;  %s3103_s27 = scalar_lea.vmem %s3699_s0, %s2813_s16 }
  0x11   : > { %v2837_v14 = vld [vmem:[%s3700_s1 + $0x220] sm:$0xff]   ;;  %v2841_v18 = vld [vmem:[%s3700_s1 + $0x218] sm:$0xff]   ;;  %v2845_v22 = vld [vmem:[%s3700_s1 + $0x210] sm:$0xff]   ;;  %s3677_s8 = scalar_lea.vmem %s3702_s3, %s2814_s6 }
  0x12   : > { %2496 = vmatpush3.bf16.msra.mxu0 %v2829_v6  ;;  %v2838_v15 = vld [vmem:[%s3700_s1 + $0x2a0] sm:$0xff]   ;;  %v2842_v19 = vld [vmem:[%s3700_s1 + $0x298] sm:$0xff]   ;;  %v2846_v23 = vld [vmem:[%s3700_s1 + $0x290] sm:$0xff]  }
  0x13   : > { %2536 = vmatpush3.bf16.msra.mxu1 %v2830_v7  ;;  %2497 = vmatprep.subr.bf16.mxu0 %v2831_v8  ;;  %v2847_v24 = vld [vmem:[%s3700_s1 + $0x248] sm:$0xff]   ;;  %v2851_v28 = vld [vmem:[%s3700_s1 + $0x240] sm:$0xff]   ;;  %v2855_v48 = vld [vmem:[%s3700_s1 + $0x378] sm:$0xff]  }
  0x14   : > { %2537 = vmatprep.subr.bf16.mxu1 %v2832_v9  ;;  %v2848_v25 = vld [vmem:[%s3700_s1 + $0x2c8] sm:$0xff]   ;;  %v2852_v29 = vld [vmem:[%s3700_s1 + $0x2c0] sm:$0xff]   ;;  %v2856_v49 = vld [vmem:[%s3700_s1 + $0x3f8] sm:$0xff]  }
  0x15   : > { %v2849_v26 = vld [vmem:[%s3700_s1 + $0x208] sm:$0xff]   ;;  %v2853_v30 = vld [vmem:[%s3700_s1 + $0x200] sm:$0xff]   ;;  %v2857_v60 = vld [vmem:[%s3700_s1 + $0x338] sm:$0xff]  }
  0x16   : > { %2498 = vmatpush3.bf16.msra.mxu0 %v2833_v10  ;;  %v2850_v27 = vld [vmem:[%s3700_s1 + $0x288] sm:$0xff]   ;;  %v2854_v31 = vld [vmem:[%s3700_s1 + $0x280] sm:$0xff]   ;;  %v2858_v61 = vld [vmem:[%s3700_s1 + $0x3b8] sm:$0xff]  }
  0x17   : > { %2538 = vmatpush3.bf16.msra.mxu1 %v2834_v11  ;;  %2499 = vmatprep.subr.bf16.mxu0 %v2835_v12  ;;  %v3112_v32 = vld [vmem:[%s3103_s27 + $0x20] sm:$0xff]  ;;  %v3120_v37 = vld [vmem:[%s3103_s27 + $0x28] sm:$0xff]  ;;  %v2859_v0 = vld [vmem:[%s3700_s1 + $0x370] sm:$0xff]  }
  0x18   : > { %2539 = vmatprep.subr.bf16.mxu1 %v2836_v13  ;;  %v181_v33 = vld [vmem:[%s3103_s27 + $0x40] sm:$0xff]  ;;  %v182_v38 = vld [vmem:[%s3103_s27 + $0x48] sm:$0xff]  ;;  %v2860_v1 = vld [vmem:[%s3700_s1 + $0x3f0] sm:$0xff]  }
  0x19   : > { %v185_v34 = vld [vmem:[%s3103_s27 + $0x60] sm:$0xff]  ;;  %v186_v41 = vld [vmem:[%s3103_s27 + $0x68] sm:$0xff]  ;;  %v2861_v2 = vld [vmem:[%s3700_s1 + $0x330] sm:$0xff]  }
  0x1a   : > { %2500 = vmatpush3.bf16.msra.mxu0 %v2837_v14  ;;  %v329_v35 = vld [vmem:[%s3103_s27] sm:$0xcc]  ;;  %v3117_v36 = vcombine.high %v181_v33, %v185_v34  ;;  %v3123_v39 = vcombine.low %v181_v33, %v185_v34  ;;  %v330_v42 = vld [vmem:[%s3103_s27 + $0x8] sm:$0xcc]  ;;  %v3131_v46 = vcombine.high %v182_v38, %v186_v41  ;;  %v3141_v53 = vcombine.low %v182_v38, %v186_v41  ;;  %v2862_v3 = vld [vmem:[%s3700_s1 + $0x3b0] sm:$0xff]  }
  0x1b   : > { %2540 = vmatpush3.bf16.msra.mxu1 %v2838_v15  ;;  %2501 = vmatprep.subr.bf16.mxu0 %v2839_v16  ;;  %v2284_v40 = vcombine.high %v329_v35, %v3112_v32  ;;  %v2283_v43 = vcombine.low %v329_v35, %v3112_v32  ;;  %v2286_v45 = vcombine.high %v330_v42, %v3120_v37  ;;  %v189_v4 = vld [vmem:[%s3103_s27 + $0x80] sm:$0xff]  ;;  %v190_v7 = vld [vmem:[%s3103_s27 + $0x88] sm:$0xff]  ;;  %v2875_v35 = vld [vmem:[%s3700_s1 + $0x358] sm:$0xff]  }
  0x1c   : > { %2541 = vmatprep.subr.bf16.mxu1 %v2840_v17  ;;  %v587_v44 = vrot.slane %v3117_v36, 2  ;;  %v584_v47 = vrot.slane %v3123_v39, 2  ;;  %v2285_v52 = vcombine.low %v330_v42, %v3120_v37  ;;  %v593_v55 = vrot.slane %v3131_v46, 2  ;;  %v193_v5 = vld [vmem:[%s3103_s27 + $0xa0] sm:$0xff]  ;;  %v194_v8 = vld [vmem:[%s3103_s27 + $0xa8] sm:$0xff]  ;;  %v2876_v38 = vld [vmem:[%s3700_s1 + $0x3d8] sm:$0xff]  }
  0x1d   : > { %v586_v50 = vrot.slane %v2284_v40, 2  ;;  %v583_v51 = vrot.slane %v2283_v43, 2  ;;  %v592_v54 = vrot.slane %v2286_v45, 2  ;;  %v590_v59 = vrot.slane %v3141_v53, 2  ;;  %v2863_v12 = vld [vmem:[%s3700_s1 + $0x368] sm:$0xff]  }
  0x1e   : > { %2502 = vmatpush3.bf16.msra.mxu0 %v2841_v18  ;;  %v589_v58 = vrot.slane %v2285_v52, 2  ;;  %v3169_v6 = vcombine.high %v189_v4, %v193_v5  ;;  %v3173_v9 = vcombine.low %v189_v4, %v193_v5  ;;  %v3175_v10 = vcombine.high %v190_v7, %v194_v8  ;;  %v2864_v15 = vld [vmem:[%s3700_s1 + $0x3e8] sm:$0xff]   ;;  %v2880_v52 = vld [vmem:[%s3700_s1 + $0x3d0] sm:$0xff]   ;;  %v3272_v4 = vld [vmem:[%s3103_s27 + $0x38] sm:$0xff] }
  0x1f   : > { %2542 = vmatpush3.bf16.msra.mxu1 %v2842_v19  ;;  %2503 = vmatprep.subr.bf16.mxu0 %v2843_v20  ;;  %v588_v56 = vsel %vm582_vm0, %v586_v50, %v587_v44  ;;  %v585_v57 = vsel %vm582_vm0, %v583_v51, %v584_v47  ;;  %v594_v62 = vsel %vm582_vm0, %v592_v54, %v593_v55  ;;  %v2865_v16 = vld [vmem:[%s3700_s1 + $0x328] sm:$0xff]   ;;  %v2878_v50 = vld [vmem:[%s3700_s1 + $0x398] sm:$0xff]   ;;  %v2879_v51 = vld [vmem:[%s3700_s1 + $0x350] sm:$0xff]  }
  0x20   : > { %2543 = vmatprep.subr.bf16.mxu1 %v2844_v21  ;;  %1087 = vmatprep.mubr.bf16.mxu0 %v588_v56  ;;  %v591_v63 = vsel %vm582_vm0, %v589_v58, %v590_v59  ;;  %v3177_v11 = vcombine.low %v190_v7, %v194_v8  ;;  %v609_v13 = vrot.slane %v3169_v6, 2  ;;  %v607_v14 = vrot.slane %v3173_v9, 2  ;;  %v2866_v21 = vld [vmem:[%s3700_s1 + $0x3a8] sm:$0xff]   ;;  %v2881_v54 = vld [vmem:[%s3700_s1 + $0x310] sm:$0xff]  }
  0x21   : > { %1151 = vmatprep.mubr.bf16.mxu1 %v594_v62  ;;  %v613_v17 = vrot.slane %v3175_v10, 2  ;;  %v2883_v56 = vld [vmem:[%s3700_s1 + $0x348] sm:$0xff]   ;;  %v2889_v62 = vld [vmem:[%s3700_s1 + $0x300] sm:$0xff]  }
  0x22   : > { %2504 = vmatpush3.bf16.msra.mxu0 %v2845_v22  ;;  %v611_v18 = vrot.slane %v3177_v11, 2  ;;  %v610_v19 = vsel %vm582_vm0, %v587_v44, %v609_v13  ;;  %v608_v20 = vsel %vm582_vm0, %v584_v47, %v607_v14  ;;  %v2877_v44 = vld [vmem:[%s3700_s1 + $0x318] sm:$0xff]   ;;  %v2885_v58 = vld [vmem:[%s3700_s1 + $0x308] sm:$0xff]  }
  0x23   : > { %2544 = vmatpush3.bf16.msra.mxu1 %v2846_v23  ;;  %2505 = vmatprep.subr.bf16.mxu0 %v2847_v24  ;;  %v614_v22 = vsel %vm582_vm0, %v593_v55, %v613_v17  ;;  %v2867_v24 = vld [vmem:[%s3700_s1 + $0x360] sm:$0xff]   ;;  %v2882_v55 = vld [vmem:[%s3700_s1 + $0x390] sm:$0xff]  }
  0x24   : > { %2545 = vmatprep.subr.bf16.mxu1 %v2848_v25  ;;  %v612_v23 = vsel %vm582_vm0, %v590_v59, %v611_v18  ;;  %v2868_v25 = vld [vmem:[%s3700_s1 + $0x3e0] sm:$0xff]   ;;  %v2886_v59 = vld [vmem:[%s3700_s1 + $0x388] sm:$0xff]  }
  0x26   : > { %2506 = vmatpush3.bf16.msra.mxu0 %v2849_v26  ;;  %v2869_v26 = vld [vmem:[%s3700_s1 + $0x320] sm:$0xff]  }
  0x27   : > { %2546 = vmatpush3.bf16.msra.mxu1 %v2850_v27  ;;  %2507 = vmatprep.subr.bf16.mxu0 %v2851_v28  ;;  %v2870_v27 = vld [vmem:[%s3700_s1 + $0x3a0] sm:$0xff]  }
  0x28   : > { %2547 = vmatprep.subr.bf16.mxu1 %v2852_v29  ;;  %v333_v28 = vld [vmem:[%s3103_s27 + $0xc0] sm:$0xff]  ;;  %v334_v29 = vld [vmem:[%s3103_s27 + $0xc8] sm:$0xff] }
  0x29   : > { %v2307_v33 = vcombine.low %v333_v28, %v333_v28  ;;  %v2309_v34 = vcombine.low %v334_v29, %v334_v29 }
  0x2a   : > { %2508 = vmatpush3.bf16.msra.mxu0 %v2853_v30  ;;  %v2308_v30 = vcombine.high %v333_v28, %v333_v28 }
  0x2b   : > { %2548 = vmatpush3.bf16.msra.mxu1 %v2854_v31  ;;  %2573 = vmatprep.subr.bf16.mxu0 %v2855_v48  ;;  %v2310_v31 = vcombine.high %v334_v29, %v334_v29  ;;  %v623_v42 = vrot.slane %v2307_v33, 2  ;;  %v627_v43 = vrot.slane %v2309_v34, 2 }
  0x2c   : > { %2613 = vmatprep.subr.bf16.mxu1 %v2856_v49  ;;  %v625_v40 = vrot.slane %v2308_v30, 2 }
  0x2d   : > { %1088 = vmatmul.mubr.bf16.vlgmr.msra.gmra.mxu0 %v585_v57  ;;  %v629_v41 = vrot.slane %v2310_v31, 2  ;;  %v624_v48 = vsel %vm582_vm0, %v607_v14, %v623_v42  ;;  %v628_v49 = vsel %vm582_vm0, %v611_v18, %v627_v43  ;;  %v2884_v57 = vld [vmem:[%s3700_s1 + $0x3c8] sm:$0xff]   ;;  %v188_v14 = vld [vmem:[%s3103_s27 + $0x78] sm:$0xff] }
  0x2e   : > { %1152 = vmatmul.mubr.bf16.vlgmr.msra.gmra.mxu1 %v591_v63  ;;  %2574 = vmatpush3.bf16.msra.mxu0 %v2857_v60  ;;  %v626_v45 = vsel %vm582_vm0, %v609_v13, %v625_v40  ;;  %v2887_v60 = vld [vmem:[%s3700_s1 + $0x340] sm:$0xff]   ;;  %v184_v13 = vld [vmem:[%s3103_s27 + $0x58] sm:$0xff] }
  0x2f   : > { %2614 = vmatpush3.bf16.msra.mxu1 %v2858_v61  ;;  %2575 = vmatprep.subr.bf16.mxu0 %v2859_v0  ;;  %v630_v47 = vsel %vm582_vm0, %v613_v17, %v629_v41  ;;  %v2888_v61 = vld [vmem:[%s3700_s1 + $0x3c0] sm:$0xff]   ;;  %v3266_v0 = vld [vmem:[%s3103_s27 + $0x30] sm:$0xff]  ;;  %v3285_v18 = vcombine.low %v184_v13, %v188_v14  ;;  %v2893_v31 = vld [vmem:[%s3700_s1 + $0x38] sm:$0xff]  }
  0x30   : > { %2615 = vmatprep.subr.bf16.mxu1 %v2860_v1  ;;  %1095 = vmatprep.mubr.bf16.mxu0 %v610_v19  ;;  %v2890_v63 = vld [vmem:[%s3700_s1 + $0x380] sm:$0xff]   ;;  %v183_v1 = vld [vmem:[%s3103_s27 + $0x50] sm:$0xff]  ;;  %v2891_v19 = vld [vmem:[%s3700_s1 + $0x78] sm:$0xff]  }
  0x31   : > { %1159 = vmatprep.mubr.bf16.mxu1 %v614_v22  ;;  %v602_v28 = vrot.slane %v3285_v18, 2 }
  0x32   : > { %2576 = vmatpush3.bf16.msra.mxu0 %v2861_v2  ;;  %v187_v2 = vld [vmem:[%s3103_s27 + $0x70] sm:$0xff] }
  0x33   : > { %2616 = vmatpush3.bf16.msra.mxu1 %v2862_v3  ;;  %2577 = vmatprep.subr.bf16.mxu0 %v2863_v12  ;;  %v331_v3 = vld [vmem:[%s3103_s27 + $0x10] sm:$0xcc]  ;;  %v3276_v8 = vcombine.low %v183_v1, %v187_v2  ;;  %v3278_v12 = vcombine.high %v183_v1, %v187_v2 }
  0x34   : > { %2617 = vmatprep.subr.bf16.mxu1 %v2864_v15  ;;  %v2287_v5 = vcombine.low %v331_v3, %v3266_v0  ;;  %v2288_v7 = vcombine.high %v331_v3, %v3266_v0  ;;  %v332_v15 = vld [vmem:[%s3103_s27 + $0x18] sm:$0xcc]  ;;  %v2903_v3 = vld [vmem:[%s3700_s1 + $0x60] sm:$0xff]  }
  0x35   : > { %1096 = vmatmul.mubr.bf16.gmra.mxu0 %v608_v20  ;;  %v2290_v17 = vcombine.high %v332_v15, %v3272_v4  ;;  %v599_v22 = vrot.slane %v3278_v12, 2 }
  0x36   : > { %2578 = vmatpush3.bf16.msra.mxu0 %v2865_v16  ;;  %1160 = vmatmul.mubr.bf16.gmra.mxu1 %v612_v23  ;;  %v2289_v16 = vcombine.low %v332_v15, %v3272_v4  ;;  %v595_v20 = vrot.slane %v2287_v5, 2  ;;  %v3291_v23 = vcombine.high %v184_v13, %v188_v14  ;;  %v2904_v5 = vld [vmem:[%s3700_s1 + $0xe0] sm:$0xff]   ;;  %v335_v14 = vld [vmem:[%s3103_s27 + $0xd0] sm:$0xff] }
  0x37   : > { %2579 = vmatprep.subr.bf16.mxu0 %v2867_v24  ;;  %2618 = vmatpush3.bf16.msra.mxu1 %v2866_v21  ;;  %v598_v21 = vrot.slane %v2288_v7, 2  ;;  %v2892_v24 = vld [vmem:[%s3700_s1 + $0xf8] sm:$0xff]   ;;  %v2905_v7 = vld [vmem:[%s3700_s1 + $0x20] sm:$0xff]   ;;  %v2312_v15 = vcombine.high %v335_v14, %v335_v14 }
  0x38   : > { %2619 = vmatprep.subr.bf16.mxu1 %v2868_v25  ;;  %1103 = vmatprep.mubr.bf16.mxu0 %v626_v45  ;;  %v601_v25 = vrot.slane %v2289_v16, 2  ;;  %v605_v30 = vrot.slane %v3291_v23, 2  ;;  %v195_v45 = vld [vmem:[%s3103_s27 + $0xb0] sm:$0xff]  ;;  %v2906_v13 = vld [vmem:[%s3700_s1 + $0xa0] sm:$0xff]   ;;  %v336_v16 = vld [vmem:[%s3103_s27 + $0xd8] sm:$0xff] }
  0x39   : > { %1167 = vmatprep.mubr.bf16.mxu1 %v630_v47  ;;  %v600_v29 = vsel %vm582_vm0, %v598_v21, %v599_v22  ;;  %v192_v47 = vld [vmem:[%s3103_s27 + $0x98] sm:$0xff] }
  0x3a   : > { %2580 = vmatpush3.bf16.msra.mxu0 %v2869_v26  ;;  %v604_v26 = vrot.slane %v2290_v17, 2  ;;  %v603_v34 = vsel %vm582_vm0, %v601_v25, %v602_v28  ;;  %v2311_v17 = vcombine.low %v335_v14, %v335_v14  ;;  %v2911_v21 = vld [vmem:[%s3700_s1 + $0x58] sm:$0xff]   ;;  %v2937_v14 = vld [vmem:[%s3700_s1 + $0x128] sm:$0xff]  }
  0x3b   : > { %2620 = vmatpush3.bf16.msra.mxu1 %v2870_v27  ;;  %2581 = vmatprep.subr.bf16.mxu0 %v2875_v35  ;;  %v596_v27 = vrot.slane %v3276_v8, 2  ;;  %v2894_v35 = vld [vmem:[%s3700_s1 + $0xb8] sm:$0xff]  }
  0x3c   : > { %2621 = vmatprep.subr.bf16.mxu1 %v2876_v38  ;;  %v606_v38 = vsel %vm582_vm0, %v604_v26, %v605_v30  ;;  %v2912_v25 = vld [vmem:[%s3700_s1 + $0xd8] sm:$0xff]  }
  0x3d   : > { %1104 = vmatmul.mubr.bf16.gmra.mxu0 %v624_v48  ;;  %v597_v33 = vsel %vm582_vm0, %v595_v20, %v596_v27  ;;  %v2313_v20 = vcombine.low %v336_v16, %v336_v16  ;;  %v2913_v26 = vld [vmem:[%s3700_s1 + $0x18] sm:$0xff]  }
  0x3e   : > { %1168 = vmatmul.mubr.bf16.gmra.mxu1 %v628_v49  ;;  %2582 = vmatpush3.bf16.msra.mxu0 %v2877_v44  ;;  %v191_v44 = vld [vmem:[%s3103_s27 + $0x90] sm:$0xff]  ;;  %v196_v49 = vld [vmem:[%s3103_s27 + $0xb8] sm:$0xff] }
  0x3f   : > { %2622 = vmatpush3.bf16.msra.mxu1 %v2878_v50  ;;  %2583 = vmatprep.subr.bf16.mxu0 %v2879_v51  ;;  %v3324_v48 = vcombine.high %v191_v44, %v195_v45  ;;  %v3327_v50 = vcombine.low %v191_v44, %v195_v45  ;;  %v3329_v51 = vcombine.high %v192_v47, %v196_v49  ;;  %v2921_v44 = vld [vmem:[%s3700_s1 + $0x8] sm:$0xff]  }
  0x40   : > { %2623 = vmatprep.subr.bf16.mxu1 %v2880_v52  ;;  %1111 = vmatprep.mubr.bf16.mxu0 %v625_v40  ;;  %v2895_v40 = vld [vmem:[%s3700_s1 + $0x70] sm:$0xff]   ;;  %v3331_v52 = vcombine.low %v192_v47, %v196_v49  ;;  %v2922_v45 = vld [vmem:[%s3700_s1 + $0x88] sm:$0xff]   ;;  %v2923_v47 = vld [vmem:[%s3700_s1 + $0x40] sm:$0xff]  }
  0x41   : > { %1175 = vmatprep.mubr.bf16.mxu1 %v629_v41  ;;  %v2896_v41 = vld [vmem:[%s3700_s1 + $0xf0] sm:$0xff]   ;;  %v2924_v49 = vld [vmem:[%s3700_s1 + $0xc0] sm:$0xff]  }
  0x42   : > { %2584 = vmatpush3.bf16.msra.mxu0 %v2881_v54  ;;  %v2899_v54 = vld [vmem:[%s3700_s1 + $0x68] sm:$0xff]  }
  0x43   : > { %2624 = vmatpush3.bf16.msra.mxu1 %v2882_v55  ;;  %2585 = vmatprep.subr.bf16.mxu0 %v2883_v56  ;;  %v617_v55 = vrot.slane %v3324_v48, 2  ;;  %v615_v56 = vrot.slane %v3327_v50, 2 }
  0x44   : > { %2625 = vmatprep.subr.bf16.mxu1 %v2884_v57  ;;  %v2900_v57 = vld [vmem:[%s3700_s1 + $0xe8] sm:$0xff]  }
  0x45   : > { %1112 = vmatmul.mubr.bf16.gmra.mxu0 %v623_v42  ;;  %v2897_v42 = vld [vmem:[%s3700_s1 + $0x30] sm:$0xff]  }
  0x46   : > { %1176 = vmatmul.mubr.bf16.gmra.mxu1 %v627_v43  ;;  %2586 = vmatpush3.bf16.msra.mxu0 %v2885_v58  ;;  %v2898_v43 = vld [vmem:[%s3700_s1 + $0xb0] sm:$0xff]   ;;  %v2901_v58 = vld [vmem:[%s3700_s1 + $0x28] sm:$0xff]  }
  0x47   : > { %2626 = vmatpush3.bf16.msra.mxu1 %v2886_v59  ;;  %2587 = vmatprep.subr.bf16.mxu0 %v2887_v60  ;;  %v621_v59 = vrot.slane %v3329_v51, 2  ;;  %v619_v60 = vrot.slane %v3331_v52, 2 }
  0x48   : > { %2627 = vmatprep.subr.bf16.mxu1 %v2888_v61  ;;  %1215 = vmatprep.mubr.bf16.mxu0 %v600_v29  ;;  %v618_v61 = vsel %vm582_vm0, %v599_v22, %v617_v55  ;;  %v633_v22 = vrot.slane %v2312_v15, 2  ;;  %v2940_v15 = vld [vmem:[%s3700_s1 + $0x1e0] sm:$0xff]  }
  0x49   : > { %1279 = vmatprep.mubr.bf16.mxu1 %v606_v38  ;;  %v622_v1 = vsel %vm582_vm0, %v605_v30, %v621_v59  ;;  %v620_v2 = vsel %vm582_vm0, %v602_v28, %v619_v60  ;;  %v635_v28 = vrot.slane %v2313_v20, 2  ;;  %v2916_v38 = vld [vmem:[%s3700_s1 + $0xd0] sm:$0xff]  }
  0x4a   : > { %2588 = vmatpush3.bf16.msra.mxu0 %v2889_v62  ;;  %v616_v62 = vsel %vm582_vm0, %v596_v27, %v615_v56  ;;  %v634_v29 = vsel %vm582_vm0, %v617_v55, %v633_v22  ;;  %v2926_v55 = vld [vmem:[%s3700_s1 + $0x80] sm:$0xff]   ;;  %v2948_v20 = vld [vmem:[%s3700_s1 + $0x1d0] sm:$0xff]  }
  0x4b   : > { %2628 = vmatpush3.bf16.msra.mxu1 %v2890_v63  ;;  %2653 = vmatprep.subr.bf16.mxu0 %v2891_v19  ;;  %v2902_v63 = vld [vmem:[%s3700_s1 + $0xa8] sm:$0xff]   ;;  %v2314_v19 = vcombine.high %v336_v16, %v336_v16  ;;  %v2941_v16 = vld [vmem:[%s3700_s1 + $0x120] sm:$0xff]  }
  0x4c   : > { %2693 = vmatprep.subr.bf16.mxu1 %v2892_v24  ;;  %v631_v24 = vrot.slane %v2311_v17, 2  ;;  %v2944_v17 = vld [vmem:[%s3700_s1 + $0x1d8] sm:$0xff]  }
  0x4d   : > { %1216 = vmatmul.mubr.bf16.vlgmr.msra.gmra.mxu0 %v597_v33  ;;  %v637_v27 = vrot.slane %v2314_v19, 2  ;;  %v2945_v19 = vld [vmem:[%s3700_s1 + $0x118] sm:$0xff]  }
  0x4e   : > { %2654 = vmatpush3.bf16.msra.mxu0 %v2893_v31  ;;  %1280 = vmatmul.mubr.bf16.vlgmr.msra.gmra.mxu1 %v603_v34  ;;  %v632_v30 = vsel %vm582_vm0, %v615_v56, %v631_v24  ;;  %v2914_v31 = vld [vmem:[%s3700_s1 + $0x98] sm:$0xff]   ;;  %v636_v34 = vsel %vm582_vm0, %v619_v60, %v635_v28  ;;  %v173_v56 = vld [vmem:[%s3103_s27] sm:$0xff] }
  0x4f   : > { %2655 = vmatprep.subr.bf16.mxu0 %v2895_v40  ;;  %2694 = vmatpush3.bf16.msra.mxu1 %v2894_v35  ;;  %v638_v33 = vsel %vm582_vm0, %v621_v59, %v637_v27  ;;  %v2915_v35 = vld [vmem:[%s3700_s1 + $0x50] sm:$0xff]   ;;  %v2379_v59 = vcombine.low %v173_v56, %v3112_v32 }
  0x50   : > { %2695 = vmatprep.subr.bf16.mxu1 %v2896_v41  ;;  %1223 = vmatprep.mubr.bf16.mxu0 %v618_v61  ;;  %v2917_v40 = vld [vmem:[%s3700_s1 + $0x10] sm:$0xff]   ;;  %v2927_v61 = vld [vmem:[%s3700_s1 + $0x178] sm:$0xff]  }
  0x51   : > { %1287 = vmatprep.mubr.bf16.mxu1 %v622_v1  ;;  %v2918_v41 = vld [vmem:[%s3700_s1 + $0x90] sm:$0xff]   ;;  %v2929_v1 = vld [vmem:[%s3700_s1 + $0x138] sm:$0xff]  }
  0x52   : > { %2656 = vmatpush3.bf16.msra.mxu0 %v2897_v42  ;;  %v2919_v42 = vld [vmem:[%s3700_s1 + $0x48] sm:$0xff]  }
  0x53   : > { %2696 = vmatpush3.bf16.msra.mxu1 %v2898_v43  ;;  %2657 = vmatprep.subr.bf16.mxu0 %v2899_v54  ;;  %v2920_v43 = vld [vmem:[%s3700_s1 + $0xc8] sm:$0xff]   ;;  %v2925_v54 = vld [vmem:[%s3700_s1] sm:$0xff]  }
  0x54   : > { %2697 = vmatprep.subr.bf16.mxu1 %v2900_v57  ;;  %v2380_v57 = vcombine.high %v173_v56, %v3112_v32  ;;  %v2930_v32 = vld [vmem:[%s3700_s1 + $0x1b8] sm:$0xff]  }
  0x55   : > { %1224 = vmatmul.mubr.bf16.gmra.mxu0 %v616_v62 }
  0x56   : > { %2658 = vmatpush3.bf16.msra.mxu0 %v2901_v58  ;;  %1288 = vmatmul.mubr.bf16.gmra.mxu1 %v620_v2  ;;  %v174_v58 = vld [vmem:[%s3103_s27 + $0x8] sm:$0xff]  ;;  %v2932_v2 = vld [vmem:[%s3700_s1 + $0x1f0] sm:$0xff]  }
  0x57   : > { %2659 = vmatprep.subr.bf16.mxu0 %v2903_v3  ;;  %2698 = vmatpush3.bf16.msra.mxu1 %v2902_v63  ;;  %v2382_v60 = vcombine.high %v174_v58, %v3120_v37  ;;  %v2381_v62 = vcombine.low %v174_v58, %v3120_v37  ;;  %v2928_v63 = vld [vmem:[%s3700_s1 + $0x1f8] sm:$0xff]   ;;  %v2931_v37 = vld [vmem:[%s3700_s1 + $0x170] sm:$0xff]  }
  0x58   : > { %2699 = vmatprep.subr.bf16.mxu1 %v2904_v5  ;;  %1231 = vmatprep.mubr.bf16.mxu0 %v634_v29  ;;  %v2933_v3 = vld [vmem:[%s3700_s1 + $0x130] sm:$0xff]   ;;  %v2956_v29 = vld [vmem:[%s3700_s1 + $0x1c8] sm:$0xff]  }
  0x59   : > { %1295 = vmatprep.mubr.bf16.mxu1 %v638_v33  ;;  %v2934_v5 = vld [vmem:[%s3700_s1 + $0x1b0] sm:$0xff]   ;;  %v2959_v33 = vld [vmem:[%s3700_s1 + $0x140] sm:$0xff]  }
  0x5a   : > { %2660 = vmatpush3.bf16.msra.mxu0 %v2905_v7  ;;  %v2935_v7 = vld [vmem:[%s3700_s1 + $0x168] sm:$0xff]  }
  0x5b   : > { %2700 = vmatpush3.bf16.msra.mxu1 %v2906_v13  ;;  %2661 = vmatprep.subr.bf16.mxu0 %v2911_v21  ;;  %v2936_v13 = vld [vmem:[%s3700_s1 + $0x1e8] sm:$0xff]   ;;  %v2949_v21 = vld [vmem:[%s3700_s1 + $0x110] sm:$0xff]  }
  0x5c   : > { %2701 = vmatprep.subr.bf16.mxu1 %v2912_v25 }
  0x5d   : > { %1232 = vmatmul.mubr.bf16.gmra.mxu0 %v632_v30  ;;  %v2957_v30 = vld [vmem:[%s3700_s1 + $0x108] sm:$0xff]  }
  0x5e   : > { %2662 = vmatpush3.bf16.msra.mxu0 %v2913_v26  ;;  %1296 = vmatmul.mubr.bf16.gmra.mxu1 %v636_v34  ;;  %v2960_v34 = vld [vmem:[%s3700_s1 + $0x1c0] sm:$0xff]  }
  0x5f   : > { %2663 = vmatprep.subr.bf16.mxu0 %v2915_v35  ;;  %2702 = vmatpush3.bf16.msra.mxu1 %v2914_v31  ;;  %v2958_v31 = vld [vmem:[%s3700_s1 + $0x188] sm:$0xff]   ;;  %v2961_v35 = vld [vmem:[%s3700_s1 + $0x100] sm:$0xff]  }
  0x60   : > { %1239 = vmatprep.mubr.bf16.mxu0 %v633_v22  ;;  %2703 = vmatprep.subr.bf16.mxu1 %v2916_v38  ;;  %v197_v22 = vld [vmem:[%s3103_s27 + $0xc0] sm:$0x33] }
  0x61   : > { %1303 = vmatprep.mubr.bf16.mxu1 %v637_v27  ;;  %v2388_v25 = vcombine.high %v197_v22, %v197_v22  ;;  %v2387_v26 = vcombine.low %v197_v22, %v197_v22  ;;  %v2955_v27 = vld [vmem:[%s3700_s1 + $0x148] sm:$0xff]   ;;  %v2962_v38 = vld [vmem:[%s3700_s1 + $0x180] sm:$0xff]  }
  0x62   : > { %2664 = vmatpush3.bf16.msra.mxu0 %v2917_v40  ;;  %v175_v40 = vld [vmem:[%s3103_s27 + $0x10] sm:$0xff] }
  0x63   : > { %2665 = vmatprep.subr.bf16.mxu0 %v2919_v42  ;;  %2704 = vmatpush3.bf16.msra.mxu1 %v2918_v41  ;;  %v176_v41 = vld [vmem:[%s3103_s27 + $0x18] sm:$0xff]  ;;  %v2383_v42 = vcombine.low %v175_v40, %v3266_v0 }
  0x64   : > { %2705 = vmatprep.subr.bf16.mxu1 %v2920_v43  ;;  %v2384_v43 = vcombine.high %v175_v40, %v3266_v0  ;;  %v199_v0 = vld [vmem:[%s3103_s27 + $0xd0] sm:$0x33] }
  0x65   : > { %1240 = vmatmul.mubr.bf16.gmra.mxu0 %v631_v24  ;;  %v198_v24 = vld [vmem:[%s3103_s27 + $0xc8] sm:$0x33] }
  0x66   : > { %2666 = vmatpush3.bf16.msra.mxu0 %v2921_v44  ;;  %1304 = vmatmul.mubr.bf16.gmra.mxu1 %v635_v28  ;;  %v2389_v28 = vcombine.low %v198_v24, %v198_v24  ;;  %v2385_v44 = vcombine.low %v176_v41, %v3272_v4 }
  0x67   : > { %2667 = vmatprep.subr.bf16.mxu0 %v2923_v47  ;;  %2706 = vmatpush3.bf16.msra.mxu1 %v2922_v45  ;;  %v2386_v45 = vcombine.high %v176_v41, %v3272_v4  ;;  %v200_v47 = vld [vmem:[%s3103_s27 + $0xd8] sm:$0x33]  ;;  %v2392_v4 = vcombine.high %v199_v0, %v199_v0 }
  0x68   : > { %2707 = vmatprep.subr.bf16.mxu1 %v2924_v49  ;;  %1799 = vmatprep.mubr.bf16.mxu0 %v2380_v57  ;;  %v2394_v49 = vcombine.high %v200_v47, %v200_v47 }
  0x69   : > { %1863 = vmatprep.mubr.bf16.mxu1 %v2382_v60 }
  0x6a   : > { %2668 = vmatpush3.bf16.msra.mxu0 %v2925_v54 }
  0x6b   : > { %2708 = vmatpush3.bf16.msra.mxu1 %v2926_v55  ;;  %2733 = vmatprep.subr.bf16.mxu0 %v2927_v61 }
  0x6c   : > { %2773 = vmatprep.subr.bf16.mxu1 %v2928_v63 }
  0x6d   : > { %1800 = vmatmul.mubr.bf16.vlgmr.msra.gmra.mxu0 %v2379_v59 }
  0x6e   : > { %1864 = vmatmul.mubr.bf16.vlgmr.msra.gmra.mxu1 %v2381_v62  ;;  %2734 = vmatpush3.bf16.msra.mxu0 %v2929_v1 }
  0x6f   : > { %2774 = vmatpush3.bf16.msra.mxu1 %v2930_v32  ;;  %2735 = vmatprep.subr.bf16.mxu0 %v2931_v37 }
  0x70   : > { %2775 = vmatprep.subr.bf16.mxu1 %v2932_v2  ;;  %1807 = vmatprep.mubr.bf16.mxu0 %v3117_v36  ;;  %v2938_v36 = vld [vmem:[%s3700_s1 + $0x1a8] sm:$0xff]  }
  0x71   : > { %1871 = vmatprep.mubr.bf16.mxu1 %v3131_v46  ;;  %v2939_v46 = vld [vmem:[%s3700_s1 + $0x160] sm:$0xff]  }
  0x72   : > { %2736 = vmatpush3.bf16.msra.mxu0 %v2933_v3 }
  0x73   : > { %2776 = vmatpush3.bf16.msra.mxu1 %v2934_v5  ;;  %2737 = vmatprep.subr.bf16.mxu0 %v2935_v7 }
  0x74   : > { %2777 = vmatprep.subr.bf16.mxu1 %v2936_v13 }
  0x75   : > { %1808 = vmatmul.mubr.bf16.gmra.mxu0 %v3123_v39  ;;  %v2942_v39 = vld [vmem:[%s3700_s1 + $0x1a0] sm:$0xff]  }
  0x76   : > { %1872 = vmatmul.mubr.bf16.gmra.mxu1 %v3141_v53  ;;  %2738 = vmatpush3.bf16.msra.mxu0 %v2937_v14  ;;  %v2943_v53 = vld [vmem:[%s3700_s1 + $0x158] sm:$0xff]  }
  0x77   : > { %2778 = vmatpush3.bf16.msra.mxu1 %v2938_v36  ;;  %2739 = vmatprep.subr.bf16.mxu0 %v2939_v46 }
  0x78   : > { %2779 = vmatprep.subr.bf16.mxu1 %v2940_v15  ;;  %1815 = vmatprep.mubr.bf16.mxu0 %v3169_v6  ;;  %v2946_v6 = vld [vmem:[%s3700_s1 + $0x198] sm:$0xff]  }
  0x79   : > { %1879 = vmatprep.mubr.bf16.mxu1 %v3175_v10  ;;  %v2947_v10 = vld [vmem:[%s3700_s1 + $0x150] sm:$0xff]  }
  0x7a   : > { %2740 = vmatpush3.bf16.msra.mxu0 %v2941_v16 }
  0x7b   : > { %2780 = vmatpush3.bf16.msra.mxu1 %v2942_v39  ;;  %2741 = vmatprep.subr.bf16.mxu0 %v2943_v53 }
  0x7c   : > { %2781 = vmatprep.subr.bf16.mxu1 %v2944_v17 }
  0x7d   : > { %1816 = vmatmul.mubr.bf16.gmra.mxu0 %v3173_v9  ;;  %v2950_v9 = vld [vmem:[%s3700_s1 + $0x190] sm:$0xff]  }
  0x7e   : > { %1880 = vmatmul.mubr.bf16.gmra.mxu1 %v3177_v11  ;;  %2742 = vmatpush3.bf16.msra.mxu0 %v2945_v19  ;;  %v2390_v11 = vcombine.high %v198_v24, %v198_v24 }
  0x7f   : > { %2782 = vmatpush3.bf16.msra.mxu1 %v2946_v6  ;;  %2743 = vmatprep.subr.bf16.mxu0 %v2947_v10 }
  0x80   : > { %2783 = vmatprep.subr.bf16.mxu1 %v2948_v20  ;;  %1823 = vmatprep.mubr.bf16.mxu0 %v2388_v25 }
  0x81   : > { %1887 = vmatprep.mubr.bf16.mxu1 %v2390_v11 }
  0x82   : > { %2744 = vmatpush3.bf16.msra.mxu0 %v2949_v21 }
  0x83   : > { %2784 = vmatpush3.bf16.msra.mxu1 %v2950_v9  ;;  %2745 = vmatprep.subr.bf16.mxu0 %v2955_v27 }
  0x84   : > { %2785 = vmatprep.subr.bf16.mxu1 %v2956_v29 }
  0x85   : > { %1824 = vmatmul.mubr.bf16.gmra.mxu0 %v2387_v26 }
  0x86   : > { %1888 = vmatmul.mubr.bf16.gmra.mxu1 %v2389_v28  ;;  %2746 = vmatpush3.bf16.msra.mxu0 %v2957_v30 }
  0x87   : > { %2786 = vmatpush3.bf16.msra.mxu1 %v2958_v31  ;;  %2747 = vmatprep.subr.bf16.mxu0 %v2959_v33 }
  0x88   : > { %2787 = vmatprep.subr.bf16.mxu1 %v2960_v34  ;;  %1927 = vmatprep.mubr.bf16.mxu0 %v2384_v43 }
  0x89   : > { %1991 = vmatprep.mubr.bf16.mxu1 %v2386_v45 }
  0x8a   : > { %2748 = vmatpush3.bf16.msra.mxu0 %v2961_v35 }
  0x8b   : > { %2788 = vmatpush3.bf16.msra.mxu1 %v2962_v38 }
  0x8d   : > { %1928 = vmatmul.mubr.bf16.vlgmr.msra.gmra.mxu0 %v2383_v42 }
  0x8e   : > { %1992 = vmatmul.mubr.bf16.vlgmr.msra.gmra.mxu1 %v2385_v44  ;;  %1935 = vmatprep.mubr.bf16.mxu0 %v3278_v12  ;;  %v2391_v12 = vcombine.low %v199_v0, %v199_v0 }
  0x8f   : > { %1999 = vmatprep.mubr.bf16.mxu1 %v3291_v23  ;;  %v2393_v23 = vcombine.low %v200_v47, %v200_v47 }
  0x95   : > { %1936 = vmatmul.mubr.bf16.gmra.mxu0 %v3276_v8 }
  0x96   : > { %2000 = vmatmul.mubr.bf16.gmra.mxu1 %v3285_v18  ;;  %1943 = vmatprep.mubr.bf16.mxu0 %v3324_v48 }
  0x97   : > { %2007 = vmatprep.mubr.bf16.mxu1 %v3329_v51 }
  0x9d   : > { %1944 = vmatmul.mubr.bf16.gmra.mxu0 %v3327_v50 }
  0x9e   : > { %2008 = vmatmul.mubr.bf16.gmra.mxu1 %v3331_v52  ;;  %1951 = vmatprep.mubr.bf16.mxu0 %v2392_v4 }
  0x9f   : > { %2015 = vmatprep.mubr.bf16.mxu1 %v2394_v49 }
  0xa5   : > { %1952 = vmatmul.mubr.bf16.gmra.mxu0 %v2391_v12 }
  0xa6   : > { %2016 = vmatmul.mubr.bf16.gmra.mxu1 %v2393_v23 }
  0xed   : > { %v2509_v8 = vpop.f32.mrf.mxu0 }
  0xee   : > { %v2549_v18 = vpop.f32.mrf.mxu1 }
  0xef   : > { %v2510_v54 = vpop.f32.mrf.mxu0 }
  0xf0   : > { %v2511_v48 = vadd.f32 %v2510_v54, %v2509_v8  ;;  %v2550_v55 = vpop.f32.mrf.mxu1 }
  0xf1   : > { %v2551_v51 = vadd.f32 %v2550_v55, %v2549_v18  ;;  %v2512_v56 = vpop.f32.mrf.mxu0 }
  0xf2   : > { %v2552_v57 = vpop.f32.mrf.mxu1 }
  0xf3   : > { %v3547_v58 = vadd.f32 %v2551_v51, %v2511_v48  ;;  %v2513_v59 = vpop.f32.mrf.mxu0 }
  0xf4   : > { %v2514_v50 = vadd.f32 %v2513_v59, %v2512_v56  ;;  %v2553_v60 = vpop.f32.mrf.mxu1 }
  0xf5   : > { %v2554_v52 = vadd.f32 %v2553_v60, %v2552_v57  ;;  %v2515_v62 = vpop.f32.mrf.mxu0 }
  0xf6   : > { %v2555_v63 = vpop.f32.mrf.mxu1 }
  0xf7   : > { %v3549_v61 = vadd.f32 %v2554_v52, %v2514_v50  ;;  %v2516_v1 = vpop.f32.mrf.mxu0 }
  0xf8   : > { %v2517_v32 = vadd.f32 %v2516_v1, %v2515_v62  ;;  %v2556_v37 = vpop.f32.mrf.mxu1 }
  0xf9   : > { %v2557_v2 = vadd.f32 %v2556_v37, %v2555_v63  ;;  %v2518_v3 = vpop.f32.mrf.mxu0 }
  0xfa   : > { %v2558_v5 = vpop.f32.mrf.mxu1 }
  0xfb   : > { %v3551_v7 = vadd.f32 %v2557_v2, %v2517_v32  ;;  %v2519_v13 = vpop.f32.mrf.mxu0 }
  0xfc   : > { %v2520_v14 = vadd.f32 %v2519_v13, %v2518_v3  ;;  %v2559_v36 = vpop.f32.mrf.mxu1 }
  0xfd   : > { %v2560_v46 = vadd.f32 %v2559_v36, %v2558_v5  ;;  %v2521_v16 = vpop.f32.mrf.mxu0 }
  0xfe   : > { %v2561_v39 = vpop.f32.mrf.mxu1 }
  0xff   : > { %v3553_v15 = vadd.f32 %v2560_v46, %v2520_v14  ;;  %v2522_v53 = vpop.f32.mrf.mxu0 }
 0x100   : > { %v2562_v17 = vpop.f32.mrf.mxu1  ;;  %v2523_v19 = vadd.f32 %v2522_v53, %v2521_v16 }
 0x101   : > { %v2563_v6 = vadd.f32 %v2562_v17, %v2561_v39  ;;  %v2524_v10 = vpop.f32.mrf.mxu0 }
 0x102   : > { %v2564_v20 = vpop.f32.mrf.mxu1 }
 0x103   : > { %v3555_v21 = vadd.f32 %v2563_v6, %v2523_v19  ;;  %v2525_v9 = vpop.f32.mrf.mxu0 }
 0x104   : > { %v2565_v22 = vpop.f32.mrf.mxu1  ;;  %v2526_v24 = vadd.f32 %v2525_v9, %v2524_v10 }
 0x105   : > { %v2566_v25 = vadd.f32 %v2565_v22, %v2564_v20  ;;  %v2527_v11 = vpop.f32.mrf.mxu0 }
 0x106   : > { %v2567_v26 = vpop.f32.mrf.mxu1 }
 0x107   : > { %v3557_v27 = vadd.f32 %v2566_v25, %v2526_v24  ;;  %v2528_v28 = vpop.f32.mrf.mxu0 }
 0x108   : > { %v2568_v29 = vpop.f32.mrf.mxu1  ;;  %v2529_v30 = vadd.f32 %v2528_v28, %v2527_v11 }
 0x109   : > { %v2569_v31 = vadd.f32 %v2568_v29, %v2567_v26  ;;  %v2530_v33 = vpop.f32.mrf.mxu0 }
 0x10a   : > { %v2570_v34 = vpop.f32.mrf.mxu1 }
 0x10b   : > { %v3559_v35 = vadd.f32 %v2569_v31, %v2529_v30  ;;  %v2531_v38 = vpop.f32.mrf.mxu0 }
 0x10c   : > { %v2571_v40 = vpop.f32.mrf.mxu1 }
 0x10d   : > { %3703 = vst [vmem:[#allocation2_spill] sm:$0xff] %v3559_v35  ;;  %v2589_v41 = vpop.f32.mrf.mxu0 }
 0x10e   : > { %v2629_v42 = vpop.f32.mrf.mxu1 }
 0x10f   : > { %v2590_v43 = vpop.f32.mrf.mxu0 }
 0x110   : > { %v2630_v44 = vpop.f32.mrf.mxu1  ;;  %v2591_v33 = vadd.f32 %v2590_v43, %v2589_v41 }
 0x111   : > { %v2592_v45 = vpop.f32.mrf.mxu0 }
 0x112   : > { %v3561_v0 = vpop.f32.mrf.mxu1 }
 0x113   : > { %v2593_v47 = vpop.f32.mrf.mxu0 }
 0x114   : > { %v3563_v4 = vpop.f32.mrf.mxu1 }
 0x115   : > { %v2595_v49 = vpop.f32.mrf.mxu0 }
 0x116   : > { %v3565_v12 = vpop.f32.mrf.mxu1 }
 0x117   : > { %v2596_v23 = vpop.f32.mrf.mxu0 }
 0x118   : > { %v3567_v8 = vpop.f32.mrf.mxu1  ;;  %v2597_v35 = vadd.f32 %v2596_v23, %v2595_v49 }
 0x119   : > { %v3569_v18 = vpop.f32.mrf.mxu0 }
 0x11a   : > { %v3571_v54 = vpop.f32.mrf.mxu1 }
 0x11b   : > { %v2599_v48 = vpop.f32.mrf.mxu0 }
 0x11c   : > { %v3573_v55 = vpop.f32.mrf.mxu1 }
 0x11d   : > { %v3575_v51 = vpop.f32.mrf.mxu0 }
 0x11e   : > { %v3577_v56 = vpop.f32.mrf.mxu1 }
 0x11f   : > { %v3579_v57 = vpop.f32.mrf.mxu0 }
 0x120   : > { %v3581_v59 = vpop.f32.mrf.mxu1  ;;  %v2603_v49 = vadd.f32 %v3579_v57, %v3575_v51  ;;  %v3648_v57 = vld [vmem:[%s3701_s2] ss:$0 sm:$0xff] }
 0x121   : > { %v3583_v50 = vpop.f32.mrf.mxu0 }
 0x122   : > { %v3585_v60 = vpop.f32.mrf.mxu1 }
 0x123   : > { %v3587_v52 = vpop.f32.mrf.mxu0 }
 0x124   : > { %v3589_v62 = vpop.f32.mrf.mxu1 }
 0x125   : > { %v3591_v63 = vpop.f32.mrf.mxu0 }
 0x126   : > { %v3593_v1 = vpop.f32.mrf.mxu1 }
 0x127   : > { %3704 = vst [vmem:[#allocation3_spill] sm:$0xff] %v3593_v1  ;;  %v3595_v32 = vpop.f32.mrf.mxu0  ;;  %v2631_v1 = vadd.f32 %v2630_v44, %v2629_v42  ;;  %v1226_v44 = vadd.f32 %v2597_v35, %v3551_v7 }
 0x128   : > { %v3597_v37 = vpop.f32.mrf.mxu1 }
 0x129   : > { %3705 = vst [vmem:[#allocation4_spill] sm:$0xff] %v3597_v37  ;;  %v2610_v2 = vpop.f32.mrf.mxu0 }
 0x12a   : > { %v2650_v3 = vpop.f32.mrf.mxu1 }
 0x12b   : > { %v2611_v5 = vpop.f32.mrf.mxu0  ;;  %v1218_v3 = vadd.f32 %v2591_v33, %v3547_v58  ;;  %v2600_v33 = vadd.f32 %v2599_v48, %v3569_v18 }
 0x12c   : > { %v2651_v13 = vpop.f32.mrf.mxu1  ;;  %v2594_v5 = vadd.f32 %v2593_v47, %v2592_v45 }
 0x12d   : > { %v2669_v14 = vpop.f32.mrf.mxu0  ;;  %v1282_v43 = vadd.f32 %v2631_v1, %v1218_v3  ;;  %v1229_v18 = vadd.f32 %v2600_v33, %v3553_v15 }
 0x12e   : > { %v2709_v36 = vpop.f32.mrf.mxu1 }
 0x12f   : > { %v2670_v46 = vpop.f32.mrf.mxu0 }
 0x130   : > { %v2710_v16 = vpop.f32.mrf.mxu1 }
 0x131   : > { %v2672_v39 = vpop.f32.mrf.mxu0 }
 0x132   : > { %v2712_v53 = vpop.f32.mrf.mxu1 }
 0x133   : > { %v2673_v17 = vpop.f32.mrf.mxu0 }
 0x134   : > { %v2713_v19 = vpop.f32.mrf.mxu1  ;;  %v2674_v45 = vadd.f32 %v2673_v17, %v2672_v39 }
 0x135   : > { %v2675_v6 = vpop.f32.mrf.mxu0 }
 0x136   : > { %v3599_v10 = vpop.f32.mrf.mxu1 }
 0x137   : > { %v2676_v20 = vpop.f32.mrf.mxu0 }
 0x138   : > { %v3601_v9 = vpop.f32.mrf.mxu1 }
 0x139   : > { %v2678_v22 = vpop.f32.mrf.mxu0 }
 0x13a   : > { %v3603_v24 = vpop.f32.mrf.mxu1 }
 0x13b   : > { %v2679_v25 = vpop.f32.mrf.mxu0 }
 0x13c   : > { %v3605_v11 = vpop.f32.mrf.mxu1  ;;  %v2680_v51 = vadd.f32 %v2679_v25, %v2678_v22 }
 0x13d   : > { %v3607_v26 = vpop.f32.mrf.mxu0 }
 0x13e   : > { %v3609_v28 = vpop.f32.mrf.mxu1 }
 0x13f   : > { %3706 = vst [vmem:[#allocation5_spill] sm:$0xff] %v3609_v28  ;;  %v3611_v29 = vpop.f32.mrf.mxu0 }
 0x140   : > { %v3613_v30 = vpop.f32.mrf.mxu1 }
 0x141   : > { %3707 = vst [vmem:[#allocation6_spill] sm:$0xff] %v3613_v30  ;;  %v3615_v31 = vpop.f32.mrf.mxu0  ;;  %v2671_v30 = vadd.f32 %v2670_v46, %v2669_v14  ;;  %v2711_v14 = vadd.f32 %v2710_v16, %v2709_v36 }
 0x142   : > { %v3617_v34 = vpop.f32.mrf.mxu1 }
 0x143   : > { %3708 = vst [vmem:[#allocation7_spill] sm:$0xff] %v3617_v34  ;;  %v3619_v38 = vpop.f32.mrf.mxu0  ;;  %v1221_v34 = vadd.f32 %v2594_v5, %v3549_v61  ;;  %v1802_v58 = vadd.f32 %v2671_v30, %v1282_v43  ;;  %v2637_v61 = vadd.f32 %v3567_v8, %v3565_v12  ;;  %v2640_v12 = vadd.f32 %v3573_v55, %v3571_v54 }
 0x144   : > { %3709 = vst [vmem:[#allocation8_spill] sm:$0xff] %v3619_v38  ;;  %v3621_v40 = vpop.f32.mrf.mxu1  ;;  %v1234_v8 = vadd.f32 %v2603_v49, %v3555_v21  ;;  %v2606_v54 = vadd.f32 %v3587_v52, %v3583_v50  ;;  %v2717_v55 = vadd.f32 %v3601_v9, %v3599_v10  ;;  %v2609_v10 = vadd.f32 %v3595_v32, %v3591_v63 }
 0x145   : > { %3710 = vst [vmem:[#allocation9_spill] sm:$0xff] %v3621_v40  ;;  %v3623_v2 = vpop.f32.mrf.mxu0  ;;  %v1866_v1 = vadd.f32 %v2711_v14, %v1802_v58  ;;  %v1290_v30 = vadd.f32 %v2637_v61, %v1226_v44  ;;  %v2720_v9 = vadd.f32 %v3605_v11, %v3603_v24  ;;  %v2646_v44 = vadd.f32 %v3589_v62, %v3585_v60 }
 0x146   : > { %3711 = vst [vmem:[#allocation10_spill] sm:$0xff] %v3623_v2  ;;  %v3626_v13 = vpop.f32.mrf.mxu1  ;;  %v2634_v2 = vadd.f32 %v3563_v4, %v3561_v0  ;;  %v2677_v4 = vadd.f32 %v2676_v20, %v2675_v6  ;;  %v1237_v52 = vadd.f32 %v2606_v54, %v3557_v27 }
 0x147   : > { %3712 = vst [vmem:[#allocation11_spill] sm:$0xff] %v3626_v13  ;;  %v3628_v37 = vpop.f32.mrf.mxu0 }
 0x148   : > { %v3630_v28 = vpop.f32.mrf.mxu1  ;;  %v1285_v42 = vadd.f32 %v2634_v2, %v1221_v34  ;;  %v2714_v34 = vadd.f32 %v2713_v19, %v2712_v53  ;;  %v1810_v15 = vadd.f32 %v2677_v4, %v1290_v30  ;;  %v1293_v19 = vadd.f32 %v2640_v12, %v1229_v18  ;;  %v3715_v4 = vld [vmem:[#allocation5_spill] sm:$0xff] }
 0x149   : > { %v2690_v41 = vpop.f32.mrf.mxu0 }
 0x14a   : > { %v2730_v38 = vpop.f32.mrf.mxu1  ;;  %v1805_v0 = vadd.f32 %v2674_v45, %v1285_v42  ;;  %v1813_v5 = vadd.f32 %v2680_v51, %v1293_v19 }
 0x14b   : > { %v2691_v40 = vpop.f32.mrf.mxu0 }
 0x14c   : > { %v2731_v47 = vpop.f32.mrf.mxu1  ;;  %v1869_v6 = vadd.f32 %v2714_v34, %v1805_v0  ;;  %v2643_v40 = vadd.f32 %v3581_v59, %v3577_v56  ;;  %v1874_v56 = vadd.f32 %v2717_v55, %v1810_v15  ;;  %v1877_v14 = vadd.f32 %v2720_v9, %v1813_v5  ;;  %v3721_v54 = vld [vmem:[#allocation9_spill] sm:$0xff] }
 0x14d   : > { %v2749_v13 = vpop.f32.mrf.mxu0 }
 0x14e   : > { %v2789_v46 = vpop.f32.mrf.mxu1  ;;  %v1298_v43 = vadd.f32 %v2643_v40, %v1234_v8  ;;  %v3719_v8 = vld [vmem:[#allocation10_spill] sm:$0xff]  ;;  %v3720_v40 = vld [vmem:[#allocation7_spill] sm:$0xff] }
 0x14f   : > { %v2750_v23 = vpop.f32.mrf.mxu0  ;;  %v2689_v51 = vadd.f32 %v3628_v37, %v3719_v8 }
 0x150   : > { %v2751_v39 = vadd.f32 %v2750_v23, %v2749_v13  ;;  %v2790_v17 = vpop.f32.mrf.mxu1  ;;  %v2683_v13 = vadd.f32 %v3611_v29, %v3607_v26  ;;  %v1301_v23 = vadd.f32 %v2646_v44, %v1237_v52 }
 0x151   : > { %v2752_v48 = vpop.f32.mrf.mxu0  ;;  %v2791_v35 = vadd.f32 %v2790_v17, %v2789_v46  ;;  %v3713_v46 = vld [vmem:[#allocation8_spill] sm:$0xff] }
 0x152   : > { %v1930_v7 = vadd.f32 %v2751_v39, %v1866_v1  ;;  %v2792_v36 = vpop.f32.mrf.mxu1  ;;  %v1818_v27 = vadd.f32 %v2683_v13, %v1298_v43  ;;  %v2686_v63 = vadd.f32 %v3713_v46, %v3615_v31  ;;  %v3714_v1 = vld [vmem:[#allocation2_spill] sm:$0xff] }
 0x153   : > { %v2753_v16 = vpop.f32.mrf.mxu0  ;;  %v1242_v0 = vadd.f32 %v2609_v10, %v3714_v1  ;;  %v3716_v39 = vld [vmem:[#allocation6_spill] sm:$0xff] }
 0x154   : > { %v1994_v20 = vadd.f32 %v2791_v35, %v1930_v7  ;;  %v2754_v38 = vadd.f32 %v2753_v16, %v2752_v48  ;;  %v2793_v53 = vpop.f32.mrf.mxu1  ;;  %v2723_v17 = vadd.f32 %v3716_v39, %v3715_v4  ;;  %v3717_v7 = vld [vmem:[#allocation3_spill] sm:$0xff]  ;;  %v3718_v35 = vld [vmem:[#allocation4_spill] sm:$0xff]  ;;  %v1821_v12 = vadd.f32 %v2686_v63, %v1301_v23 }
 0x155   : > { %v2755_v21 = vpop.f32.mrf.mxu0  ;;  %v2794_v2 = vadd.f32 %v2793_v53, %v2792_v36  ;;  %v2649_v36 = vadd.f32 %v3718_v35, %v3717_v7 }
 0x156   : > { %v2029_v22 = vadd.f32 %v3648_v57, %v1994_v20  ;;  %v1933_v25 = vadd.f32 %v2754_v38, %v1869_v6  ;;  %v2795_v3 = vpop.f32.mrf.mxu1  ;;  %v1882_v15 = vadd.f32 %v2723_v17, %v1818_v27 }
 0x157   : > { %v2756_v41 = vpop.f32.mrf.mxu0  ;;  %v1306_v19 = vadd.f32 %v2649_v36, %v1242_v0 }
 0x158   : > { %v1997_v59 = vadd.f32 %v2794_v2, %v1933_v25  ;;  %v2757_v58 = vadd.f32 %v2756_v41, %v2755_v21  ;;  %v2796_v50 = vpop.f32.mrf.mxu1  ;;  %v2043_v45 = vmul.f32 0.01, %v2029_v22  ;;  %vm2036_vm1 = vcmp.gt.f32.partialorder %v2029_v22, 0.0 }
 0x159   : > { %v2758_v47 = vpop.f32.mrf.mxu0  ;;  %v2797_v33 = vadd.f32 %v2796_v50, %v2795_v3  ;;  %v2726_v21 = vadd.f32 %v3721_v54, %v3720_v40  ;;  %v1826_v13 = vadd.f32 %v2689_v51, %v1306_v19  ;;  %v3722_v50 = vld [vmem:[#allocation11_spill] sm:$0xff] }
 0x15a   : > { %v2030_v26 = vadd.f32 %v3648_v57, %v1997_v59  ;;  %v1938_v29 = vadd.f32 %v2757_v58, %v1874_v56  ;;  %v2798_v42 = vpop.f32.mrf.mxu1  ;;  %v2050_v18 = vsel %vm2036_vm1, %v2029_v22, %v2043_v45  ;;  %v2729_v52 = vadd.f32 %v3630_v28, %v3722_v50 }
 0x15b   : > { %v2759_v32 = vpop.f32.mrf.mxu0  ;;  %v1885_v37 = vadd.f32 %v2726_v21, %v1821_v12 }
 0x15c   : > { %vm2037_vm2 = vcmp.gt.f32.partialorder %v2030_v26, 0.0  ;;  %v2044_v24 = vmul.f32 0.01, %v2030_v26  ;;  %v2002_v11 = vadd.f32 %v2797_v33, %v1938_v29  ;;  %v2760_v61 = vadd.f32 %v2759_v32, %v2758_v47  ;;  %v2799_v49 = vpop.f32.mrf.mxu1 }
 0x15d   : > { %v2761_v60 = vpop.f32.mrf.mxu0  ;;  %v2800_v30 = vadd.f32 %v2799_v49, %v2798_v42 }
 0x15e   : > { %v2051_v62 = vsel %vm2037_vm2, %v2030_v26, %v2044_v24  ;;  %v2031_v31 = vadd.f32 %v3648_v57, %v2002_v11  ;;  %v1941_v48 = vadd.f32 %v2760_v61, %v1877_v14  ;;  %v2801_v34 = vpop.f32.mrf.mxu1  ;;  %v1890_v14 = vadd.f32 %v2729_v52, %v1826_v13 }
 0x15f   : > { %v2479_v16 = vpack.c.bf16 %v2051_v62, %v2050_v18  ;;  %v2762_v6 = vpop.f32.mrf.mxu0 }
 0x160   : > { %v2005_v20 = vadd.f32 %v2800_v30, %v1941_v48  ;;  %v2763_v38 = vadd.f32 %v2762_v6, %v2761_v60  ;;  %v2802_v53 = vpop.f32.mrf.mxu1  ;;  %v2045_v55 = vmul.f32 0.01, %v2031_v31  ;;  %vm2038_vm3 = vcmp.gt.f32.partialorder %v2031_v31, 0.0 }
 0x161   : > { %2480 = vst [vmem:[%s3677_s8] sm:$0xff] %v2479_v16   ;;  %v2764_v22 = vpop.f32.mrf.mxu0  ;;  %v2803_v3 = vadd.f32 %v2802_v53, %v2801_v34 }
 0x162   : > { %v2032_v25 = vadd.f32 %v3648_v57, %v2005_v20  ;;  %v1946_v2 = vadd.f32 %v2763_v38, %v1882_v15  ;;  %v2804_v5 = vpop.f32.mrf.mxu1  ;;  %v2052_v10 = vsel %vm2038_vm3, %v2031_v31, %v2045_v55 }
 0x163   : > { %v2765_v41 = vpop.f32.mrf.mxu0 }
 0x164   : > { %vm2039_vm4 = vcmp.gt.f32.partialorder %v2032_v25, 0.0  ;;  %v2046_v43 = vmul.f32 0.01, %v2032_v25  ;;  %v2010_v56 = vadd.f32 %v2803_v3, %v1946_v2  ;;  %v2766_v59 = vadd.f32 %v2765_v41, %v2764_v22  ;;  %v2805_v58 = vpop.f32.mrf.mxu1 }
 0x165   : > { %v2767_v9 = vpop.f32.mrf.mxu0  ;;  %v2806_v29 = vadd.f32 %v2805_v58, %v2804_v5 }
 0x166   : > { %v2053_v45 = vsel %vm2039_vm4, %v2032_v25, %v2046_v43  ;;  %v2033_v47 = vadd.f32 %v3648_v57, %v2010_v56  ;;  %v1949_v26 = vadd.f32 %v2766_v59, %v1885_v37  ;;  %v2807_v33 = vpop.f32.mrf.mxu1 }
 0x167   : > { %v2484_v42 = vpack.c.bf16 %v2053_v45, %v2052_v10  ;;  %v2768_v44 = vpop.f32.mrf.mxu0 }
 0x168   : > { %v2013_v27 = vadd.f32 %v2806_v29, %v1949_v26  ;;  %v2769_v46 = vadd.f32 %v2768_v44, %v2767_v9  ;;  %v2808_v63 = vpop.f32.mrf.mxu1  ;;  %v2047_v24 = vmul.f32 0.01, %v2033_v47  ;;  %vm2040_vm5 = vcmp.gt.f32.partialorder %v2033_v47, 0.0 }
 0x169   : > { %2491 = vst [vmem:[%s3677_s8 + $0x8] sm:$0xff] %v2484_v42   ;;  %v2770_v32 = vpop.f32.mrf.mxu0  ;;  %v2809_v61 = vadd.f32 %v2808_v63, %v2807_v33 }
 0x16a   : > { %v2034_v11 = vadd.f32 %v3648_v57, %v2013_v27  ;;  %v1954_v28 = vadd.f32 %v2769_v46, %v1890_v14  ;;  %v2810_v49 = vpop.f32.mrf.mxu1  ;;  %v2054_v39 = vsel %vm2040_vm5, %v2033_v47, %v2047_v24 }
 0x16b   : > { %v2771_v23 = vpop.f32.mrf.mxu0 }
 0x16c   : > { %vm2041_vm6 = vcmp.gt.f32.partialorder %v2034_v11, 0.0  ;;  %v2048_v1 = vmul.f32 0.01, %v2034_v11  ;;  %v2018_v0 = vadd.f32 %v2809_v61, %v1954_v28  ;;  %v2811_v4 = vpop.f32.mrf.mxu1 }
 0x16e   : > { %v2055_v17 = vsel %vm2041_vm6, %v2034_v11, %v2048_v1  ;;  %v2035_v18 = vadd.f32 %v3648_v57, %v2018_v0 }
 0x16f   : > { %v2489_v60 = vpack.c.bf16 %v2055_v17, %v2054_v39 }
 0x170   : > { %vm2042_vm7 = vcmp.gt.f32.partialorder %v2035_v18, 0.0  ;;  %v2049_v62 = vmul.f32 0.01, %v2035_v18 }
 0x171   : > { %2492 = vst [vmem:[%s3677_s8 + $0x10] sm:$0xff] %v2489_v60  }
 0x172   : > { %v2056_v31 = vsel %vm2042_vm7, %v2035_v18, %v2049_v62 }
 0x173   : > { %v2475_v48 = vpack.c.bf16 %v2056_v31, %v2056_v31 }
 0x175   : > { %2092 = vst [vmem:[%s3677_s8 + $0x18] sm:$0x3] %v2475_v48 }
 0x176 PF: > { %s13_s12 = sadd.s32 1, %s2973_s12  }
 0x177   : > { %p10_p4 = scmp.ge.s32.totalorder %s13_s12, 4  }
 0x179   :  { %12 = sbr.rel (!%p10_p4) target bundleno = 1 (0x1), region = 63 }

// kernel: conv_critic_forward.7
= control target key start
LH: loop header
LB: loop body
LE: loop exit
PB: predicated region body
PF: predicated region fallthrough
CT: control target
= control target key end

     0   :  { %s2339_s12 = smov 0   ;;  %s2769_s0 = inlined_call_operand.vmem [shape: bf16[2,12,1024], index: 0, kind: input, shape index: {}]   ;;  %s2770_s1 = inlined_call_operand.vmem [shape: bf16[2,1024,128], index: 1, kind: input, shape index: {}]   ;;  %s2771_s2 = inlined_call_operand.vmem [shape: f32[1,128], index: 2, kind: input, shape index: {}]   ;;  %s2772_s3 = inlined_call_operand.vmem [shape: bf16[2,10,128], index: 3, kind: output, shape index: {}]  }
   0x1 LB: > { %s1709_s13 = sadd.s32 4294967295, %s2317_s12   ;;  %p1713_p0 = scmp.ge.s32.totalorder %s2317_s12, 1  ;;  %s2317_s12 = sphi %s2339_s12, %s13_s12  }
   0x2   : > { %p137_p1 = scmp.lt.s32.totalorder %s2317_s12, 3 }
   0x4   : > { %p138_p2 = pnand %p1713_p0, %p137_p1 }
   0x5   : > { %p161_p3 = scmp.lt.s32.totalorder (!%p138_p2), %s1709_s13, 1 }
   0x6   : > { %141 = sbr.rel (%p138_p2) target bundleno = 354 (0x162), region = 32 }
   0xb   : > { %v2183_v0 = vld [vmem:[%s2770_s1 + $0x278] sm:$0xff]   ;;  %v2187_v4 = vld [vmem:[%s2770_s1 + $0x270] sm:$0xff]   ;;  %v2191_v8 = vld [vmem:[%s2770_s1 + $0x268] sm:$0xff]   ;;  %s2774_s13 = smov (!%p161_p3, %s1709_s13), 1 }
   0xc   : > { %v2184_v1 = vld [vmem:[%s2770_s1 + $0x2f8] sm:$0xff]   ;;  %1999 = vmatprep.subr.bf16.mxu0 %v2183_v0  ;;  %v2188_v5 = vld [vmem:[%s2770_s1 + $0x2f0] sm:$0xff]   ;;  %v2192_v9 = vld [vmem:[%s2770_s1 + $0x2e8] sm:$0xff]   ;;  %s1995_s18 = sshll.u32 %s2774_s13, 6  ;;  %s1996_s6 = sshll.u32 %s2774_s13, 3 }
   0xd   : > { %v2185_v2 = vld [vmem:[%s2770_s1 + $0x238] sm:$0xff]   ;;  %2021 = vmatprep.subr.bf16.mxu1 %v2184_v1  ;;  %v2189_v6 = vld [vmem:[%s2770_s1 + $0x230] sm:$0xff]   ;;  %v2193_v10 = vld [vmem:[%s2770_s1 + $0x228] sm:$0xff]   ;;  %s2447_s27 = scalar_lea.vmem %s2769_s0, %s1995_s18  ;;  %s170_s9 = scalar_lea.vmem %s2772_s3, %s1996_s6 }
   0xe   : > { %v2186_v3 = vld [vmem:[%s2770_s1 + $0x2b8] sm:$0xff]   ;;  %2000 = vmatpush3.bf16.msra.mxu0 %v2185_v2  ;;  %v2190_v7 = vld [vmem:[%s2770_s1 + $0x2b0] sm:$0xff]   ;;  %v2194_v11 = vld [vmem:[%s2770_s1 + $0x2a8] sm:$0xff]  }
   0xf   : > { %2022 = vmatpush3.bf16.msra.mxu1 %v2186_v3  ;;  %2001 = vmatprep.subr.bf16.mxu0 %v2187_v4  ;;  %v2195_v12 = vld [vmem:[%s2770_s1 + $0x260] sm:$0xff]   ;;  %v2199_v16 = vld [vmem:[%s2770_s1 + $0x258] sm:$0xff]   ;;  %v2203_v20 = vld [vmem:[%s2770_s1 + $0x250] sm:$0xff]  }
  0x10   : > { %2023 = vmatprep.subr.bf16.mxu1 %v2188_v5  ;;  %v2196_v13 = vld [vmem:[%s2770_s1 + $0x2e0] sm:$0xff]   ;;  %v2200_v17 = vld [vmem:[%s2770_s1 + $0x2d8] sm:$0xff]   ;;  %v2204_v21 = vld [vmem:[%s2770_s1 + $0x2d0] sm:$0xff]  }
  0x11   : > { %v2197_v14 = vld [vmem:[%s2770_s1 + $0x220] sm:$0xff]   ;;  %v2201_v18 = vld [vmem:[%s2770_s1 + $0x218] sm:$0xff]   ;;  %v2205_v22 = vld [vmem:[%s2770_s1 + $0x210] sm:$0xff]  }
  0x12   : > { %2002 = vmatpush3.bf16.msra.mxu0 %v2189_v6  ;;  %v2198_v15 = vld [vmem:[%s2770_s1 + $0x2a0] sm:$0xff]   ;;  %v2202_v19 = vld [vmem:[%s2770_s1 + $0x298] sm:$0xff]   ;;  %v2206_v23 = vld [vmem:[%s2770_s1 + $0x290] sm:$0xff]  }
  0x13   : > { %2024 = vmatpush3.bf16.msra.mxu1 %v2190_v7  ;;  %2003 = vmatprep.subr.bf16.mxu0 %v2191_v8  ;;  %v2207_v24 = vld [vmem:[%s2770_s1 + $0x248] sm:$0xff]   ;;  %v2211_v28 = vld [vmem:[%s2770_s1 + $0x240] sm:$0xff]   ;;  %v2215_v40 = vld [vmem:[%s2770_s1 + $0x378] sm:$0xff]  }
  0x14   : > { %2025 = vmatprep.subr.bf16.mxu1 %v2192_v9  ;;  %v2208_v25 = vld [vmem:[%s2770_s1 + $0x2c8] sm:$0xff]   ;;  %v2212_v29 = vld [vmem:[%s2770_s1 + $0x2c0] sm:$0xff]   ;;  %v2216_v43 = vld [vmem:[%s2770_s1 + $0x3f8] sm:$0xff]  }
  0x15   : > { %v2209_v26 = vld [vmem:[%s2770_s1 + $0x208] sm:$0xff]   ;;  %v2213_v30 = vld [vmem:[%s2770_s1 + $0x200] sm:$0xff]   ;;  %v2217_v44 = vld [vmem:[%s2770_s1 + $0x338] sm:$0xff]  }
  0x16   : > { %2004 = vmatpush3.bf16.msra.mxu0 %v2193_v10  ;;  %v2210_v27 = vld [vmem:[%s2770_s1 + $0x288] sm:$0xff]   ;;  %v2214_v31 = vld [vmem:[%s2770_s1 + $0x280] sm:$0xff]   ;;  %v2218_v47 = vld [vmem:[%s2770_s1 + $0x3b8] sm:$0xff]  }
  0x17   : > { %2026 = vmatpush3.bf16.msra.mxu1 %v2194_v11  ;;  %2005 = vmatprep.subr.bf16.mxu0 %v2195_v12  ;;  %v309_v32 = vld [vmem:[%s2447_s27] sm:$0xee]  ;;  %v310_v34 = vld [vmem:[%s2447_s27 + $0x8] sm:$0xee]  ;;  %v2219_v48 = vld [vmem:[%s2770_s1 + $0x370] sm:$0xff]  }
  0x18   : > { %2027 = vmatprep.subr.bf16.mxu1 %v2196_v13  ;;  %v313_v33 = vld [vmem:[%s2447_s27 + $0x20] sm:$0x33]  ;;  %v314_v37 = vld [vmem:[%s2447_s27 + $0x28] sm:$0x33]  ;;  %v2220_v49 = vld [vmem:[%s2770_s1 + $0x3f0] sm:$0xff]  }
  0x19   : > { %v1846_v35 = vcombine.low %v309_v32, %v313_v33  ;;  %v1847_v36 = vcombine.high %v309_v32, %v313_v33  ;;  %v1848_v38 = vcombine.low %v310_v34, %v314_v37  ;;  %v1849_v39 = vcombine.high %v310_v34, %v314_v37  ;;  %v2221_v50 = vld [vmem:[%s2770_s1 + $0x330] sm:$0xff]   ;;  %v2223_v52 = vld [vmem:[%s2770_s1 + $0x368] sm:$0xff]   ;;  %v2227_v56 = vld [vmem:[%s2770_s1 + $0x360] sm:$0xff]  }
  0x1a   : > { %2006 = vmatpush3.bf16.msra.mxu0 %v2197_v14  ;;  %v2222_v51 = vld [vmem:[%s2770_s1 + $0x3b0] sm:$0xff]   ;;  %v2224_v53 = vld [vmem:[%s2770_s1 + $0x3e8] sm:$0xff]   ;;  %v2228_v57 = vld [vmem:[%s2770_s1 + $0x3e0] sm:$0xff]  }
  0x1b   : > { %2028 = vmatpush3.bf16.msra.mxu1 %v2198_v15  ;;  %2007 = vmatprep.subr.bf16.mxu0 %v2199_v16  ;;  %v478_v41 = vrot.slane %v1846_v35, 1  ;;  %v479_v42 = vrot.slane %v1847_v36, 1  ;;  %v480_v45 = vrot.slane %v1848_v38, 1  ;;  %v481_v46 = vrot.slane %v1849_v39, 1  ;;  %v2225_v54 = vld [vmem:[%s2770_s1 + $0x328] sm:$0xff]   ;;  %v2229_v58 = vld [vmem:[%s2770_s1 + $0x320] sm:$0xff]  }
  0x1c   : > { %2029 = vmatprep.subr.bf16.mxu1 %v2200_v17  ;;  %v2226_v55 = vld [vmem:[%s2770_s1 + $0x3a8] sm:$0xff]   ;;  %v2230_v59 = vld [vmem:[%s2770_s1 + $0x3a0] sm:$0xff]   ;;  %v2231_v60 = vld [vmem:[%s2770_s1 + $0x358] sm:$0xff]  }
  0x1d   : > { %910 = vmatprep.mubr.bf16.mxu0 %v479_v42  ;;  %951 = vmatprep.mubr.bf16.mxu1 %v481_v46  ;;  %v2232_v61 = vld [vmem:[%s2770_s1 + $0x3d8] sm:$0xff]   ;;  %v2235_v0 = vld [vmem:[%s2770_s1 + $0x350] sm:$0xff]   ;;  %v2239_v4 = vld [vmem:[%s2770_s1 + $0x348] sm:$0xff]  }
  0x1e   : > { %2008 = vmatpush3.bf16.msra.mxu0 %v2201_v18  ;;  %v2233_v62 = vld [vmem:[%s2770_s1 + $0x318] sm:$0xff]   ;;  %v2236_v1 = vld [vmem:[%s2770_s1 + $0x3d0] sm:$0xff]   ;;  %v2240_v5 = vld [vmem:[%s2770_s1 + $0x3c8] sm:$0xff]  }
  0x1f   : > { %2030 = vmatpush3.bf16.msra.mxu1 %v2202_v19  ;;  %2009 = vmatprep.subr.bf16.mxu0 %v2203_v20  ;;  %v2234_v63 = vld [vmem:[%s2770_s1 + $0x398] sm:$0xff]   ;;  %v2237_v2 = vld [vmem:[%s2770_s1 + $0x310] sm:$0xff]   ;;  %v2241_v6 = vld [vmem:[%s2770_s1 + $0x308] sm:$0xff]  }
  0x20   : > { %2031 = vmatprep.subr.bf16.mxu1 %v2204_v21  ;;  %v2238_v3 = vld [vmem:[%s2770_s1 + $0x390] sm:$0xff]   ;;  %v2242_v7 = vld [vmem:[%s2770_s1 + $0x388] sm:$0xff]   ;;  %v2243_v8 = vld [vmem:[%s2770_s1 + $0x340] sm:$0xff]  }
  0x21   : > { %v2244_v9 = vld [vmem:[%s2770_s1 + $0x3c0] sm:$0xff]   ;;  %v311_v12 = vld [vmem:[%s2447_s27 + $0x10] sm:$0xee]  ;;  %v312_v14 = vld [vmem:[%s2447_s27 + $0x18] sm:$0xee] }
  0x22   : > { %2010 = vmatpush3.bf16.msra.mxu0 %v2205_v22  ;;  %v2245_v10 = vld [vmem:[%s2770_s1 + $0x300] sm:$0xff]   ;;  %v315_v13 = vld [vmem:[%s2447_s27 + $0x30] sm:$0x33]  ;;  %v316_v15 = vld [vmem:[%s2447_s27 + $0x38] sm:$0x33] }
  0x23   : > { %2032 = vmatpush3.bf16.msra.mxu1 %v2206_v23  ;;  %2011 = vmatprep.subr.bf16.mxu0 %v2207_v24  ;;  %v2246_v11 = vld [vmem:[%s2770_s1 + $0x380] sm:$0xff]   ;;  %v1850_v16 = vcombine.low %v311_v12, %v315_v13  ;;  %v1851_v17 = vcombine.high %v311_v12, %v315_v13  ;;  %v1852_v18 = vcombine.low %v312_v14, %v316_v15  ;;  %v2247_v20 = vld [vmem:[%s2770_s1 + $0x78] sm:$0xff]   ;;  %v2255_v32 = vld [vmem:[%s2770_s1 + $0x68] sm:$0xff]  }
  0x24   : > { %2033 = vmatprep.subr.bf16.mxu1 %v2208_v25  ;;  %v1853_v19 = vcombine.high %v312_v14, %v316_v15  ;;  %v2248_v21 = vld [vmem:[%s2770_s1 + $0xf8] sm:$0xff]   ;;  %v2256_v33 = vld [vmem:[%s2770_s1 + $0xe8] sm:$0xff]   ;;  %v2259_v36 = vld [vmem:[%s2770_s1 + $0x60] sm:$0xff]  }
  0x25   : > { %v482_v22 = vrot.slane %v1850_v16, 1  ;;  %v483_v23 = vrot.slane %v1851_v17, 1  ;;  %v484_v24 = vrot.slane %v1852_v18, 1  ;;  %v2257_v34 = vld [vmem:[%s2770_s1 + $0x28] sm:$0xff]   ;;  %v2260_v37 = vld [vmem:[%s2770_s1 + $0xe0] sm:$0xff]   ;;  %v2265_v42 = vld [vmem:[%s2770_s1 + $0x18] sm:$0xff]  }
  0x26   : > { %2012 = vmatpush3.bf16.msra.mxu0 %v2209_v26  ;;  %v485_v25 = vrot.slane %v1853_v19, 1  ;;  %v2249_v26 = vld [vmem:[%s2770_s1 + $0x38] sm:$0xff]   ;;  %v2258_v35 = vld [vmem:[%s2770_s1 + $0xa8] sm:$0xff]   ;;  %v2261_v38 = vld [vmem:[%s2770_s1 + $0x20] sm:$0xff]  }
  0x27   : > { %2034 = vmatpush3.bf16.msra.mxu1 %v2210_v27  ;;  %2013 = vmatprep.subr.bf16.mxu0 %v2211_v28  ;;  %v2250_v27 = vld [vmem:[%s2770_s1 + $0xb8] sm:$0xff]   ;;  %v2251_v28 = vld [vmem:[%s2770_s1 + $0x70] sm:$0xff]   ;;  %v2262_v39 = vld [vmem:[%s2770_s1 + $0xa0] sm:$0xff]  }
  0x28   : > { %2035 = vmatprep.subr.bf16.mxu1 %v2212_v29  ;;  %v2252_v29 = vld [vmem:[%s2770_s1 + $0xf0] sm:$0xff]   ;;  %v2291_v12 = vld [vmem:[%s2770_s1 + $0x160] sm:$0xff]   ;;  %v2295_v16 = vld [vmem:[%s2770_s1 + $0x158] sm:$0xff]  }
  0x29   : > { %v2269_v46 = vld [vmem:[%s2770_s1 + $0x10] sm:$0xff]   ;;  %v2292_v13 = vld [vmem:[%s2770_s1 + $0x1e0] sm:$0xff]   ;;  %v2296_v17 = vld [vmem:[%s2770_s1 + $0x1d8] sm:$0xff]  }
  0x2a   : > { %2014 = vmatpush3.bf16.msra.mxu0 %v2213_v30  ;;  %v2253_v30 = vld [vmem:[%s2770_s1 + $0x30] sm:$0xff]   ;;  %v2293_v14 = vld [vmem:[%s2770_s1 + $0x120] sm:$0xff]   ;;  %v2297_v18 = vld [vmem:[%s2770_s1 + $0x118] sm:$0xff]  }
  0x2b   : > { %2036 = vmatpush3.bf16.msra.mxu1 %v2214_v31  ;;  %2043 = vmatprep.subr.bf16.mxu0 %v2215_v40  ;;  %v2254_v31 = vld [vmem:[%s2770_s1 + $0xb0] sm:$0xff]   ;;  %v2263_v40 = vld [vmem:[%s2770_s1 + $0x58] sm:$0xff]   ;;  %v2294_v15 = vld [vmem:[%s2770_s1 + $0x1a0] sm:$0xff]  }
  0x2c   : > { %2065 = vmatprep.subr.bf16.mxu1 %v2216_v43  ;;  %v2266_v43 = vld [vmem:[%s2770_s1 + $0x98] sm:$0xff]  }
  0x2d   : > { %911 = vmatmul.mubr.bf16.vlgmr.msra.gmra.mxu0 %v478_v41  ;;  %v2264_v41 = vld [vmem:[%s2770_s1 + $0xd8] sm:$0xff]  }
  0x2e   : > { %952 = vmatmul.mubr.bf16.vlgmr.msra.gmra.mxu1 %v480_v45  ;;  %2044 = vmatpush3.bf16.msra.mxu0 %v2217_v44  ;;  %v2267_v44 = vld [vmem:[%s2770_s1 + $0x50] sm:$0xff]   ;;  %v2298_v19 = vld [vmem:[%s2770_s1 + $0x198] sm:$0xff]  }
  0x2f   : > { %2066 = vmatpush3.bf16.msra.mxu1 %v2218_v47  ;;  %2045 = vmatprep.subr.bf16.mxu0 %v2219_v48  ;;  %v2268_v45 = vld [vmem:[%s2770_s1 + $0xd0] sm:$0xff]   ;;  %v2271_v48 = vld [vmem:[%s2770_s1 + $0x48] sm:$0xff]  }
  0x30   : > { %2067 = vmatprep.subr.bf16.mxu1 %v2220_v49  ;;  %992 = vmatprep.mubr.bf16.mxu0 %v483_v23  ;;  %v2270_v47 = vld [vmem:[%s2770_s1 + $0x90] sm:$0xff]   ;;  %v2272_v49 = vld [vmem:[%s2770_s1 + $0xc8] sm:$0xff]  }
  0x31   : > { %1033 = vmatprep.mubr.bf16.mxu1 %v485_v25  ;;  %v2302_v23 = vld [vmem:[%s2770_s1 + $0x190] sm:$0xff]   ;;  %v2304_v25 = vld [vmem:[%s2770_s1 + $0x1c8] sm:$0xff]  }
  0x32   : > { %2046 = vmatpush3.bf16.msra.mxu0 %v2221_v50  ;;  %v2273_v50 = vld [vmem:[%s2770_s1 + $0x8] sm:$0xff]  }
  0x33   : > { %2068 = vmatpush3.bf16.msra.mxu1 %v2222_v51  ;;  %2047 = vmatprep.subr.bf16.mxu0 %v2223_v52  ;;  %v2274_v51 = vld [vmem:[%s2770_s1 + $0x88] sm:$0xff]   ;;  %v2275_v52 = vld [vmem:[%s2770_s1 + $0x40] sm:$0xff]  }
  0x34   : > { %2069 = vmatprep.subr.bf16.mxu1 %v2224_v53  ;;  %v2276_v53 = vld [vmem:[%s2770_s1 + $0xc0] sm:$0xff]  }
  0x36   : > { %2048 = vmatpush3.bf16.msra.mxu0 %v2225_v54  ;;  %v2277_v54 = vld [vmem:[%s2770_s1] sm:$0xff]  }
  0x37   : > { %2070 = vmatpush3.bf16.msra.mxu1 %v2226_v55  ;;  %2049 = vmatprep.subr.bf16.mxu0 %v2227_v56  ;;  %v2278_v55 = vld [vmem:[%s2770_s1 + $0x80] sm:$0xff]  }
  0x38   : > { %2071 = vmatprep.subr.bf16.mxu1 %v2228_v57  ;;  %v173_v56 = vld [vmem:[%s2447_s27] sm:$0xff] }
  0x39   : > { %v177_v57 = vld [vmem:[%s2447_s27 + $0x20] sm:$0x11] }
  0x3a   : > { %2050 = vmatpush3.bf16.msra.mxu0 %v2229_v58  ;;  %v174_v58 = vld [vmem:[%s2447_s27 + $0x8] sm:$0xff] }
  0x3b   : > { %2072 = vmatpush3.bf16.msra.mxu1 %v2230_v59  ;;  %2051 = vmatprep.subr.bf16.mxu0 %v2231_v60  ;;  %v178_v59 = vld [vmem:[%s2447_s27 + $0x28] sm:$0x11]  ;;  %v1918_v60 = vcombine.low %v173_v56, %v177_v57 }
  0x3c   : > { %2073 = vmatprep.subr.bf16.mxu1 %v2232_v61  ;;  %v1919_v61 = vcombine.high %v173_v56, %v177_v57 }
  0x3e   : > { %2052 = vmatpush3.bf16.msra.mxu0 %v2233_v62  ;;  %v1920_v62 = vcombine.low %v174_v58, %v178_v59 }
  0x3f   : > { %2074 = vmatpush3.bf16.msra.mxu1 %v2234_v63  ;;  %2053 = vmatprep.subr.bf16.mxu0 %v2235_v0  ;;  %v2279_v63 = vld [vmem:[%s2770_s1 + $0x178] sm:$0xff]   ;;  %v1921_v0 = vcombine.high %v174_v58, %v178_v59 }
  0x40   : > { %2075 = vmatprep.subr.bf16.mxu1 %v2236_v1  ;;  %v2280_v1 = vld [vmem:[%s2770_s1 + $0x1f8] sm:$0xff]  }
  0x42   : > { %2054 = vmatpush3.bf16.msra.mxu0 %v2237_v2  ;;  %v2281_v2 = vld [vmem:[%s2770_s1 + $0x138] sm:$0xff]  }
  0x43   : > { %2076 = vmatpush3.bf16.msra.mxu1 %v2238_v3  ;;  %2055 = vmatprep.subr.bf16.mxu0 %v2239_v4  ;;  %v2282_v3 = vld [vmem:[%s2770_s1 + $0x1b8] sm:$0xff]   ;;  %v2283_v4 = vld [vmem:[%s2770_s1 + $0x170] sm:$0xff]  }
  0x44   : > { %2077 = vmatprep.subr.bf16.mxu1 %v2240_v5  ;;  %v2284_v5 = vld [vmem:[%s2770_s1 + $0x1f0] sm:$0xff]  }
  0x46   : > { %2056 = vmatpush3.bf16.msra.mxu0 %v2241_v6  ;;  %v2285_v6 = vld [vmem:[%s2770_s1 + $0x130] sm:$0xff]  }
  0x47   : > { %2078 = vmatpush3.bf16.msra.mxu1 %v2242_v7  ;;  %2057 = vmatprep.subr.bf16.mxu0 %v2243_v8  ;;  %v2286_v7 = vld [vmem:[%s2770_s1 + $0x1b0] sm:$0xff]   ;;  %v2287_v8 = vld [vmem:[%s2770_s1 + $0x168] sm:$0xff]  }
  0x48   : > { %2079 = vmatprep.subr.bf16.mxu1 %v2244_v9  ;;  %v2288_v9 = vld [vmem:[%s2770_s1 + $0x1e8] sm:$0xff]  }
  0x4a   : > { %2058 = vmatpush3.bf16.msra.mxu0 %v2245_v10  ;;  %v2289_v10 = vld [vmem:[%s2770_s1 + $0x128] sm:$0xff]  }
  0x4b   : > { %2080 = vmatpush3.bf16.msra.mxu1 %v2246_v11  ;;  %2087 = vmatprep.subr.bf16.mxu0 %v2247_v20  ;;  %v2290_v11 = vld [vmem:[%s2770_s1 + $0x1a8] sm:$0xff]   ;;  %v2299_v20 = vld [vmem:[%s2770_s1 + $0x150] sm:$0xff]  }
  0x4c   : > { %2109 = vmatprep.subr.bf16.mxu1 %v2248_v21  ;;  %v2300_v21 = vld [vmem:[%s2770_s1 + $0x1d0] sm:$0xff]  }
  0x4d   : > { %993 = vmatmul.mubr.bf16.vlgmr.msra.gmra.mxu0 %v482_v22  ;;  %v2301_v22 = vld [vmem:[%s2770_s1 + $0x110] sm:$0xff]  }
  0x4e   : > { %1034 = vmatmul.mubr.bf16.vlgmr.msra.gmra.mxu1 %v484_v24  ;;  %2088 = vmatpush3.bf16.msra.mxu0 %v2249_v26  ;;  %v2303_v24 = vld [vmem:[%s2770_s1 + $0x148] sm:$0xff]  }
  0x4f   : > { %2110 = vmatpush3.bf16.msra.mxu1 %v2250_v27  ;;  %2089 = vmatprep.subr.bf16.mxu0 %v2251_v28  ;;  %v2305_v26 = vld [vmem:[%s2770_s1 + $0x108] sm:$0xff]   ;;  %v2307_v28 = vld [vmem:[%s2770_s1 + $0x140] sm:$0xff]  }
  0x50   : > { %2111 = vmatprep.subr.bf16.mxu1 %v2252_v29  ;;  %1498 = vmatprep.mubr.bf16.mxu0 %v1919_v61  ;;  %v2306_v27 = vld [vmem:[%s2770_s1 + $0x188] sm:$0xff]   ;;  %v2308_v29 = vld [vmem:[%s2770_s1 + $0x1c0] sm:$0xff]  }
  0x51   : > { %1539 = vmatprep.mubr.bf16.mxu1 %v1921_v0 }
  0x52   : > { %2090 = vmatpush3.bf16.msra.mxu0 %v2253_v30  ;;  %v2309_v30 = vld [vmem:[%s2770_s1 + $0x100] sm:$0xff]  }
  0x53   : > { %2112 = vmatpush3.bf16.msra.mxu1 %v2254_v31  ;;  %2091 = vmatprep.subr.bf16.mxu0 %v2255_v32  ;;  %v2310_v31 = vld [vmem:[%s2770_s1 + $0x180] sm:$0xff]   ;;  %v175_v32 = vld [vmem:[%s2447_s27 + $0x10] sm:$0xff] }
  0x54   : > { %2113 = vmatprep.subr.bf16.mxu1 %v2256_v33  ;;  %v179_v33 = vld [vmem:[%s2447_s27 + $0x30] sm:$0x11] }
  0x56   : > { %2092 = vmatpush3.bf16.msra.mxu0 %v2257_v34  ;;  %v176_v34 = vld [vmem:[%s2447_s27 + $0x18] sm:$0xff] }
  0x57   : > { %2114 = vmatpush3.bf16.msra.mxu1 %v2258_v35  ;;  %2093 = vmatprep.subr.bf16.mxu0 %v2259_v36  ;;  %v1922_v35 = vcombine.low %v175_v32, %v179_v33  ;;  %v1923_v36 = vcombine.high %v175_v32, %v179_v33 }
  0x58   : > { %2115 = vmatprep.subr.bf16.mxu1 %v2260_v37  ;;  %v180_v37 = vld [vmem:[%s2447_s27 + $0x38] sm:$0x11] }
  0x5a   : > { %2094 = vmatpush3.bf16.msra.mxu0 %v2261_v38  ;;  %v1924_v38 = vcombine.low %v176_v34, %v180_v37 }
  0x5b   : > { %2116 = vmatpush3.bf16.msra.mxu1 %v2262_v39  ;;  %2095 = vmatprep.subr.bf16.mxu0 %v2263_v40  ;;  %v1925_v39 = vcombine.high %v176_v34, %v180_v37 }
  0x5c   : > { %2117 = vmatprep.subr.bf16.mxu1 %v2264_v41 }
  0x5e   : > { %2096 = vmatpush3.bf16.msra.mxu0 %v2265_v42 }
  0x5f   : > { %2118 = vmatpush3.bf16.msra.mxu1 %v2266_v43  ;;  %2097 = vmatprep.subr.bf16.mxu0 %v2267_v44 }
  0x60   : > { %2119 = vmatprep.subr.bf16.mxu1 %v2268_v45 }
  0x62   : > { %2098 = vmatpush3.bf16.msra.mxu0 %v2269_v46 }
  0x63   : > { %2120 = vmatpush3.bf16.msra.mxu1 %v2270_v47  ;;  %2099 = vmatprep.subr.bf16.mxu0 %v2271_v48 }
  0x64   : > { %2121 = vmatprep.subr.bf16.mxu1 %v2272_v49 }
  0x66   : > { %2100 = vmatpush3.bf16.msra.mxu0 %v2273_v50 }
  0x67   : > { %2122 = vmatpush3.bf16.msra.mxu1 %v2274_v51  ;;  %2101 = vmatprep.subr.bf16.mxu0 %v2275_v52 }
  0x68   : > { %2123 = vmatprep.subr.bf16.mxu1 %v2276_v53 }
  0x6a   : > { %2102 = vmatpush3.bf16.msra.mxu0 %v2277_v54 }
  0x6b   : > { %2124 = vmatpush3.bf16.msra.mxu1 %v2278_v55  ;;  %2131 = vmatprep.subr.bf16.mxu0 %v2279_v63 }
  0x6c   : > { %2153 = vmatprep.subr.bf16.mxu1 %v2280_v1 }
  0x6d   : > { %1499 = vmatmul.mubr.bf16.vlgmr.msra.gmra.mxu0 %v1918_v60 }
  0x6e   : > { %1540 = vmatmul.mubr.bf16.vlgmr.msra.gmra.mxu1 %v1920_v62  ;;  %2132 = vmatpush3.bf16.msra.mxu0 %v2281_v2 }
  0x6f   : > { %2154 = vmatpush3.bf16.msra.mxu1 %v2282_v3  ;;  %2133 = vmatprep.subr.bf16.mxu0 %v2283_v4 }
  0x70   : > { %2155 = vmatprep.subr.bf16.mxu1 %v2284_v5  ;;  %1580 = vmatprep.mubr.bf16.mxu0 %v1923_v36 }
  0x71   : > { %1621 = vmatprep.mubr.bf16.mxu1 %v1925_v39 }
  0x72   : > { %2134 = vmatpush3.bf16.msra.mxu0 %v2285_v6 }
  0x73   : > { %2156 = vmatpush3.bf16.msra.mxu1 %v2286_v7  ;;  %2135 = vmatprep.subr.bf16.mxu0 %v2287_v8 }
  0x74   : > { %2157 = vmatprep.subr.bf16.mxu1 %v2288_v9 }
  0x76   : > { %2136 = vmatpush3.bf16.msra.mxu0 %v2289_v10 }
  0x77   : > { %2158 = vmatpush3.bf16.msra.mxu1 %v2290_v11  ;;  %2137 = vmatprep.subr.bf16.mxu0 %v2291_v12 }
  0x78   : > { %2159 = vmatprep.subr.bf16.mxu1 %v2292_v13 }
  0x7a   : > { %2138 = vmatpush3.bf16.msra.mxu0 %v2293_v14 }
  0x7b   : > { %2160 = vmatpush3.bf16.msra.mxu1 %v2294_v15  ;;  %2139 = vmatprep.subr.bf16.mxu0 %v2295_v16 }
  0x7c   : > { %2161 = vmatprep.subr.bf16.mxu1 %v2296_v17 }
  0x7e   : > { %2140 = vmatpush3.bf16.msra.mxu0 %v2297_v18 }
  0x7f   : > { %2162 = vmatpush3.bf16.msra.mxu1 %v2298_v19  ;;  %2141 = vmatprep.subr.bf16.mxu0 %v2299_v20 }
  0x80   : > { %2163 = vmatprep.subr.bf16.mxu1 %v2300_v21 }
  0x82   : > { %2142 = vmatpush3.bf16.msra.mxu0 %v2301_v22 }
  0x83   : > { %2164 = vmatpush3.bf16.msra.mxu1 %v2302_v23  ;;  %2143 = vmatprep.subr.bf16.mxu0 %v2303_v24 }
  0x84   : > { %2165 = vmatprep.subr.bf16.mxu1 %v2304_v25 }
  0x86   : > { %2144 = vmatpush3.bf16.msra.mxu0 %v2305_v26 }
  0x87   : > { %2166 = vmatpush3.bf16.msra.mxu1 %v2306_v27  ;;  %2145 = vmatprep.subr.bf16.mxu0 %v2307_v28 }
  0x88   : > { %2167 = vmatprep.subr.bf16.mxu1 %v2308_v29 }
  0x8a   : > { %2146 = vmatpush3.bf16.msra.mxu0 %v2309_v30  ;;  %v1990_v30 = vld [vmem:[%s2771_s2] ss:$0 sm:$0xff] }
  0x8b   : > { %2168 = vmatpush3.bf16.msra.mxu1 %v2310_v31 }
  0x8d   : > { %1581 = vmatmul.mubr.bf16.vlgmr.msra.gmra.mxu0 %v1922_v35 }
  0x8e   : > { %1622 = vmatmul.mubr.bf16.vlgmr.msra.gmra.mxu1 %v1924_v38 }
  0xed   : > { %v2015_v40 = vpop.f32.mrf.mxu0 }
  0xee   : > { %v2037_v41 = vpop.f32.mrf.mxu1 }
  0xef   : > { %v2016_v42 = vpop.f32.mrf.mxu0 }
  0xf0   : > { %v2038_v43 = vpop.f32.mrf.mxu1  ;;  %v2017_v57 = vadd.f32 %v2016_v42, %v2015_v40 }
  0xf1   : > { %v2018_v44 = vpop.f32.mrf.mxu0  ;;  %v2039_v58 = vadd.f32 %v2038_v43, %v2037_v41 }
  0xf2   : > { %v2040_v45 = vpop.f32.mrf.mxu1 }
  0xf3   : > { %v2019_v46 = vpop.f32.mrf.mxu0  ;;  %v954_v62 = vadd.f32 %v2039_v58, %v2017_v57 }
  0xf4   : > { %v2041_v48 = vpop.f32.mrf.mxu1  ;;  %v2020_v63 = vadd.f32 %v2019_v46, %v2018_v44 }
  0xf5   : > { %v2042_v0 = vadd.f32 %v2041_v48, %v2040_v45 }
  0xf7   : > { %v957_v6 = vadd.f32 %v2042_v0, %v2020_v63 }
 0x10d   : > { %v2059_v47 = vpop.f32.mrf.mxu0 }
 0x10e   : > { %v2081_v49 = vpop.f32.mrf.mxu1 }
 0x10f   : > { %v2060_v50 = vpop.f32.mrf.mxu0 }
 0x110   : > { %v2082_v51 = vpop.f32.mrf.mxu1  ;;  %v2061_v61 = vadd.f32 %v2060_v50, %v2059_v47 }
 0x111   : > { %v2062_v52 = vpop.f32.mrf.mxu0  ;;  %v2083_v4 = vadd.f32 %v2082_v51, %v2081_v49 }
 0x112   : > { %v2084_v53 = vpop.f32.mrf.mxu1  ;;  %v995_v3 = vadd.f32 %v2061_v61, %v954_v62 }
 0x113   : > { %v2063_v54 = vpop.f32.mrf.mxu0 }
 0x114   : > { %v2085_v56 = vpop.f32.mrf.mxu1  ;;  %v2064_v5 = vadd.f32 %v2063_v54, %v2062_v52  ;;  %v1036_v10 = vadd.f32 %v2083_v4, %v995_v3 }
 0x115   : > { %v2086_v12 = vadd.f32 %v2085_v56, %v2084_v53 }
 0x116   : > { %v998_v11 = vadd.f32 %v2064_v5, %v957_v6 }
 0x118   : > { %v1039_v18 = vadd.f32 %v2086_v12, %v998_v11 }
 0x12d   : > { %v2103_v55 = vpop.f32.mrf.mxu0 }
 0x12e   : > { %v2125_v59 = vpop.f32.mrf.mxu1 }
 0x12f   : > { %v2104_v60 = vpop.f32.mrf.mxu0 }
 0x130   : > { %v2126_v1 = vpop.f32.mrf.mxu1  ;;  %v2105_v7 = vadd.f32 %v2104_v60, %v2103_v55 }
 0x131   : > { %v2106_v2 = vpop.f32.mrf.mxu0  ;;  %v2127_v14 = vadd.f32 %v2126_v1, %v2125_v59 }
 0x132   : > { %v2128_v8 = vpop.f32.mrf.mxu1  ;;  %v1501_v13 = vadd.f32 %v2105_v7, %v1036_v10 }
 0x133   : > { %v2107_v9 = vpop.f32.mrf.mxu0 }
 0x134   : > { %v2108_v15 = vadd.f32 %v2107_v9, %v2106_v2  ;;  %v2129_v16 = vpop.f32.mrf.mxu1  ;;  %v1542_v21 = vadd.f32 %v2127_v14, %v1501_v13 }
 0x135   : > { %v2130_v26 = vadd.f32 %v2129_v16, %v2128_v8 }
 0x136   : > { %v1504_v22 = vadd.f32 %v2108_v15, %v1039_v18 }
 0x138   : > { %v1545_v32 = vadd.f32 %v2130_v26, %v1504_v22 }
 0x14d   : > { %v2147_v17 = vpop.f32.mrf.mxu0 }
 0x14e   : > { %v2169_v19 = vpop.f32.mrf.mxu1 }
 0x14f   : > { %v2148_v20 = vpop.f32.mrf.mxu0 }
 0x150   : > { %v2149_v23 = vadd.f32 %v2148_v20, %v2147_v17  ;;  %v2170_v24 = vpop.f32.mrf.mxu1 }
 0x151   : > { %v2150_v25 = vpop.f32.mrf.mxu0  ;;  %v2171_v28 = vadd.f32 %v2170_v24, %v2169_v19 }
 0x152   : > { %v1583_v27 = vadd.f32 %v2149_v23, %v1542_v21  ;;  %v2172_v29 = vpop.f32.mrf.mxu1 }
 0x153   : > { %v2151_v31 = vpop.f32.mrf.mxu0 }
 0x154   : > { %v1624_v33 = vadd.f32 %v2171_v28, %v1583_v27  ;;  %v2152_v34 = vadd.f32 %v2151_v31, %v2150_v25  ;;  %v2173_v35 = vpop.f32.mrf.mxu1 }
 0x155   : > { %v2174_v38 = vadd.f32 %v2173_v35, %v2172_v29 }
 0x156   : > { %v1636_v36 = vadd.f32 %v1990_v30, %v1624_v33  ;;  %v1586_v37 = vadd.f32 %v2152_v34, %v1545_v32 }
 0x158   : > { %vm1638_vm0 = vcmp.gt.f32.partialorder %v1636_v36, 0.0  ;;  %v1640_v39 = vmul.f32 0.01, %v1636_v36  ;;  %v1627_v40 = vadd.f32 %v2174_v38, %v1586_v37 }
 0x15a   : > { %v1642_v41 = vsel %vm1638_vm0, %v1636_v36, %v1640_v39  ;;  %v1637_v42 = vadd.f32 %v1990_v30, %v1627_v40 }
 0x15b   : > { %v1997_v43 = vpack.c.bf16 %v1642_v41, %v1642_v41 }
 0x15c   : > { %vm1639_vm1 = vcmp.gt.f32.partialorder %v1637_v42, 0.0  ;;  %v1641_v44 = vmul.f32 0.01, %v1637_v42 }
 0x15d   : > { %1652 = vst [vmem:[%s170_s9] sm:$0xf] %v1997_v43 }
 0x15e   : > { %v1643_v45 = vsel %vm1639_vm1, %v1637_v42, %v1641_v44 }
 0x15f   : > { %v1998_v46 = vpack.c.bf16 %v1643_v45, %v1643_v45 }
 0x161   : > { %1653 = vst [vmem:[%s170_s9 + $0x4] sm:$0x1] %v1998_v46 }
 0x162 PF: > { %s13_s12 = sadd.s32 1, %s2317_s12  }
 0x163   : > { %p10_p4 = scmp.ge.s32.totalorder %s13_s12, 4  }
 0x165   :  { %12 = sbr.rel (!%p10_p4) target bundleno = 1 (0x1), region = 63 }

// kernel: conv_critic_forward.8
= control target key start
LH: loop header
LB: loop body
LE: loop exit
PB: predicated region body
PF: predicated region fallthrough
CT: control target
= control target key end

     0   :  { %s2375_s12 = smov 0   ;;  %s2799_s0 = inlined_call_operand.vmem [shape: bf16[2,10,512], index: 0, kind: input, shape index: {}]   ;;  %s2800_s1 = inlined_call_operand.vmem [shape: bf16[4,512,128], index: 1, kind: input, shape index: {}]   ;;  %s2801_s2 = inlined_call_operand.vmem [shape: f32[1,128], index: 2, kind: input, shape index: {}]   ;;  %s2802_s3 = inlined_call_operand.vmem [shape: bf16[2,4,128], index: 3, kind: output, shape index: {}]  }
   0x1 LB: > { %s1669_s13 = sadd.s32 4294967295, %s2353_s12   ;;  %p1673_p0 = scmp.ge.s32.totalorder %s2353_s12, 1  ;;  %s2353_s12 = sphi %s2375_s12, %s13_s12  }
   0x2   : > { %p137_p1 = scmp.lt.s32.totalorder %s2353_s12, 3 }
   0x4   : > { %p138_p2 = pnand %p1673_p0, %p137_p1 }
   0x5   : > { %p160_p3 = scmp.lt.s32.totalorder (!%p138_p2), %s1669_s13, 1 }
   0x6   : > { %141 = sbr.rel (%p138_p2) target bundleno = 351 (0x15f), region = 32 }
   0xb   : > { %v2201_v0 = vld [vmem:[%s2800_s1 + $0x178] sm:$0xff]   ;;  %v2205_v4 = vld [vmem:[%s2800_s1 + $0x170] sm:$0xff]   ;;  %v2209_v8 = vld [vmem:[%s2800_s1 + $0x168] sm:$0xff]   ;;  %s2804_s13 = smov (!%p160_p3, %s1669_s13), 1 }
   0xc   : > { %v2202_v1 = vld [vmem:[%s2800_s1 + $0x1f8] sm:$0xff]   ;;  %2017 = vmatprep.subr.bf16.mxu0 %v2201_v0  ;;  %v2206_v5 = vld [vmem:[%s2800_s1 + $0x1f0] sm:$0xff]   ;;  %v2210_v9 = vld [vmem:[%s2800_s1 + $0x1e8] sm:$0xff]   ;;  %s2016_s18 = sshll.u32 %s2804_s13, 5  ;;  %s1676_s6 = sshll.u32 %s2804_s13, 1 }
   0xd   : > { %v2203_v2 = vld [vmem:[%s2800_s1 + $0x138] sm:$0xff]   ;;  %2039 = vmatprep.subr.bf16.mxu1 %v2202_v1  ;;  %v2207_v6 = vld [vmem:[%s2800_s1 + $0x130] sm:$0xff]   ;;  %v2211_v10 = vld [vmem:[%s2800_s1 + $0x128] sm:$0xff]   ;;  %s2483_s27 = scalar_lea.vmem %s2799_s0, %s2016_s18  ;;  %s168_s9 = scalar_lea.vmem %s2802_s3, %s1676_s6 }
   0xe   : > { %v2204_v3 = vld [vmem:[%s2800_s1 + $0x1b8] sm:$0xff]   ;;  %2018 = vmatpush3.bf16.msra.mxu0 %v2203_v2  ;;  %v2208_v7 = vld [vmem:[%s2800_s1 + $0x1b0] sm:$0xff]   ;;  %v2212_v11 = vld [vmem:[%s2800_s1 + $0x1a8] sm:$0xff]  }
   0xf   : > { %2040 = vmatpush3.bf16.msra.mxu1 %v2204_v3  ;;  %2019 = vmatprep.subr.bf16.mxu0 %v2205_v4  ;;  %v2213_v12 = vld [vmem:[%s2800_s1 + $0x160] sm:$0xff]   ;;  %v2217_v16 = vld [vmem:[%s2800_s1 + $0x158] sm:$0xff]   ;;  %v2221_v20 = vld [vmem:[%s2800_s1 + $0x150] sm:$0xff]  }
  0x10   : > { %2041 = vmatprep.subr.bf16.mxu1 %v2206_v5  ;;  %v2214_v13 = vld [vmem:[%s2800_s1 + $0x1e0] sm:$0xff]   ;;  %v2218_v17 = vld [vmem:[%s2800_s1 + $0x1d8] sm:$0xff]   ;;  %v2222_v21 = vld [vmem:[%s2800_s1 + $0x1d0] sm:$0xff]  }
  0x11   : > { %v2215_v14 = vld [vmem:[%s2800_s1 + $0x120] sm:$0xff]   ;;  %v2219_v18 = vld [vmem:[%s2800_s1 + $0x118] sm:$0xff]   ;;  %v2223_v22 = vld [vmem:[%s2800_s1 + $0x110] sm:$0xff]  }
  0x12   : > { %2020 = vmatpush3.bf16.msra.mxu0 %v2207_v6  ;;  %v2216_v15 = vld [vmem:[%s2800_s1 + $0x1a0] sm:$0xff]   ;;  %v2220_v19 = vld [vmem:[%s2800_s1 + $0x198] sm:$0xff]   ;;  %v2224_v23 = vld [vmem:[%s2800_s1 + $0x190] sm:$0xff]  }
  0x13   : > { %2042 = vmatpush3.bf16.msra.mxu1 %v2208_v7  ;;  %2021 = vmatprep.subr.bf16.mxu0 %v2209_v8  ;;  %v2225_v24 = vld [vmem:[%s2800_s1 + $0x148] sm:$0xff]   ;;  %v2229_v28 = vld [vmem:[%s2800_s1 + $0x140] sm:$0xff]   ;;  %v2237_v38 = vld [vmem:[%s2800_s1 + $0x78] sm:$0xff]  }
  0x14   : > { %2043 = vmatprep.subr.bf16.mxu1 %v2210_v9  ;;  %v2226_v25 = vld [vmem:[%s2800_s1 + $0x1c8] sm:$0xff]   ;;  %v2230_v29 = vld [vmem:[%s2800_s1 + $0x1c0] sm:$0xff]   ;;  %v2238_v39 = vld [vmem:[%s2800_s1 + $0xf8] sm:$0xff]  }
  0x15   : > { %v2227_v26 = vld [vmem:[%s2800_s1 + $0x108] sm:$0xff]   ;;  %v2231_v30 = vld [vmem:[%s2800_s1 + $0x100] sm:$0xff]   ;;  %v2239_v44 = vld [vmem:[%s2800_s1 + $0x38] sm:$0xff]  }
  0x16   : > { %2022 = vmatpush3.bf16.msra.mxu0 %v2211_v10  ;;  %v2228_v27 = vld [vmem:[%s2800_s1 + $0x188] sm:$0xff]   ;;  %v2232_v31 = vld [vmem:[%s2800_s1 + $0x180] sm:$0xff]   ;;  %v2240_v45 = vld [vmem:[%s2800_s1 + $0xb8] sm:$0xff]  }
  0x17   : > { %2044 = vmatpush3.bf16.msra.mxu1 %v2212_v11  ;;  %2023 = vmatprep.subr.bf16.mxu0 %v2213_v12  ;;  %v237_v32 = vld [vmem:[%s2483_s27] sm:$0x66]  ;;  %v238_v33 = vld [vmem:[%s2483_s27 + $0x8] sm:$0x66]  ;;  %v2241_v46 = vld [vmem:[%s2800_s1 + $0x70] sm:$0xff]  }
  0x18   : > { %2045 = vmatprep.subr.bf16.mxu1 %v2214_v13  ;;  %v1741_v34 = vcombine.low %v237_v32, %v237_v32  ;;  %v1742_v35 = vcombine.high %v237_v32, %v237_v32  ;;  %v1743_v36 = vcombine.low %v238_v33, %v238_v33  ;;  %v1744_v37 = vcombine.high %v238_v33, %v238_v33  ;;  %v2242_v47 = vld [vmem:[%s2800_s1 + $0xf0] sm:$0xff]   ;;  %v2245_v50 = vld [vmem:[%s2800_s1 + $0x68] sm:$0xff]   ;;  %v2249_v54 = vld [vmem:[%s2800_s1 + $0x60] sm:$0xff]  }
  0x19   : > { %v2243_v48 = vld [vmem:[%s2800_s1 + $0x30] sm:$0xff]   ;;  %v2246_v51 = vld [vmem:[%s2800_s1 + $0xe8] sm:$0xff]   ;;  %v2250_v55 = vld [vmem:[%s2800_s1 + $0xe0] sm:$0xff]  }
  0x1a   : > { %2024 = vmatpush3.bf16.msra.mxu0 %v2215_v14  ;;  %v314_v40 = vrot.slane %v1741_v34, 1  ;;  %v315_v41 = vrot.slane %v1742_v35, 1  ;;  %v316_v42 = vrot.slane %v1743_v36, 1  ;;  %v317_v43 = vrot.slane %v1744_v37, 1  ;;  %v2244_v49 = vld [vmem:[%s2800_s1 + $0xb0] sm:$0xff]   ;;  %v2247_v52 = vld [vmem:[%s2800_s1 + $0x28] sm:$0xff]  }
  0x1b   : > { %2046 = vmatpush3.bf16.msra.mxu1 %v2216_v15  ;;  %2025 = vmatprep.subr.bf16.mxu0 %v2217_v16  ;;  %v2248_v53 = vld [vmem:[%s2800_s1 + $0xa8] sm:$0xff]   ;;  %v2251_v56 = vld [vmem:[%s2800_s1 + $0x20] sm:$0xff]   ;;  %v2253_v58 = vld [vmem:[%s2800_s1 + $0x58] sm:$0xff]  }
  0x1c   : > { %2047 = vmatprep.subr.bf16.mxu1 %v2218_v17  ;;  %546 = vmatprep.mubr.bf16.mxu0 %v315_v41  ;;  %v2252_v57 = vld [vmem:[%s2800_s1 + $0xa0] sm:$0xff]   ;;  %v2254_v59 = vld [vmem:[%s2800_s1 + $0xd8] sm:$0xff]   ;;  %v2257_v62 = vld [vmem:[%s2800_s1 + $0x50] sm:$0xff]  }
  0x1d   : > { %586 = vmatprep.mubr.bf16.mxu1 %v317_v43  ;;  %v2255_v60 = vld [vmem:[%s2800_s1 + $0x18] sm:$0xff]   ;;  %v2258_v63 = vld [vmem:[%s2800_s1 + $0xd0] sm:$0xff]   ;;  %v2261_v2 = vld [vmem:[%s2800_s1 + $0x48] sm:$0xff]  }
  0x1e   : > { %2026 = vmatpush3.bf16.msra.mxu0 %v2219_v18  ;;  %v2256_v61 = vld [vmem:[%s2800_s1 + $0x98] sm:$0xff]   ;;  %v2259_v0 = vld [vmem:[%s2800_s1 + $0x10] sm:$0xff]   ;;  %v2262_v3 = vld [vmem:[%s2800_s1 + $0xc8] sm:$0xff]  }
  0x1f   : > { %2048 = vmatpush3.bf16.msra.mxu1 %v2220_v19  ;;  %2027 = vmatprep.subr.bf16.mxu0 %v2221_v20  ;;  %v2260_v1 = vld [vmem:[%s2800_s1 + $0x90] sm:$0xff]   ;;  %v2263_v4 = vld [vmem:[%s2800_s1 + $0x8] sm:$0xff]   ;;  %v2265_v6 = vld [vmem:[%s2800_s1 + $0x40] sm:$0xff]  }
  0x20   : > { %2049 = vmatprep.subr.bf16.mxu1 %v2222_v21  ;;  %v2264_v5 = vld [vmem:[%s2800_s1 + $0x88] sm:$0xff]   ;;  %v2266_v7 = vld [vmem:[%s2800_s1 + $0xc0] sm:$0xff]   ;;  %v2273_v16 = vld [vmem:[%s2800_s1 + $0x278] sm:$0xff]  }
  0x21   : > { %v2267_v8 = vld [vmem:[%s2800_s1] sm:$0xff]   ;;  %v172_v11 = vld [vmem:[%s2483_s27 + $0x8] sm:$0x33]  ;;  %v2274_v17 = vld [vmem:[%s2800_s1 + $0x2f8] sm:$0xff]  }
  0x22   : > { %2028 = vmatpush3.bf16.msra.mxu0 %v2223_v22  ;;  %v2268_v9 = vld [vmem:[%s2800_s1 + $0x80] sm:$0xff]   ;;  %v1779_v14 = vcombine.low %v172_v11, %v172_v11  ;;  %v1780_v15 = vcombine.high %v172_v11, %v172_v11  ;;  %v2275_v18 = vld [vmem:[%s2800_s1 + $0x238] sm:$0xff]   ;;  %v2277_v20 = vld [vmem:[%s2800_s1 + $0x270] sm:$0xff]  }
  0x23   : > { %2050 = vmatpush3.bf16.msra.mxu1 %v2224_v23  ;;  %2029 = vmatprep.subr.bf16.mxu0 %v2225_v24  ;;  %v171_v10 = vld [vmem:[%s2483_s27] sm:$0x33]  ;;  %v2276_v19 = vld [vmem:[%s2800_s1 + $0x2b8] sm:$0xff]   ;;  %v2278_v21 = vld [vmem:[%s2800_s1 + $0x2f0] sm:$0xff]  }
  0x24   : > { %2051 = vmatprep.subr.bf16.mxu1 %v2226_v25  ;;  %v1777_v12 = vcombine.low %v171_v10, %v171_v10  ;;  %v1778_v13 = vcombine.high %v171_v10, %v171_v10  ;;  %v2279_v22 = vld [vmem:[%s2800_s1 + $0x230] sm:$0xff]   ;;  %v2281_v24 = vld [vmem:[%s2800_s1 + $0x268] sm:$0xff]   ;;  %v2289_v32 = vld [vmem:[%s2800_s1 + $0x258] sm:$0xff]  }
  0x25   : > { %v2280_v23 = vld [vmem:[%s2800_s1 + $0x2b0] sm:$0xff]   ;;  %v2282_v25 = vld [vmem:[%s2800_s1 + $0x2e8] sm:$0xff]   ;;  %v2290_v33 = vld [vmem:[%s2800_s1 + $0x2d8] sm:$0xff]  }
  0x26   : > { %2030 = vmatpush3.bf16.msra.mxu0 %v2227_v26  ;;  %v2283_v26 = vld [vmem:[%s2800_s1 + $0x228] sm:$0xff]   ;;  %v2291_v34 = vld [vmem:[%s2800_s1 + $0x218] sm:$0xff]   ;;  %v2293_v36 = vld [vmem:[%s2800_s1 + $0x250] sm:$0xff]  }
  0x27   : > { %2052 = vmatpush3.bf16.msra.mxu1 %v2228_v27  ;;  %2031 = vmatprep.subr.bf16.mxu0 %v2229_v28  ;;  %v2284_v27 = vld [vmem:[%s2800_s1 + $0x2a8] sm:$0xff]   ;;  %v2285_v28 = vld [vmem:[%s2800_s1 + $0x260] sm:$0xff]   ;;  %v2292_v35 = vld [vmem:[%s2800_s1 + $0x298] sm:$0xff]  }
  0x28   : > { %2053 = vmatprep.subr.bf16.mxu1 %v2230_v29  ;;  %v2286_v29 = vld [vmem:[%s2800_s1 + $0x2e0] sm:$0xff]   ;;  %v2294_v37 = vld [vmem:[%s2800_s1 + $0x2d0] sm:$0xff]   ;;  %v2298_v41 = vld [vmem:[%s2800_s1 + $0x2c8] sm:$0xff]  }
  0x29   : > { %v2300_v43 = vld [vmem:[%s2800_s1 + $0x288] sm:$0xff]   ;;  %v2325_v10 = vld [vmem:[%s2800_s1 + $0x358] sm:$0xff]  }
  0x2a   : > { %2032 = vmatpush3.bf16.msra.mxu0 %v2231_v30  ;;  %v2287_v30 = vld [vmem:[%s2800_s1 + $0x220] sm:$0xff]   ;;  %v2326_v11 = vld [vmem:[%s2800_s1 + $0x3d8] sm:$0xff]  }
  0x2b   : > { %2054 = vmatpush3.bf16.msra.mxu1 %v2232_v31  ;;  %2061 = vmatprep.subr.bf16.mxu0 %v2237_v38  ;;  %v2288_v31 = vld [vmem:[%s2800_s1 + $0x2a0] sm:$0xff]   ;;  %v2295_v38 = vld [vmem:[%s2800_s1 + $0x210] sm:$0xff]  }
  0x2c   : > { %2083 = vmatprep.subr.bf16.mxu1 %v2238_v39  ;;  %v2296_v39 = vld [vmem:[%s2800_s1 + $0x290] sm:$0xff]  }
  0x2d   : > { %547 = vmatmul.mubr.bf16.vlgmr.msra.gmra.mxu0 %v314_v40  ;;  %v2297_v40 = vld [vmem:[%s2800_s1 + $0x248] sm:$0xff]  }
  0x2e   : > { %587 = vmatmul.mubr.bf16.vlgmr.msra.gmra.mxu1 %v316_v42  ;;  %2062 = vmatpush3.bf16.msra.mxu0 %v2239_v44  ;;  %v2299_v42 = vld [vmem:[%s2800_s1 + $0x208] sm:$0xff]   ;;  %v2301_v44 = vld [vmem:[%s2800_s1 + $0x240] sm:$0xff]  }
  0x2f   : > { %2084 = vmatpush3.bf16.msra.mxu1 %v2240_v45  ;;  %2063 = vmatprep.subr.bf16.mxu0 %v2241_v46  ;;  %v2302_v45 = vld [vmem:[%s2800_s1 + $0x2c0] sm:$0xff]  }
  0x30   : > { %2085 = vmatprep.subr.bf16.mxu1 %v2242_v47  ;;  %832 = vmatprep.mubr.bf16.mxu0 %v1778_v13  ;;  %v2303_v46 = vld [vmem:[%s2800_s1 + $0x200] sm:$0xff]   ;;  %v2328_v13 = vld [vmem:[%s2800_s1 + $0x398] sm:$0xff]  }
  0x31   : > { %872 = vmatprep.mubr.bf16.mxu1 %v1780_v15  ;;  %v2304_v47 = vld [vmem:[%s2800_s1 + $0x280] sm:$0xff]   ;;  %v2330_v15 = vld [vmem:[%s2800_s1 + $0x3d0] sm:$0xff]  }
  0x32   : > { %2064 = vmatpush3.bf16.msra.mxu0 %v2243_v48  ;;  %v880_v48 = vld [vmem:[%s2483_s27] sm:$0xcc] }
  0x33   : > { %2086 = vmatpush3.bf16.msra.mxu1 %v2244_v49  ;;  %2065 = vmatprep.subr.bf16.mxu0 %v2245_v50  ;;  %v881_v49 = vld [vmem:[%s2483_s27 + $0x8] sm:$0xcc]  ;;  %v1877_v50 = vcombine.low %v880_v48, %v880_v48 }
  0x34   : > { %2087 = vmatprep.subr.bf16.mxu1 %v2246_v51  ;;  %v1878_v51 = vcombine.high %v880_v48, %v880_v48 }
  0x36   : > { %2066 = vmatpush3.bf16.msra.mxu0 %v2247_v52  ;;  %v1879_v52 = vcombine.low %v881_v49, %v881_v49 }
  0x37   : > { %2088 = vmatpush3.bf16.msra.mxu1 %v2248_v53  ;;  %2067 = vmatprep.subr.bf16.mxu0 %v2249_v54  ;;  %v2309_v53 = vld [vmem:[%s2800_s1 + $0x378] sm:$0xff]   ;;  %v1880_v54 = vcombine.high %v881_v49, %v881_v49 }
  0x38   : > { %2089 = vmatprep.subr.bf16.mxu1 %v2250_v55  ;;  %v2310_v55 = vld [vmem:[%s2800_s1 + $0x3f8] sm:$0xff]  }
  0x3a   : > { %2068 = vmatpush3.bf16.msra.mxu0 %v2251_v56  ;;  %v957_v56 = vrot.slane %v1877_v50, 2 }
  0x3b   : > { %2090 = vmatpush3.bf16.msra.mxu1 %v2252_v57  ;;  %2069 = vmatprep.subr.bf16.mxu0 %v2253_v58  ;;  %v958_v57 = vrot.slane %v1878_v51, 2  ;;  %v959_v58 = vrot.slane %v1879_v52, 2 }
  0x3c   : > { %2091 = vmatprep.subr.bf16.mxu1 %v2254_v59  ;;  %v2311_v59 = vld [vmem:[%s2800_s1 + $0x338] sm:$0xff]  }
  0x3e   : > { %2070 = vmatpush3.bf16.msra.mxu0 %v2255_v60  ;;  %v960_v60 = vrot.slane %v1880_v54, 2 }
  0x3f   : > { %2092 = vmatpush3.bf16.msra.mxu1 %v2256_v61  ;;  %2071 = vmatprep.subr.bf16.mxu0 %v2257_v62  ;;  %v2312_v61 = vld [vmem:[%s2800_s1 + $0x3b8] sm:$0xff]   ;;  %v2313_v62 = vld [vmem:[%s2800_s1 + $0x370] sm:$0xff]  }
  0x40   : > { %2093 = vmatprep.subr.bf16.mxu1 %v2258_v63  ;;  %v2314_v63 = vld [vmem:[%s2800_s1 + $0x3f0] sm:$0xff]  }
  0x42   : > { %2072 = vmatpush3.bf16.msra.mxu0 %v2259_v0  ;;  %v2315_v0 = vld [vmem:[%s2800_s1 + $0x330] sm:$0xff]  }
  0x43   : > { %2094 = vmatpush3.bf16.msra.mxu1 %v2260_v1  ;;  %2073 = vmatprep.subr.bf16.mxu0 %v2261_v2  ;;  %v2316_v1 = vld [vmem:[%s2800_s1 + $0x3b0] sm:$0xff]   ;;  %v2317_v2 = vld [vmem:[%s2800_s1 + $0x368] sm:$0xff]  }
  0x44   : > { %2095 = vmatprep.subr.bf16.mxu1 %v2262_v3  ;;  %v2318_v3 = vld [vmem:[%s2800_s1 + $0x3e8] sm:$0xff]  }
  0x46   : > { %2074 = vmatpush3.bf16.msra.mxu0 %v2263_v4  ;;  %v2319_v4 = vld [vmem:[%s2800_s1 + $0x328] sm:$0xff]  }
  0x47   : > { %2096 = vmatpush3.bf16.msra.mxu1 %v2264_v5  ;;  %2075 = vmatprep.subr.bf16.mxu0 %v2265_v6  ;;  %v2320_v5 = vld [vmem:[%s2800_s1 + $0x3a8] sm:$0xff]   ;;  %v2321_v6 = vld [vmem:[%s2800_s1 + $0x360] sm:$0xff]  }
  0x48   : > { %2097 = vmatprep.subr.bf16.mxu1 %v2266_v7  ;;  %v2322_v7 = vld [vmem:[%s2800_s1 + $0x3e0] sm:$0xff]  }
  0x4a   : > { %2076 = vmatpush3.bf16.msra.mxu0 %v2267_v8  ;;  %v2323_v8 = vld [vmem:[%s2800_s1 + $0x320] sm:$0xff]  }
  0x4b   : > { %2098 = vmatpush3.bf16.msra.mxu1 %v2268_v9  ;;  %2105 = vmatprep.subr.bf16.mxu0 %v2273_v16  ;;  %v2324_v9 = vld [vmem:[%s2800_s1 + $0x3a0] sm:$0xff]   ;;  %v2331_v16 = vld [vmem:[%s2800_s1 + $0x310] sm:$0xff]  }
  0x4c   : > { %2127 = vmatprep.subr.bf16.mxu1 %v2274_v17  ;;  %v2332_v17 = vld [vmem:[%s2800_s1 + $0x390] sm:$0xff]  }
  0x4d   : > { %833 = vmatmul.mubr.bf16.vlgmr.msra.gmra.mxu0 %v1777_v12  ;;  %v2327_v12 = vld [vmem:[%s2800_s1 + $0x318] sm:$0xff]  }
  0x4e   : > { %873 = vmatmul.mubr.bf16.vlgmr.msra.gmra.mxu1 %v1779_v14  ;;  %2106 = vmatpush3.bf16.msra.mxu0 %v2275_v18  ;;  %v2329_v14 = vld [vmem:[%s2800_s1 + $0x350] sm:$0xff]   ;;  %v2333_v18 = vld [vmem:[%s2800_s1 + $0x348] sm:$0xff]  }
  0x4f   : > { %2128 = vmatpush3.bf16.msra.mxu1 %v2276_v19  ;;  %2107 = vmatprep.subr.bf16.mxu0 %v2277_v20  ;;  %v2334_v19 = vld [vmem:[%s2800_s1 + $0x3c8] sm:$0xff]  }
  0x50   : > { %2129 = vmatprep.subr.bf16.mxu1 %v2278_v21  ;;  %1189 = vmatprep.mubr.bf16.mxu0 %v958_v57  ;;  %v2335_v20 = vld [vmem:[%s2800_s1 + $0x308] sm:$0xff]  }
  0x51   : > { %1229 = vmatprep.mubr.bf16.mxu1 %v960_v60  ;;  %v2336_v21 = vld [vmem:[%s2800_s1 + $0x388] sm:$0xff]  }
  0x52   : > { %2108 = vmatpush3.bf16.msra.mxu0 %v2279_v22  ;;  %v2337_v22 = vld [vmem:[%s2800_s1 + $0x340] sm:$0xff]  }
  0x53   : > { %2130 = vmatpush3.bf16.msra.mxu1 %v2280_v23  ;;  %2109 = vmatprep.subr.bf16.mxu0 %v2281_v24  ;;  %v2338_v23 = vld [vmem:[%s2800_s1 + $0x3c0] sm:$0xff]  }
  0x54   : > { %2131 = vmatprep.subr.bf16.mxu1 %v2282_v25  ;;  %v2339_v24 = vld [vmem:[%s2800_s1 + $0x300] sm:$0xff]  }
  0x55   : > { %v2340_v25 = vld [vmem:[%s2800_s1 + $0x380] sm:$0xff]  }
  0x56   : > { %2110 = vmatpush3.bf16.msra.mxu0 %v2283_v26  ;;  %v2341_v26 = vld [vmem:[%s2483_s27] ss:$16 sps:$4 sm:$0x18]  }
  0x57   : > { %2132 = vmatpush3.bf16.msra.mxu1 %v2284_v27  ;;  %2111 = vmatprep.subr.bf16.mxu0 %v2285_v28  ;;  %v2343_v27 = vld [vmem:[%s2483_s27 + $0x4] ss:$16 sps:$4 sm:$0x18]   ;;  %v2344_v28 = vld [vmem:[%s2483_s27 + $0x8] ss:$16 sps:$4 sm:$0x18]  }
  0x58   : > { %2133 = vmatprep.subr.bf16.mxu1 %v2286_v29  ;;  %v1323_v29 = vrot.slane %v2341_v26, 3 }
  0x5a   : > { %2112 = vmatpush3.bf16.msra.mxu0 %v2287_v30  ;;  %v1324_v30 = vrot.slane %v2343_v27, 3 }
  0x5b   : > { %2134 = vmatpush3.bf16.msra.mxu1 %v2288_v31  ;;  %2113 = vmatprep.subr.bf16.mxu0 %v2289_v32  ;;  %v2346_v31 = vld [vmem:[%s2483_s27 + $0xc] ss:$16 sps:$4 sm:$0x18]   ;;  %v1325_v32 = vrot.slane %v2344_v28, 3 }
  0x5c   : > { %2135 = vmatprep.subr.bf16.mxu1 %v2290_v33  ;;  %v1326_v33 = vrot.slane %v2346_v31, 3 }
  0x5e   : > { %2114 = vmatpush3.bf16.msra.mxu0 %v2291_v34 }
  0x5f   : > { %2136 = vmatpush3.bf16.msra.mxu1 %v2292_v35  ;;  %2115 = vmatprep.subr.bf16.mxu0 %v2293_v36 }
  0x60   : > { %2137 = vmatprep.subr.bf16.mxu1 %v2294_v37 }
  0x62   : > { %2116 = vmatpush3.bf16.msra.mxu0 %v2295_v38 }
  0x63   : > { %2138 = vmatpush3.bf16.msra.mxu1 %v2296_v39  ;;  %2117 = vmatprep.subr.bf16.mxu0 %v2297_v40 }
  0x64   : > { %2139 = vmatprep.subr.bf16.mxu1 %v2298_v41 }
  0x66   : > { %2118 = vmatpush3.bf16.msra.mxu0 %v2299_v42 }
  0x67   : > { %2140 = vmatpush3.bf16.msra.mxu1 %v2300_v43  ;;  %2119 = vmatprep.subr.bf16.mxu0 %v2301_v44 }
  0x68   : > { %2141 = vmatprep.subr.bf16.mxu1 %v2302_v45 }
  0x6a   : > { %2120 = vmatpush3.bf16.msra.mxu0 %v2303_v46 }
  0x6b   : > { %2142 = vmatpush3.bf16.msra.mxu1 %v2304_v47  ;;  %2149 = vmatprep.subr.bf16.mxu0 %v2309_v53 }
  0x6c   : > { %2171 = vmatprep.subr.bf16.mxu1 %v2310_v55 }
  0x6d   : > { %1190 = vmatmul.mubr.bf16.vlgmr.msra.gmra.mxu0 %v957_v56 }
  0x6e   : > { %1230 = vmatmul.mubr.bf16.vlgmr.msra.gmra.mxu1 %v959_v58  ;;  %2150 = vmatpush3.bf16.msra.mxu0 %v2311_v59 }
  0x6f   : > { %2172 = vmatpush3.bf16.msra.mxu1 %v2312_v61  ;;  %2151 = vmatprep.subr.bf16.mxu0 %v2313_v62 }
  0x70   : > { %2173 = vmatprep.subr.bf16.mxu1 %v2314_v63  ;;  %1555 = vmatprep.mubr.bf16.mxu0 %v1324_v30 }
  0x71   : > { %1595 = vmatprep.mubr.bf16.mxu1 %v1326_v33 }
  0x72   : > { %2152 = vmatpush3.bf16.msra.mxu0 %v2315_v0 }
  0x73   : > { %2174 = vmatpush3.bf16.msra.mxu1 %v2316_v1  ;;  %2153 = vmatprep.subr.bf16.mxu0 %v2317_v2 }
  0x74   : > { %2175 = vmatprep.subr.bf16.mxu1 %v2318_v3 }
  0x76   : > { %2154 = vmatpush3.bf16.msra.mxu0 %v2319_v4 }
  0x77   : > { %2176 = vmatpush3.bf16.msra.mxu1 %v2320_v5  ;;  %2155 = vmatprep.subr.bf16.mxu0 %v2321_v6 }
  0x78   : > { %2177 = vmatprep.subr.bf16.mxu1 %v2322_v7 }
  0x7a   : > { %2156 = vmatpush3.bf16.msra.mxu0 %v2323_v8 }
  0x7b   : > { %2178 = vmatpush3.bf16.msra.mxu1 %v2324_v9  ;;  %2157 = vmatprep.subr.bf16.mxu0 %v2325_v10 }
  0x7c   : > { %2179 = vmatprep.subr.bf16.mxu1 %v2326_v11 }
  0x7e   : > { %2158 = vmatpush3.bf16.msra.mxu0 %v2327_v12 }
  0x7f   : > { %2180 = vmatpush3.bf16.msra.mxu1 %v2328_v13  ;;  %2159 = vmatprep.subr.bf16.mxu0 %v2329_v14 }
  0x80   : > { %2181 = vmatprep.subr.bf16.mxu1 %v2330_v15  ;;  %v2013_v15 = vld [vmem:[%s2801_s2] ss:$0 sm:$0xff] }
  0x82   : > { %2160 = vmatpush3.bf16.msra.mxu0 %v2331_v16 }
  0x83   : > { %2182 = vmatpush3.bf16.msra.mxu1 %v2332_v17  ;;  %2161 = vmatprep.subr.bf16.mxu0 %v2333_v18 }
  0x84   : > { %2183 = vmatprep.subr.bf16.mxu1 %v2334_v19 }
  0x86   : > { %2162 = vmatpush3.bf16.msra.mxu0 %v2335_v20 }
  0x87   : > { %2184 = vmatpush3.bf16.msra.mxu1 %v2336_v21  ;;  %2163 = vmatprep.subr.bf16.mxu0 %v2337_v22 }
  0x88   : > { %2185 = vmatprep.subr.bf16.mxu1 %v2338_v23 }
  0x8a   : > { %2164 = vmatpush3.bf16.msra.mxu0 %v2339_v24 }
  0x8b   : > { %2186 = vmatpush3.bf16.msra.mxu1 %v2340_v25 }
  0x8d   : > { %1556 = vmatmul.mubr.bf16.vlgmr.msra.gmra.mxu0 %v1323_v29 }
  0x8e   : > { %1596 = vmatmul.mubr.bf16.vlgmr.msra.gmra.mxu1 %v1325_v32 }
  0xed   : > { %v2033_v34 = vpop.f32.mrf.mxu0 }
  0xee   : > { %v2055_v35 = vpop.f32.mrf.mxu1 }
  0xef   : > { %v2034_v36 = vpop.f32.mrf.mxu0 }
  0xf0   : > { %v2056_v37 = vpop.f32.mrf.mxu1  ;;  %v2035_v38 = vadd.f32 %v2034_v36, %v2033_v34 }
  0xf1   : > { %v2057_v39 = vadd.f32 %v2056_v37, %v2055_v35  ;;  %v2036_v40 = vpop.f32.mrf.mxu0 }
  0xf2   : > { %v2058_v41 = vpop.f32.mrf.mxu1 }
  0xf3   : > { %v589_v42 = vadd.f32 %v2057_v39, %v2035_v38  ;;  %v2037_v43 = vpop.f32.mrf.mxu0 }
  0xf4   : > { %v2059_v44 = vpop.f32.mrf.mxu1 }
 0x10d   : > { %v2077_v45 = vpop.f32.mrf.mxu0 }
 0x10e   : > { %v2099_v46 = vpop.f32.mrf.mxu1 }
 0x10f   : > { %v2078_v47 = vpop.f32.mrf.mxu0 }
 0x110   : > { %v2100_v48 = vpop.f32.mrf.mxu1  ;;  %v2079_v49 = vadd.f32 %v2078_v47, %v2077_v45 }
 0x111   : > { %v2101_v50 = vadd.f32 %v2100_v48, %v2099_v46  ;;  %v2080_v51 = vpop.f32.mrf.mxu0 }
 0x112   : > { %v2102_v52 = vpop.f32.mrf.mxu1  ;;  %v835_v53 = vadd.f32 %v2079_v49, %v589_v42 }
 0x113   : > { %v2081_v54 = vpop.f32.mrf.mxu0 }
 0x114   : > { %v2103_v55 = vpop.f32.mrf.mxu1  ;;  %v875_v56 = vadd.f32 %v2101_v50, %v835_v53 }
 0x12d   : > { %v2121_v57 = vpop.f32.mrf.mxu0 }
 0x12e   : > { %v2143_v58 = vpop.f32.mrf.mxu1 }
 0x12f   : > { %v2122_v59 = vpop.f32.mrf.mxu0 }
 0x130   : > { %v2144_v60 = vpop.f32.mrf.mxu1  ;;  %v2123_v1 = vadd.f32 %v2122_v59, %v2121_v57 }
 0x131   : > { %v2124_v61 = vpop.f32.mrf.mxu0  ;;  %v2145_v2 = vadd.f32 %v2144_v60, %v2143_v58 }
 0x132   : > { %v2146_v62 = vpop.f32.mrf.mxu1 }
 0x133   : > { %v2125_v63 = vpop.f32.mrf.mxu0  ;;  %v1232_v6 = vadd.f32 %v2145_v2, %v2123_v1 }
 0x134   : > { %v2147_v0 = vpop.f32.mrf.mxu1 }
 0x135   : > { %v1237_v13 = vadd.f32 %v1232_v6, %v875_v56 }
 0x14d   : > { %v2165_v3 = vpop.f32.mrf.mxu0 }
 0x14e   : > { %v2187_v4 = vpop.f32.mrf.mxu1 }
 0x14f   : > { %v2166_v5 = vpop.f32.mrf.mxu0 }
 0x150   : > { %v2167_v7 = vadd.f32 %v2166_v5, %v2165_v3  ;;  %v2188_v8 = vpop.f32.mrf.mxu1 }
 0x151   : > { %v2168_v9 = vpop.f32.mrf.mxu0  ;;  %v2189_v10 = vadd.f32 %v2188_v8, %v2187_v4 }
 0x152   : > { %v2190_v11 = vpop.f32.mrf.mxu1 }
 0x153   : > { %v2169_v12 = vpop.f32.mrf.mxu0  ;;  %v1598_v14 = vadd.f32 %v2189_v10, %v2167_v7 }
 0x154   : > { %v2191_v16 = vpop.f32.mrf.mxu1 }
 0x155   : > { %v1603_v17 = vadd.f32 %v1598_v14, %v1237_v13 }
 0x157   : > { %v1610_v18 = vadd.f32 %v2013_v15, %v1603_v17 }
 0x159   : > { %vm1611_vm0 = vcmp.gt.f32.partialorder %v1610_v18, 0.0  ;;  %v1612_v19 = vmul.f32 0.01, %v1610_v18 }
 0x15b   : > { %v1613_v20 = vsel %vm1611_vm0, %v1610_v18, %v1612_v19 }
 0x15c   : > { %v1614_v21 = vpack.c.bf16 %v1613_v20, %v1613_v20 }
 0x15e   : > { %1615 = vst [vmem:[%s168_s9] sm:$0x3] %v1614_v21 }
 0x15f PF: > { %s13_s12 = sadd.s32 1, %s2353_s12  }
 0x160   : > { %p10_p4 = scmp.ge.s32.totalorder %s13_s12, 4  }
 0x162   :  { %12 = sbr.rel (!%p10_p4) target bundleno = 1 (0x1), region = 65 }

// kernel: conv_critic_forward.9
= control target key start
LH: loop header
LB: loop body
LE: loop exit
PB: predicated region body
PF: predicated region fallthrough
CT: control target
= control target key end

     0   :  { %vm67_vm0 = vcmask 1045504   ;;  %v451_v0 = vmov 0.0   ;;  %vm68_vm1 = vcmask 1046528   ;;  %v452_v2 = vmov 65535   ;;  %s570_s2 = inlined_call_operand.vmem [shape: bf16[128,32], index: 2, kind: input, shape index: {}]   ;;  %s571_s3 = inlined_call_operand.vmem [shape: bf16[13,32], index: 3, kind: input, shape index: {}]   ;;  %s572_s6 = inlined_call_operand.vmem [shape: bf16[13,32], index: 6, kind: input, shape index: {}]   ;;  %s573_s1 = inlined_call_operand.vmem [shape: bf16[2,13], index: 1, kind: input, shape index: {}]   ;;  %s574_s0 = inlined_call_operand.vmem [shape: bf16[2,128], index: 0, kind: input, shape index: {}]   ;;  %s575_s5 = inlined_call_operand.vmem [shape: bf16[32,32], index: 5, kind: input, shape index: {}]   ;;  %s576_s4 = inlined_call_operand.vmem [shape: f32[1,32], index: 4, kind: input, shape index: {}]   ;;  %s577_s9 = inlined_call_operand.<no memory space> [shape: f32[1,1], index: 9, kind: input, shape index: {}]   ;;  %s578_s7 = inlined_call_operand.vmem [shape: f32[1,32], index: 7, kind: input, shape index: {}]   ;;  %s579_s8 = inlined_call_operand.vmem [shape: f32[1,32], index: 8, kind: input, shape index: {}]   ;;  %s580_s10 = inlined_call_operand.vmem [shape: f32[2,1], index: 10, kind: output, shape index: {}]  }
   0x1   :  { %402 = vmatprep.subr.bf16.mxu1 %v451_v0  ;;  %v439_v1 = vld [vmem:[%s570_s2 + $0x38] sm:$0xff]   ;;  %396 = vmatprep.subr.bf16.mxu0 %v451_v0  ;;  %v69_v3 = vsel %vm67_vm0, 4294967295, %v452_v2  ;;  %v440_v4 = vld [vmem:[%s570_s2 + $0x30] sm:$0xff]   ;;  %vm453_vm2 = vmmov 0   ;;  %v441_v5 = vld [vmem:[%s570_s2 + $0x28] sm:$0xff]   ;;  %vm63_vm3 = vcmask 105472   ;;  %v15_v38 = vstv %s577_s9 }
   0x2   :  { %403 = vmatpush3.bf16.msra.mxu1 %v439_v1  ;;  %398 = vmatprep.mubr.msk.bf16.mxu0 %vm453_vm2, %v451_v0  ;;  %v70_v6 = vsel %vm68_vm1, %v69_v3, 0  ;;  %v445_v7 = vld [vmem:[%s571_s3] sm:$0x7f]   ;;  %v443_v13 = vld [vmem:[%s570_s2 + $0x18] sm:$0xff]   ;;  %v444_v14 = vld [vmem:[%s570_s2 + $0x10] sm:$0xff]   ;;  %vm280_vm5 = vcmask 261120  }
   0x3   :  { %404 = vmatprep.subr.bf16.mxu1 %v451_v0  ;;  %418 = vmatprep.mubr.msk.bf16.mxu1 %vm453_vm2, %v451_v0  ;;  %v446_v8 = vld [vmem:[%s572_s6] sm:$0x7f]   ;;  %v72_v9 = vand.u32 %v445_v7, %v70_v6  ;;  %v447_v15 = vld [vmem:[%s570_s2 + $0x8] sm:$0xff]   ;;  %16 = vst [vmem:[#allocation2] sm:$0x1] %v15_v38  ;;  %vm343_vm7 = vcmask 254976  }
   0x4   :  { %v442_v10 = vld [vmem:[%s570_s2 + $0x20] sm:$0xff]   ;;  %v226_v11 = vand.u32 %v446_v8, %v70_v6  ;;  %v449_v18 = vld [vmem:[%s575_s5 + $0x8] sm:$0xff]   ;;  %vm355_vm8 = vcmask 1024  }
   0x5   :  { %397 = vmatpush3.bf16.msra.mxu0 %v72_v9  ;;  %v38_v12 = vld [vmem:[%s573_s1] sm:$0x1] }
   0x6   :  { %405 = vmatpush3.bf16.msra.mxu1 %v440_v4  ;;  %422 = vmatprep.subr.bf16.mxu0 %v451_v0  ;;  %v448_v16 = vld [vmem:[%s570_s2] sm:$0xff]  }
   0x7   :  { %406 = vmatprep.subr.bf16.mxu1 %v451_v0  ;;  %v39_v17 = vld [vmem:[%s574_s0] sm:$0x1] }
   0x8   :  { %399 = vmatmul.mubr.msk.bf16.vlgmr.msra.gmra.mxu0 %vm63_vm3, %v38_v12  ;;  %v450_v19 = vld [vmem:[%s575_s5] sm:$0xff]  }
   0x9   :  { %423 = vmatpush3.bf16.msra.mxu0 %v226_v11  ;;  %424 = vmatprep.mubr.msk.bf16.mxu0 %vm453_vm2, %v451_v0  ;;  %v371_v29 = vld [vmem:[%s576_s4] ss:$0 sm:$0xff] }
   0xa   :  { %407 = vmatpush3.bf16.msra.mxu1 %v441_v5  ;;  %428 = vmatprep.subr.bf16.mxu0 %v451_v0  ;;  %v377_v40 = vld [vmem:[%s578_s7] ss:$0 sm:$0xff] }
   0xb   :  { %408 = vmatprep.subr.bf16.mxu1 %v451_v0  ;;  %v378_v46 = vld [vmem:[%s579_s8] ss:$0 sm:$0xff] }
   0xc   :  { %v379_v51 = vld [vmem:[#allocation2] ss:$0 sm:$0xff] }
   0xe   :  { %409 = vmatpush3.bf16.msra.mxu1 %v442_v10 }
   0xf   :  { %410 = vmatprep.subr.bf16.mxu1 %v451_v0 }
  0x10   :  { %425 = vmatmul.mubr.msk.bf16.vlgmr.msra.gmra.mxu0 %vm63_vm3, %v38_v12 }
  0x11   :  { %432 = vmatprep.mubr.msk.bf16.mxu0 %vm453_vm2, %v451_v0  ;;  %429 = vmatpush3.bf16.msra.mxu0 %v449_v18 }
  0x12   :  { %411 = vmatpush3.bf16.msra.mxu1 %v443_v13  ;;  %430 = vmatprep.subr.bf16.mxu0 %v451_v0 }
  0x13   :  { %412 = vmatprep.subr.bf16.mxu1 %v451_v0 }
  0x15   :  { %431 = vmatpush3.bf16.msra.mxu0 %v450_v19 }
  0x16   :  { %413 = vmatpush3.bf16.msra.mxu1 %v444_v14 }
  0x17   :  { %414 = vmatprep.subr.bf16.mxu1 %v451_v0 }
  0x1a   :  { %415 = vmatpush3.bf16.msra.mxu1 %v447_v15 }
  0x1b   :  { %416 = vmatprep.subr.bf16.mxu1 %v451_v0 }
  0x1e   :  { %417 = vmatpush3.bf16.msra.mxu1 %v448_v16 }
  0x21   :  { %419 = vmatmul.mubr.bf16.vlgmr.msra.gmra.mxu1 %v39_v17 }
  0xc8   :  { %v108_v20 = vpop.f32.mrf.mxu0 }
  0xca   :  { %v400_v21 = vpop.f32.mrf.mxu0 }
  0xcc   :  { %v111_v22 = vpop.f32.mrf.mxu0 }
  0xce   :  { %v401_v23 = vpop.f32.mrf.mxu0 }
  0xd0   :  { %v262_v24 = vpop.f32.mrf.mxu0 }
  0xd2   :  { %v426_v25 = vpop.f32.mrf.mxu0 }
  0xd4   :  { %v265_v26 = vpop.f32.mrf.mxu0 }
  0xd6   :  { %v427_v27 = vpop.f32.mrf.mxu0 }
  0xe1   :  { %v196_v28 = vpop.f32.mrf.mxu1 }
  0xe2   :  { %v197_v30 = vadd.f32 %v196_v28, %v108_v20 }
  0xe3   :  { %v420_v31 = vpop.f32.mrf.mxu1 }
  0xe4   :  { %v209_v32 = vadd.f32 %v371_v29, %v197_v30 }
  0xe5   :  { %v199_v33 = vpop.f32.mrf.mxu1 }
  0xe6   :  { %vm210_vm4 = vcmp.gt.f32.partialorder %v209_v32, 0.0  ;;  %v211_v34 = vmul.f32 0.01, %v209_v32 }
  0xe7   :  { %v421_v35 = vpop.f32.mrf.mxu1 }
  0xe8   :  { %v212_v36 = vsel %vm210_vm4, %v209_v32, %v211_v34 }
  0xe9   :  { %v213_v37 = vpack.c.bf16 %v212_v36, %v212_v36 }
  0xeb   :  { %433 = vmatmul.mubr.msk.bf16.vlgmr.msra.gmra.mxu0 %vm280_vm5, %v213_v37 }
 0x1ab   :  { %v318_v39 = vpop.f32.mrf.mxu0 }
 0x1ac   :  { %v319_v41 = vadd.f32 %v318_v39, %v262_v24 }
 0x1ad   :  { %v434_v42 = vpop.f32.mrf.mxu0 }
 0x1ae   :  { %v331_v43 = vadd.f32 %v377_v40, %v319_v41 }
 0x1af   :  { %v321_v44 = vpop.f32.mrf.mxu0 }
 0x1b0   :  { %v333_v45 = vmul.f32 0.01, %v331_v43  ;;  %vm332_vm6 = vcmp.gt.f32.partialorder %v331_v43, 0.0 }
 0x1b1   :  { %v435_v47 = vpop.f32.mrf.mxu0 }
 0x1b2   :  { %v334_v48 = vsel %vm332_vm6, %v331_v43, %v333_v45 }
 0x1b3   :  { %v342_v49 = vmul.f32 %v378_v46, %v334_v48 }
 0x1b5   :  { %v344_v50 = vsel %vm343_vm7, %v342_v49, 0.0 }
 0x1b6   :  { %345 = vadd.xlane.f32.xlu0 %v344_v50 }
 0x23f   :  { %v346_v52 = vpop.xlane.xlu0 %345 }
 0x240   :  { %v354_v53 = vadd.f32 %v379_v51, %v346_v52 }
 0x242   :  { %356 = vst.msk [vmem:[%s580_s10] sm:$0x3] %vm355_vm8, %v354_v53 }

</bundles_post_ra>
